<compile_context>
chip_gen: v5e
topology: v5e:2x2
jax: 0.10.0
libtpu: 0.0.40
codegen_flags: <defaults>
</compile_context>

<pallas_src>
import jax
import jax.numpy as jnp
from jax import lax
from jax.experimental import pallas as pl
from jax.experimental.pallas import tpu as pltpu

IN_FEATURES = 196608   # fixed by the PyTorch module: Linear(196608, 10)
OUT_FEATURES = 10


def _linear_kernel(x_ref, w_ref, o_ref, acc_ref):
    # Grid: (core_split, k_steps). Axis 1 walks the K (reduction) dimension;
    # the f32 accumulator lives in VMEM scratch, reset at the start of each
    # core segment and written back once on its last K step.
    k = pl.program_id(1)

    @pl.when(k == 0)
    def _():
        acc_ref[...] = jnp.zeros_like(acc_ref)

    # x tile: (B, tk); w tile: (N, tk) lane-dense. Contract the last (K) dims
    # of both operands on the MXU -> (B, N) partial product in f32.
    acc_ref[...] += lax.dot_general(
        x_ref[...],
        w_ref[...],
        dimension_numbers=(((1,), (1,)), ((), ())),
        preferred_element_type=jnp.float32,
    )

    @pl.when(k == pl.num_programs(1) - 1)
    def _():
        o_ref[...] = acc_ref[...][None].astype(o_ref.dtype)


def linear_pallas(x, weight, bias, *, tk=32768, num_splits=2):
    """Computes x @ weight.T + bias (same semantics as torch.nn.Linear).

    x:      (B, K) f32
    weight: (N, K) f32  -- native PyTorch layout, lane-dense along K
    bias:   (N,)   f32
    """
    B, K = x.shape
    N, Kw = weight.shape
    assert K == Kw, "weight in_features mismatch"
    assert K % (num_splits * tk) == 0, "reduction tile must divide K evenly"
    steps = K // (num_splits * tk)  # K-steps per core segment

    # Optional further ~2x: stream the weight as bfloat16 (f32 accumulation is
    # kept by preferred_element_type). Left off to match f32 PyTorch numerics.
    partials = pl.pallas_call(
        _linear_kernel,
        out_shape=jax.ShapeDtypeStruct((num_splits, B, N), x.dtype),
        grid_spec=pltpu.PrefetchScalarGridSpec(
            num_scalar_prefetch=0,
            grid=(num_splits, steps),
            in_specs=[
                # x tile along K for this core's segment
                pl.BlockSpec((B, tk), lambda c, k: (0, c * steps + k)),
                # weight tile (N, tk): lane-dense, only sublane dim pads 10->16
                pl.BlockSpec((N, tk), lambda c, k: (0, c * steps + k)),
            ],
            out_specs=pl.BlockSpec((1, B, N), lambda c, k: (c, 0, 0)),
            scratch_shapes=[pltpu.VMEM((B, N), jnp.float32)],
        ),
        compiler_params=pltpu.CompilerParams(
            dimension_semantics=("parallel", "arbitrary"),
        ),
        cost_estimate=pl.CostEstimate(
            flops=2 * B * K * N,
            bytes_accessed=(N * K + B * K + num_splits * B * N) * 4,
            transcendentals=0,
        ),
    )(x, weight)

    # Cheap (num_splits, B, N) partial-sum + bias add outside the kernel so the
    # bias never occupies a pipelined VMEM input stream.
    return partials.sum(axis=0) + bias[None, :]


if __name__ == "__main__":
    key = jax.random.PRNGKey(0)
    kx, kw, kb = jax.random.split(key, 3)

    batch = 2
    # Deterministic "parameters" (PyTorch-style uniform(-1/sqrt(K), 1/sqrt(K))).
    bound = 1.0 / jnp.sqrt(jnp.float32(IN_FEATURES))
    weight = jax.random.uniform(
        kw, (OUT_FEATURES, IN_FEATURES), jnp.float32, -bound, bound
    )
    bias = jax.random.uniform(kb, (OUT_FEATURES,), jnp.float32, -bound, bound)

    x = jax.random.normal(kx, (batch, IN_FEATURES), jnp.float32)

    out = linear_pallas(x, weight, bias)
    out = jax.block_until_ready(out)

    # Reference check against plain JAX (same semantics as torch Linear).
    ref = x @ weight.T + bias[None, :]
    assert out.shape == (batch, OUT_FEATURES)
    assert jnp.allclose(out, ref, atol=1e-3, rtol=1e-3)

    print("KERNEL_OK")
</pallas_src>

<mosaic_0001>
module attributes {stable_mosaic.version = 11 : i64} {
  func.func @_linear_kernel(%arg0: i32, %arg1: i32, %arg2: memref<2x32768xf32, #tpu.memory_space<vmem>>, %arg3: memref<10x32768xf32, #tpu.memory_space<vmem>>, %arg4: memref<1x2x10xf32, #tpu.memory_space<vmem>>, %arg5: memref<2x10xf32, #tpu.memory_space<vmem>>) attributes {dimension_semantics = [#tpu.dimension_semantics<parallel>, #tpu.dimension_semantics<arbitrary>], iteration_bounds = array<i64: 2, 3>, scalar_prefetch = 0 : i64, scratch_operands = 1 : i64, tpu.core_type = #tpu.core_type<tc>, window_params = [{transform_indices = @transform_0, window_bounds = array<i64: 2, 32768>}, {transform_indices = @transform_1, window_bounds = array<i64: 10, 32768>}, {transform_indices = @transform_2, window_bounds = array<i64: 1, 2, 10>}]} {
    %c0_i32 = arith.constant 0 : i32
    %0 = arith.cmpi eq, %arg1, %c0_i32 : i32
    %1 = arith.extui %0 : i1 to i32
    %c0_i32_0 = arith.constant 0 : i32
    %2 = arith.cmpi ne, %1, %c0_i32_0 : i32
    scf.if %2 {
      %cst_9 = arith.constant 0.000000e+00 : f32
      %12 = vector.broadcast %cst_9 : f32 to vector<2x10xf32>
      %c0_10 = arith.constant 0 : index
      %c0_11 = arith.constant 0 : index
      %13 = vector.load %arg5[%c0_10, %c0_11] : memref<2x10xf32, #tpu.memory_space<vmem>>, vector<2x10xf32>
      tpu.vector_store %arg5[%c0_10, %c0_11], %12 {strides = array<i32>} : memref<2x10xf32, #tpu.memory_space<vmem>>, vector<2x10xf32>,
    } else {
    }
    %c0 = arith.constant 0 : index
    %c0_1 = arith.constant 0 : index
    %3 = vector.load %arg5[%c0, %c0_1] : memref<2x10xf32, #tpu.memory_space<vmem>>, vector<2x10xf32>
    %c0_2 = arith.constant 0 : index
    %c0_3 = arith.constant 0 : index
    %4 = vector.load %arg2[%c0_2, %c0_3] : memref<2x32768xf32, #tpu.memory_space<vmem>>, vector<2x32768xf32>
    %c0_4 = arith.constant 0 : index
    %c0_5 = arith.constant 0 : index
    %5 = vector.load %arg3[%c0_4, %c0_5] : memref<10x32768xf32, #tpu.memory_space<vmem>>, vector<10x32768xf32>
    %cst = arith.constant dense<0.000000e+00> : vector<2x10xf32>
    %6 = tpu.matmul %4, %5, %cst {dimension_numbers = #tpu.dot_dimension_numbers<[1], [1], [0], [0], [0, 0, 1, 0], [], []>} : vector<2x32768xf32>, vector<10x32768xf32>, vector<2x10xf32> -> vector<2x10xf32>
    %7 = arith.addf %3, %6 : vector<2x10xf32>
    %c0_6 = arith.constant 0 : index
    %c0_7 = arith.constant 0 : index
    %8 = vector.load %arg5[%c0_6, %c0_7] : memref<2x10xf32, #tpu.memory_space<vmem>>, vector<2x10xf32>
    tpu.vector_store %arg5[%c0_6, %c0_7], %7 {strides = array<i32>} : memref<2x10xf32, #tpu.memory_space<vmem>>, vector<2x10xf32>,
    %c2_i32 = arith.constant 2 : i32
    %9 = arith.cmpi eq, %arg1, %c2_i32 : i32
    %10 = arith.extui %9 : i1 to i32
    %c0_i32_8 = arith.constant 0 : i32
    %11 = arith.cmpi ne, %10, %c0_i32_8 : i32
    scf.if %11 {
      %c0_9 = arith.constant 0 : index
      %c0_10 = arith.constant 0 : index
      %12 = vector.load %arg5[%c0_9, %c0_10] : memref<2x10xf32, #tpu.memory_space<vmem>>, vector<2x10xf32>
      %13 = vector.shape_cast %12 : vector<2x10xf32> to vector<1x2x10xf32>
      %c0_11 = arith.constant 0 : index
      %c0_12 = arith.constant 0 : index
      %c0_13 = arith.constant 0 : index
      %14 = vector.load %arg4[%c0_11, %c0_12, %c0_13] : memref<1x2x10xf32, #tpu.memory_space<vmem>>, vector<1x2x10xf32>
      tpu.vector_store %arg4[%c0_11, %c0_12, %c0_13], %13 {strides = array<i32>} : memref<1x2x10xf32, #tpu.memory_space<vmem>>, vector<1x2x10xf32>,
    } else {
    }
    return
  }
  func.func @transform_0(%arg0: i32, %arg1: i32) -> (i32, i32) {
    %c3_i32 = arith.constant 3 : i32
    %0 = arith.muli %arg0, %c3_i32 : i32
    %1 = arith.addi %0, %arg1 : i32
    %c0_i32 = arith.constant 0 : i32
    %c0_i32_0 = arith.constant 0 : i32
    return %c0_i32, %1 : i32, i32
  }
  func.func @transform_1(%arg0: i32, %arg1: i32) -> (i32, i32) {
    %c3_i32 = arith.constant 3 : i32
    %0 = arith.muli %arg0, %c3_i32 : i32
    %1 = arith.addi %0, %arg1 : i32
    %c0_i32 = arith.constant 0 : i32
    %c0_i32_0 = arith.constant 0 : i32
    return %c0_i32, %1 : i32, i32
  }
  func.func @transform_2(%arg0: i32, %arg1: i32) -> (i32, i32, i32) {
    %c0_i32 = arith.constant 0 : i32
    %c0_i32_0 = arith.constant 0 : i32
    %c0_i32_1 = arith.constant 0 : i32
    return %arg0, %c0_i32, %c0_i32_0 : i32, i32, i32
  }
}

</mosaic_0001>

<bundles_post_ra>
// kernel: tpu_custom_call.1
= control target key start
LH: loop header
LB: loop body
LE: loop exit
PB: predicated region body
PF: predicated region fallthrough
CT: control target
= control target key end

     0   :  { %s8501_s0 = inlined_call_operand.hbm [shape: f32[2,196608], index: 0, kind: input, shape index: {}]   ;;  %s8502_s1 = inlined_call_operand.hbm [shape: f32[10,196608], index: 1, kind: input, shape index: {}]   ;;  %s8503_s2 = inlined_call_operand.hbm [shape: f32[2,2,10], index: 2, kind: output, shape index: {}]  }
   0x1   :  { %8508 = sst [smem:[#allocation17_spill]] %s8501_s0 }
   0x2   :  { %7 = vsyncpa [#allocation4], 0 }
   0x3   :  { %9 = vsyncpa [#allocation4 + $0x1], 0 }
   0x4   :  { %10 = vsyncpa [#allocation7], 0 }
   0x5   :  { %12 = vsyncpa [#allocation7 + $0x1], 0 }
   0x6   :  { %13 = vsyncpa [#allocation5], 0 }
   0x7   :  { %15 = vsyncpa [#allocation5 + $0x1], 0  ;;  %s7051_s9 = smov 0   ;;  %s7053_s10 = smov 0  }
   0x8   :  { %s7055_s11 = smov 0   ;;  %s7057_s12 = smov 0  }
   0x9   :  { %s7059_s13 = smov 0   ;;  %s7061_s14 = smov 0  }
   0xa   :  { %s7063_s15 = smov 0   ;;  %s7065_s16 = smov 0  }
   0xb   :  { %s7067_s17 = smov 0   ;;  %s7069_s18 = smov 0  }
   0xc   :  { %s7071_s19 = smov 0  }
   0xd LB: > { %8509 = sst [smem:[#allocation12_spill]] %s7022_s17  ;;  %s6711_s20 = sadd.s32 4294967295, %s7030_s19   ;;  %s7030_s19 = sphi %s7071_s19, %s21_s19   ;;  %s7026_s18 = sphi %s7069_s18, %s8524_s18   ;;  %s7022_s17 = sphi %s7067_s17, %s8523_s17   ;;  %s7018_s16 = sphi %s7065_s16, %s8522_s16   ;;  %s7014_s15 = sphi %s7063_s15, %s8521_s15   ;;  %s7010_s14 = sphi %s7061_s14, %s8530_s14   ;;  %s7006_s13 = sphi %s7059_s13, %s8529_s13   ;;  %s7002_s12 = sphi %s7057_s12, %s8528_s12   ;;  %s6998_s11 = sphi %s7055_s11, %s8527_s11   ;;  %s6994_s10 = sphi %s7053_s10, %s8526_s10   ;;  %s6990_s9 = sphi %s7051_s9, %s8525_s9  }
   0xe   : > { %8510 = sst [smem:[#allocation13_spill]] %s7026_s18  ;;  %s6712_s21 = sadd.s32 4294967294, %s7030_s19  }
   0xf   : > { %s30_s22 = sadd.s32 1, %s7022_s17  ;;  %s33_s23 = sadd.s32 1, %s7026_s18 }
  0x10   : > { %p31_p0 = scmp.ge.s32.totalorder %s30_s22, 3  ;;  %s37_s24 = smul.u32 3, %s7026_s18 }
  0x11   : > { %s44_s25 = sadd.s32 1, %s7010_s14  ;;  %p51_p1 = scmp.ne.s32.totalorder %s7010_s14, %s7006_s13 }
  0x12   : > { %s8532_s22 = smov (%p31_p0, %s30_s22), 0  ;;  %s8534_s23 = smov (!%p31_p0, %s33_s23), %s7026_s18 }
  0x13   : > { %8511 = sst [smem:[#allocation14_spill]] %s8532_s22  ;;  %s7116_s26 = sadd.s32 %s7022_s17, %s37_s24 }
  0x14   : > { %p52_p2 = scmp.eq.s32.totalorder %s7030_s19, 0  ;;  %p35_p3 = scmp.ge.s32.totalorder %s8534_s23, 2 }
  0x15   : > { %p57_p4 = scmp.ne.s32.totalorder %s7006_s13, %s7002_s12  ;;  %p58_p6 = scmp.eq.s32.totalorder %s6711_s20, 0 }
  0x16   : > { %p7120_p5 = por %p52_p2, %p51_p1  ;;  %s8536_s23 = smov (%p35_p3, %s8534_s23), 0 }
  0x17   : > { %8513 = sst [smem:[#allocation15_spill]] %s8536_s23  ;;  %p7126_p7 = por %p58_p6, %p57_p4 }
  0x18   : > { %s100_s29 = sadd.s32 1, %s6998_s11  ;;  %s39_s30 = smul.u32 3, %s8536_s23 }
  0x19   : > { %s97_s3 = ssub.s32 %s7026_s18, %s8536_s23  ;;  %p110_p9 = scmp.ne.s32.totalorder %s6998_s11, %s6994_s10 }
  0x1a   : > { %p98_p8 = scmp.eq.s32.totalorder %s97_s3, 0  ;;  %s40_s4 = sadd.s32 %s39_s30, %s8532_s22 }
  0x1b   : > { %p111_p10 = scmp.eq.s32.totalorder %s6711_s20, 5  ;;  %s41_s5 = ssub.s32 %s7116_s26, %s40_s4 }
  0x1c   : > { %p116_p11 = scmp.ne.s32.totalorder %s6994_s10, %s6990_s9  ;;  %p42_p12 = scmp.eq.s32.totalorder %s41_s5, 0 }
  0x1d   : > { %p7140_p13 = por %p111_p10, %p110_p9  ;;  %p117_p0 = scmp.eq.s32.totalorder %s6712_s21, 5 }
  0x1e   : > { %s7145_s7 = scalar_select %p98_p8, %s6998_s11, %s100_s29  }
  0x1f   : > { %s7148_s8 = scalar_select %p42_p12, %s7010_s14, %s44_s25  }
  0x20   : > { %p6750_p1 = scmp.lt.s32.totalorder %s7030_s19, 6  ;;  %s7154_s12 = sand.u32 1, %s7010_s14  }
  0x21   : > { %8516 = sst [smem:[#allocation16_spill]] %s7148_s8  ;;  %p7156_p2 = por %p117_p0, %p116_p11 }
  0x22   : > { %s6715_s24 = sshll.u32 %s7154_s12, 9  ;;  %s6731_s29 = sshll.u32 %s7116_s26, 9 }
  0x23   : > { %s8518_s0 = sld [smem:[#allocation17_spill]]  ;;  %s141_s21 = scalar_lea.vmem [#allocation3], %s6715_s24 }
  0x24   : > { %s152_s5 = sshll.u32 %s141_s21, 4  ;;  %p7167_p3 = pnand %p6750_p1, %p7120_p5  ;;  %s153_s5 = int_to_ptr.vmem [resolvable:$true] %s152_s5 }
  0x25   : > { %s6718_s22 = sshll.u32 %s7154_s12, 12  ;;  %s6732_s18 = sshll.u32 %s7116_s26, 11 }
  0x26   : > { %s138_s17 = scalar_lea.sflag [#allocation4], %s7154_s12  ;;  %s170_s24 = scalar_lea.hbm %s8502_s1, %s6732_s18 }
  0x27   : > { %p6721_p4 = scmp.ge.s32.totalorder %s7030_s19, 1  ;;  %s171_s3 = sshll.u32 %s170_s24, 4  ;;  %s172_s3 = int_to_ptr.hbm [resolvable:$true] %s171_s3 }
  0x28   : > { %p181_p6 = scmp.lt.s32.totalorder %s7030_s19, 7  ;;  %s163_s27 = scalar_lea.vmem [#allocation6], %s6718_s22 }
  0x29   : > { %s148_s25 = scalar_lea.hbm %s8518_s0, %s6731_s29  ;;  %s160_s21 = scalar_lea.sflag [#allocation7], %s7154_s12 }
  0x2a   : > { %s150_s4 = sshll.u32 %s148_s25, 4  ;;  %s173_s25 = sshll.u32 %s163_s27, 4  ;;  %s151_s4 = int_to_ptr.hbm [resolvable:$true] %s150_s4  ;;  %s174_s25 = int_to_ptr.vmem [resolvable:$true] %s173_s25 }
  0x2b   : > { %6742 = dma.hbm_to_vmem [thread:$0]  (!%p7167_p3), %s151_s4, 8192, %s153_s5, %s138_s17  }
  0x2c   : > { %p182_p5 = pnand %p6721_p4, %p181_p6  ;;  %s7032_s0 = smov 196608  }
  0x2d   : > { %s7033_s8 = smov 32768   ;;  %s7034_s26 = smov 2048  }
  0x2e   : > { %6745 = dma.hbm_to_vmem [thread:$0]  (!%p7167_p3), %s172_s3, 65536, %s174_s25, %s160_s21, %s7032_s0, %s7033_s8, %s7034_s26  }
  0x2f   : > { %185 = sbr.rel (%p182_p5) target bundleno = 742 (0x2e6), region = 28  ;;  %s187_s17 = sand.u32 (!%p182_p5), 1, %s7006_s13  }
  0x30   : > { %s6722_s4 = sshll.u32 (!%p182_p5), %s187_s17, 9  ;;  %s188_s18 = scalar_lea.sflag (!%p182_p5), [#allocation4], %s187_s17 }
  0x31   : > { %s7185_s5 = scalar_lea.vmem (!%p182_p5), [#allocation3], %s6722_s4 }
  0x34   : > { %6977 = dma.done.wait (%p7126_p7), %s188_s18, 8192  }
  0x35   : > { %6979 = vsyncadd (%p7126_p7), %s188_s18, 4294959104  ;;  %s6723_s22 = sshll.u32 %s187_s17, 12  ;;  %s198_s12 = scalar_lea.sflag [#allocation7], %s187_s17 }
  0x36   : > { %s7191_s30 = scalar_lea.vmem [#allocation6], %s6723_s22 }
  0x37   : > { %6981 = dma.done.wait (%p7126_p7), %s198_s12, 65536  }
  0x38   : > { %6983 = vsyncadd (%p7126_p7), %s198_s12, 4294901760  ;;  %s225_s0 = sand.u32 1, %s6994_s10   ;;  %p6725_p8 = scmp.ne.s32.totalorder %s7014_s15, 0 }
  0x39   : > { %s7200_s23 = sshll.u32 %s225_s0, 1 }
  0x3a   : > { %s227_s8 = scalar_lea.vmem [#allocation8], %s7200_s23  ;;  %237 = sbr.rel (%p6725_p8) target bundleno = 65 (0x41), region = 40 }
  0x3f   : > { %vm238_vm0 = vcmask 74752   ;;  %v7035_v0 = vmov 0.0  }
  0x40   : > { %239 = vst.msk [vmem:[#allocation2] sm:$0x3] %vm238_vm0, %v7035_v0 }
  0x41 PF: > { %v563_v1 = vld [vmem:[%s7191_s30 + $0x810] sm:$0x3]  ;;  %v561_v2 = vld [vmem:[%s7191_s30 + $0x800] sm:$0x3]  ;;  %v562_v3 = vld [vmem:[%s7191_s30 + $0x808] sm:$0x3] }
  0x42   : > { %1512 = vmatpush.xpose.msra.mxu2 %v563_v1  ;;  %1472 = vmatpush.xpose.msra.mxu0 %v561_v2  ;;  %v564_v4 = vld [vmem:[%s7191_s30 + $0x818] sm:$0x3]  ;;  %v307_v5 = vld [vmem:[%s7191_s30 + $0x10] sm:$0xff]  ;;  %v305_v6 = vld [vmem:[%s7191_s30] sm:$0xff]  ;;  %vm6579_vm1 = vcmask 74752   ;;  %p6726_p7 = scmp.ne.s32.totalorder %s7014_s15, 2 }
  0x43   : > { %1492 = vmatpush.xpose.msra.mxu1 %v562_v3  ;;  %1532 = vmatpush.xpose.msra.mxu3 %v564_v4  ;;  %v241_v7 = vld [vmem:[%s7185_s5] sm:$0xff]  ;;  %v306_v8 = vld [vmem:[%s7191_s30 + $0x8] sm:$0xff]  ;;  %v308_v9 = vld [vmem:[%s7191_s30 + $0x18] sm:$0xff] }
  0x44   : > { %881 = vst [vmem:[#allocation1] ss:$4 sm:$0xff] %v241_v7  ;;  %v567_v10 = vld [vmem:[%s7191_s30 + $0x830] sm:$0x3]  ;;  %v565_v11 = vld [vmem:[%s7191_s30 + $0x820] sm:$0x3] }
  0x45   : > { %v568_v12 = vld [vmem:[%s7191_s30 + $0x838] sm:$0x3]  ;;  %v566_v13 = vld [vmem:[%s7191_s30 + $0x828] sm:$0x3]  ;;  %v311_v15 = vld [vmem:[%s7191_s30 + $0x30] sm:$0xff] }
  0x46   : > { %1513 = vmatpush.xpose.msra.mxu2 %v307_v5  ;;  %1473 = vmatpush.xpose.msra.mxu0 %v305_v6  ;;  %v242_v14 = vld [vmem:[%s7185_s5 + $0x8] sm:$0xff]  ;;  %v309_v16 = vld [vmem:[%s7191_s30 + $0x20] sm:$0xff]  ;;  %v312_v17 = vld [vmem:[%s7191_s30 + $0x38] sm:$0xff] }
  0x47   : > { %1493 = vmatpush.xpose.msra.mxu1 %v306_v8  ;;  %1533 = vmatpush.xpose.msra.mxu3 %v308_v9  ;;  %883 = vst [vmem:[#allocation1 + $0x20] ss:$4 sm:$0xff] %v242_v14  ;;  %v310_v18 = vld [vmem:[%s7191_s30 + $0x28] sm:$0xff]  ;;  %v243_v19 = vld [vmem:[%s7185_s5 + $0x10] sm:$0xff]  ;;  %v569_v25 = vld [vmem:[%s7191_s30 + $0x840] sm:$0x3] }
  0x48   : > { %v571_v24 = vld [vmem:[%s7191_s30 + $0x850] sm:$0x3]  ;;  %v572_v26 = vld [vmem:[%s7191_s30 + $0x858] sm:$0x3]  ;;  %v570_v27 = vld [vmem:[%s7191_s30 + $0x848] sm:$0x3] }
  0x49   : > { %v244_v32 = vld [vmem:[%s7185_s5 + $0x18] sm:$0xff]  ;;  %v315_v33 = vld [vmem:[%s7191_s30 + $0x50] sm:$0xff]  ;;  %v313_v34 = vld [vmem:[%s7191_s30 + $0x40] sm:$0xff] }
  0x4a   : > { %1592 = vmatpush.xpose.msrb.mxu2 %v567_v10  ;;  %1552 = vmatpush.xpose.msrb.mxu0 %v565_v11  ;;  %v316_v35 = vld [vmem:[%s7191_s30 + $0x58] sm:$0xff]  ;;  %v314_v36 = vld [vmem:[%s7191_s30 + $0x48] sm:$0xff]  ;;  %v575_v37 = vld [vmem:[%s7191_s30 + $0x870] sm:$0x3] }
  0x4b   : > { %1612 = vmatpush.xpose.msrb.mxu3 %v568_v12  ;;  %1572 = vmatpush.xpose.msrb.mxu1 %v566_v13  ;;  %v886_v20 = vld.sshfl [vmem:[#allocation1 + $0x10] sm:$0xff pattern:$0x73625140]  ;;  %v884_v21 = vld.sshfl [vmem:[#allocation1] sm:$0xff pattern:$0x73625140] }
  0x4c   : > { %1514 = vmatmul.f32.vlgmr.msra.gmra.mxu2 %v886_v20  ;;  %1474 = vmatmul.f32.vlgmr.msra.gmra.mxu0 %v884_v21  ;;  %v885_v22 = vld.sshfl [vmem:[#allocation1 + $0x8] sm:$0xff pattern:$0x73625140]  ;;  %v887_v23 = vld.sshfl [vmem:[#allocation1 + $0x18] sm:$0xff pattern:$0x73625140] }
  0x4d   : > { %1494 = vmatmul.f32.vlgmr.msra.gmra.mxu1 %v885_v22  ;;  %1534 = vmatmul.f32.vlgmr.msra.gmra.mxu3 %v887_v23  ;;  %892 = vst [vmem:[#allocation1] ss:$4 sm:$0xff] %v243_v19  ;;  %v573_v38 = vld [vmem:[%s7191_s30 + $0x860] sm:$0x3]  ;;  %v576_v39 = vld [vmem:[%s7191_s30 + $0x878] sm:$0x3] }
  0x4e   : > { %1593 = vmatpush.xpose.msrb.mxu2 %v311_v15  ;;  %1553 = vmatpush.xpose.msrb.mxu0 %v309_v16  ;;  %v890_v28 = vld.sshfl [vmem:[#allocation1 + $0x30] sm:$0xff pattern:$0x73625140]  ;;  %v888_v29 = vld.sshfl [vmem:[#allocation1 + $0x20] sm:$0xff pattern:$0x73625140] }
  0x4f   : > { %1613 = vmatpush.xpose.msrb.mxu3 %v312_v17  ;;  %1573 = vmatpush.xpose.msrb.mxu1 %v310_v18  ;;  %v891_v30 = vld.sshfl [vmem:[#allocation1 + $0x38] sm:$0xff pattern:$0x73625140]  ;;  %v889_v31 = vld.sshfl [vmem:[#allocation1 + $0x28] sm:$0xff pattern:$0x73625140] }
  0x50   : > { %893 = vst [vmem:[#allocation1 + $0x20] ss:$4 sm:$0xff] %v244_v32  ;;  %v574_v41 = vld [vmem:[%s7191_s30 + $0x868] sm:$0x3]  ;;  %v245_v45 = vld [vmem:[%s7185_s5 + $0x20] sm:$0xff]  ;;  %v319_v46 = vld [vmem:[%s7191_s30 + $0x70] sm:$0xff] }
  0x51   : > { %v317_v47 = vld [vmem:[%s7191_s30 + $0x60] sm:$0xff]  ;;  %v320_v48 = vld [vmem:[%s7191_s30 + $0x78] sm:$0xff]  ;;  %v318_v52 = vld [vmem:[%s7191_s30 + $0x68] sm:$0xff] }
  0x52   : > { %1672 = vmatpush.xpose.msra.mxu2 %v571_v24  ;;  %1632 = vmatpush.xpose.msra.mxu0 %v569_v25  ;;  %v246_v54 = vld [vmem:[%s7185_s5 + $0x28] sm:$0xff]  ;;  %v579_v55 = vld [vmem:[%s7191_s30 + $0x890] sm:$0x3]  ;;  %v577_v56 = vld [vmem:[%s7191_s30 + $0x880] sm:$0x3] }
  0x53   : > { %1692 = vmatpush.xpose.msra.mxu3 %v572_v26  ;;  %1652 = vmatpush.xpose.msra.mxu1 %v570_v27  ;;  %v580_v57 = vld [vmem:[%s7191_s30 + $0x898] sm:$0x3]  ;;  %v578_v58 = vld [vmem:[%s7191_s30 + $0x888] sm:$0x3]  ;;  %v247_v63 = vld [vmem:[%s7185_s5 + $0x30] sm:$0xff] }
  0x54   : > { %1594 = vmatmul.f32.vlgmr.msrb.gmra.mxu2 %v890_v28  ;;  %1554 = vmatmul.f32.vlgmr.msrb.gmra.mxu0 %v888_v29  ;;  %v896_v40 = vld.sshfl [vmem:[#allocation1 + $0x10] sm:$0xff pattern:$0x73625140]  ;;  %v894_v42 = vld.sshfl [vmem:[#allocation1] sm:$0xff pattern:$0x73625140] }
  0x55   : > { %1614 = vmatmul.f32.vlgmr.msrb.gmra.mxu3 %v891_v30  ;;  %1574 = vmatmul.f32.vlgmr.msrb.gmra.mxu1 %v889_v31  ;;  %v897_v43 = vld.sshfl [vmem:[#allocation1 + $0x18] sm:$0xff pattern:$0x73625140]  ;;  %v895_v44 = vld.sshfl [vmem:[#allocation1 + $0x8] sm:$0xff pattern:$0x73625140] }
  0x56   : > { %1673 = vmatpush.xpose.msra.mxu2 %v315_v33  ;;  %1633 = vmatpush.xpose.msra.mxu0 %v313_v34  ;;  %902 = vst [vmem:[#allocation1] ss:$4 sm:$0xff] %v245_v45  ;;  %v323_v0 = vld [vmem:[%s7191_s30 + $0x90] sm:$0xff]  ;;  %v321_v1 = vld [vmem:[%s7191_s30 + $0x80] sm:$0xff]  ;;  %v324_v2 = vld [vmem:[%s7191_s30 + $0x98] sm:$0xff] }
  0x57   : > { %1693 = vmatpush.xpose.msra.mxu3 %v316_v35  ;;  %1653 = vmatpush.xpose.msra.mxu1 %v314_v36  ;;  %v900_v49 = vld.sshfl [vmem:[#allocation1 + $0x30] sm:$0xff pattern:$0x73625140]  ;;  %v898_v50 = vld.sshfl [vmem:[#allocation1 + $0x20] sm:$0xff pattern:$0x73625140] }
  0x58   : > { %v901_v51 = vld.sshfl [vmem:[#allocation1 + $0x38] sm:$0xff pattern:$0x73625140]  ;;  %v899_v53 = vld.sshfl [vmem:[#allocation1 + $0x28] sm:$0xff pattern:$0x73625140] }
  0x59   : > { %903 = vst [vmem:[#allocation1 + $0x20] ss:$4 sm:$0xff] %v246_v54  ;;  %v322_v3 = vld [vmem:[%s7191_s30 + $0x88] sm:$0xff]  ;;  %v583_v4 = vld [vmem:[%s7191_s30 + $0x8b0] sm:$0x3]  ;;  %v248_v12 = vld [vmem:[%s7185_s5 + $0x38] sm:$0xff] }
  0x5a   : > { %1752 = vmatpush.xpose.msrb.mxu2 %v575_v37  ;;  %1712 = vmatpush.xpose.msrb.mxu0 %v573_v38  ;;  %v581_v5 = vld [vmem:[%s7191_s30 + $0x8a0] sm:$0x3]  ;;  %v584_v6 = vld [vmem:[%s7191_s30 + $0x8b8] sm:$0x3]  ;;  %v582_v7 = vld [vmem:[%s7191_s30 + $0x8a8] sm:$0x3] }
  0x5b   : > { %1772 = vmatpush.xpose.msrb.mxu3 %v576_v39  ;;  %1732 = vmatpush.xpose.msrb.mxu1 %v574_v41  ;;  %v327_v13 = vld [vmem:[%s7191_s30 + $0xb0] sm:$0xff]  ;;  %v325_v14 = vld [vmem:[%s7191_s30 + $0xa0] sm:$0xff]  ;;  %v328_v15 = vld [vmem:[%s7191_s30 + $0xb8] sm:$0xff] }
  0x5c   : > { %1674 = vmatmul.f32.vlgmr.msra.gmra.mxu2 %v896_v40  ;;  %1634 = vmatmul.f32.vlgmr.msra.gmra.mxu0 %v894_v42  ;;  %v326_v19 = vld [vmem:[%s7191_s30 + $0xa8] sm:$0xff]  ;;  %v249_v21 = vld [vmem:[%s7185_s5 + $0x40] sm:$0xff]  ;;  %v587_v22 = vld [vmem:[%s7191_s30 + $0x8d0] sm:$0x3] }
  0x5d   : > { %1694 = vmatmul.f32.vlgmr.msra.gmra.mxu3 %v897_v43  ;;  %1654 = vmatmul.f32.vlgmr.msra.gmra.mxu1 %v895_v44  ;;  %v906_v59 = vld.sshfl [vmem:[#allocation1 + $0x10] sm:$0xff pattern:$0x73625140]  ;;  %v904_v60 = vld.sshfl [vmem:[#allocation1] sm:$0xff pattern:$0x73625140] }
  0x5e   : > { %1753 = vmatpush.xpose.msrb.mxu2 %v319_v46  ;;  %1713 = vmatpush.xpose.msrb.mxu0 %v317_v47  ;;  %v907_v61 = vld.sshfl [vmem:[#allocation1 + $0x18] sm:$0xff pattern:$0x73625140]  ;;  %v905_v62 = vld.sshfl [vmem:[#allocation1 + $0x8] sm:$0xff pattern:$0x73625140] }
  0x5f   : > { %1773 = vmatpush.xpose.msrb.mxu3 %v320_v48  ;;  %1733 = vmatpush.xpose.msrb.mxu1 %v318_v52  ;;  %912 = vst [vmem:[#allocation1] ss:$4 sm:$0xff] %v247_v63  ;;  %v585_v23 = vld [vmem:[%s7191_s30 + $0x8c0] sm:$0x3]  ;;  %v588_v24 = vld [vmem:[%s7191_s30 + $0x8d8] sm:$0x3] }
  0x60   : > { %v910_v8 = vld.sshfl [vmem:[#allocation1 + $0x30] sm:$0xff pattern:$0x73625140]  ;;  %v908_v9 = vld.sshfl [vmem:[#allocation1 + $0x20] sm:$0xff pattern:$0x73625140] }
  0x61   : > { %v911_v10 = vld.sshfl [vmem:[#allocation1 + $0x38] sm:$0xff pattern:$0x73625140]  ;;  %v909_v11 = vld.sshfl [vmem:[#allocation1 + $0x28] sm:$0xff pattern:$0x73625140] }
  0x62   : > { %1832 = vmatpush.xpose.msra.mxu2 %v579_v55  ;;  %1792 = vmatpush.xpose.msra.mxu0 %v577_v56  ;;  %913 = vst [vmem:[#allocation1 + $0x20] ss:$4 sm:$0xff] %v248_v12  ;;  %v586_v25 = vld [vmem:[%s7191_s30 + $0x8c8] sm:$0x3]  ;;  %v331_v31 = vld [vmem:[%s7191_s30 + $0xd0] sm:$0xff]  ;;  %v329_v32 = vld [vmem:[%s7191_s30 + $0xc0] sm:$0xff] }
  0x63   : > { %1852 = vmatpush.xpose.msra.mxu3 %v580_v57  ;;  %1812 = vmatpush.xpose.msra.mxu1 %v578_v58  ;;  %v250_v30 = vld [vmem:[%s7185_s5 + $0x48] sm:$0xff]  ;;  %v332_v33 = vld [vmem:[%s7191_s30 + $0xd8] sm:$0xff]  ;;  %v591_v35 = vld [vmem:[%s7191_s30 + $0x8f0] sm:$0x3] }
  0x64   : > { %1754 = vmatmul.f32.vlgmr.msrb.gmra.mxu2 %v900_v49  ;;  %1714 = vmatmul.f32.vlgmr.msrb.gmra.mxu0 %v898_v50  ;;  %v330_v34 = vld [vmem:[%s7191_s30 + $0xc8] sm:$0xff]  ;;  %v589_v36 = vld [vmem:[%s7191_s30 + $0x8e0] sm:$0x3]  ;;  %v592_v37 = vld [vmem:[%s7191_s30 + $0x8f8] sm:$0x3] }
  0x65   : > { %1774 = vmatmul.f32.vlgmr.msrb.gmra.mxu3 %v901_v51  ;;  %1734 = vmatmul.f32.vlgmr.msrb.gmra.mxu1 %v899_v53  ;;  %v590_v38 = vld [vmem:[%s7191_s30 + $0x8e8] sm:$0x3]  ;;  %v251_v39 = vld [vmem:[%s7185_s5 + $0x50] sm:$0xff]  ;;  %v333_v48 = vld [vmem:[%s7191_s30 + $0xe0] sm:$0xff] }
  0x66   : > { %1833 = vmatpush.xpose.msra.mxu2 %v323_v0  ;;  %1793 = vmatpush.xpose.msra.mxu0 %v321_v1  ;;  %v916_v16 = vld.sshfl [vmem:[#allocation1 + $0x10] sm:$0xff pattern:$0x73625140]  ;;  %v914_v17 = vld.sshfl [vmem:[#allocation1] sm:$0xff pattern:$0x73625140] }
  0x67   : > { %1853 = vmatpush.xpose.msra.mxu3 %v324_v2  ;;  %1813 = vmatpush.xpose.msra.mxu1 %v322_v3  ;;  %v7259_v18 = vld.sshfl [vmem:[#allocation1 + $0x18] sm:$0xff pattern:$0x73625140]  ;;  %v915_v20 = vld.sshfl [vmem:[#allocation1 + $0x8] sm:$0xff pattern:$0x73625140] }
  0x68   : > { %922 = vst [vmem:[#allocation1] ss:$4 sm:$0xff] %v249_v21  ;;  %v335_v44 = vld [vmem:[%s7191_s30 + $0xf0] sm:$0xff]  ;;  %v252_v50 = vld [vmem:[%s7185_s5 + $0x58] sm:$0xff]  ;;  %v334_v52 = vld [vmem:[%s7191_s30 + $0xe8] sm:$0xff] }
  0x69   : > { %v7267_v26 = vld.sshfl [vmem:[#allocation1 + $0x30] sm:$0xff pattern:$0x73625140]  ;;  %v7269_v27 = vld.sshfl [vmem:[#allocation1 + $0x20] sm:$0xff pattern:$0x73625140] }
  0x6a   : > { %1912 = vmatpush.xpose.msrb.mxu2 %v583_v4  ;;  %1872 = vmatpush.xpose.msrb.mxu0 %v581_v5  ;;  %v7271_v28 = vld.sshfl [vmem:[#allocation1 + $0x38] sm:$0xff pattern:$0x73625140]  ;;  %v7273_v29 = vld.sshfl [vmem:[#allocation1 + $0x28] sm:$0xff pattern:$0x73625140] }
  0x6b   : > { %1932 = vmatpush.xpose.msrb.mxu3 %v584_v6  ;;  %1892 = vmatpush.xpose.msrb.mxu1 %v582_v7  ;;  %923 = vst [vmem:[#allocation1 + $0x20] ss:$4 sm:$0xff] %v250_v30  ;;  %v336_v51 = vld [vmem:[%s7191_s30 + $0xf8] sm:$0xff]  ;;  %v595_v53 = vld [vmem:[%s7191_s30 + $0x910] sm:$0x3]  ;;  %v337_v58 = vld [vmem:[%s7191_s30 + $0x100] sm:$0xff] }
  0x6c   : > { %1834 = vmatmul.f32.vlgmr.msra.gmra.mxu2 %v906_v59  ;;  %1794 = vmatmul.f32.vlgmr.msra.gmra.mxu0 %v904_v60  ;;  %v593_v54 = vld [vmem:[%s7191_s30 + $0x900] sm:$0x3]  ;;  %v596_v55 = vld [vmem:[%s7191_s30 + $0x918] sm:$0x3]  ;;  %v594_v56 = vld [vmem:[%s7191_s30 + $0x908] sm:$0x3] }
  0x6d   : > { %1854 = vmatmul.f32.vlgmr.msra.gmra.mxu3 %v907_v61  ;;  %1814 = vmatmul.f32.vlgmr.msra.gmra.mxu1 %v905_v62  ;;  %v339_v57 = vld [vmem:[%s7191_s30 + $0x110] sm:$0xff]  ;;  %v340_v59 = vld [vmem:[%s7191_s30 + $0x118] sm:$0xff]  ;;  %v338_v60 = vld [vmem:[%s7191_s30 + $0x108] sm:$0xff] }
  0x6e   : > { %1913 = vmatpush.xpose.msrb.mxu2 %v327_v13  ;;  %1873 = vmatpush.xpose.msrb.mxu0 %v325_v14  ;;  %v599_v61 = vld [vmem:[%s7191_s30 + $0x930] sm:$0x3]  ;;  %v597_v62 = vld [vmem:[%s7191_s30 + $0x920] sm:$0x3]  ;;  %v600_v63 = vld [vmem:[%s7191_s30 + $0x938] sm:$0x3] }
  0x6f   : > { %1933 = vmatpush.xpose.msrb.mxu3 %v328_v15  ;;  %1893 = vmatpush.xpose.msrb.mxu1 %v326_v19  ;;  %v7285_v40 = vld.sshfl [vmem:[#allocation1 + $0x10] sm:$0xff pattern:$0x73625140]  ;;  %v7287_v41 = vld.sshfl [vmem:[#allocation1] sm:$0xff pattern:$0x73625140] }
  0x70   : > { %v7289_v42 = vld.sshfl [vmem:[#allocation1 + $0x18] sm:$0xff pattern:$0x73625140]  ;;  %v7291_v43 = vld.sshfl [vmem:[#allocation1 + $0x8] sm:$0xff pattern:$0x73625140] }
  0x71   : > { %932 = vst [vmem:[#allocation1] ss:$4 sm:$0xff] %v251_v39  ;;  %v598_v0 = vld [vmem:[%s7191_s30 + $0x928] sm:$0x3]  ;;  %v253_v1 = vld [vmem:[%s7185_s5 + $0x60] sm:$0xff]  ;;  %v343_v6 = vld [vmem:[%s7191_s30 + $0x130] sm:$0xff] }
  0x72   : > { %1992 = vmatpush.xpose.msra.mxu2 %v587_v22  ;;  %1952 = vmatpush.xpose.msra.mxu0 %v585_v23  ;;  %v7294_v45 = vld.sshfl [vmem:[#allocation1 + $0x30] sm:$0xff pattern:$0x73625140]  ;;  %v7296_v46 = vld.sshfl [vmem:[#allocation1 + $0x20] sm:$0xff pattern:$0x73625140] }
  0x73   : > { %2012 = vmatpush.xpose.msra.mxu3 %v588_v24  ;;  %1972 = vmatpush.xpose.msra.mxu1 %v586_v25  ;;  %v7298_v47 = vld.sshfl [vmem:[#allocation1 + $0x38] sm:$0xff pattern:$0x73625140]  ;;  %v7301_v49 = vld.sshfl [vmem:[#allocation1 + $0x28] sm:$0xff pattern:$0x73625140] }
  0x74   : > { %1914 = vmatmul.f32.vlgmr.msrb.gmra.mxu2 %v910_v8  ;;  %1874 = vmatmul.f32.vlgmr.msrb.gmra.mxu0 %v908_v9  ;;  %933 = vst [vmem:[#allocation1 + $0x20] ss:$4 sm:$0xff] %v252_v50  ;;  %v254_v12 = vld [vmem:[%s7185_s5 + $0x68] sm:$0xff]  ;;  %v344_v13 = vld [vmem:[%s7191_s30 + $0x138] sm:$0xff]  ;;  %v603_v15 = vld [vmem:[%s7191_s30 + $0x950] sm:$0x3] }
  0x75   : > { %1934 = vmatmul.f32.vlgmr.msrb.gmra.mxu3 %v911_v10  ;;  %1894 = vmatmul.f32.vlgmr.msrb.gmra.mxu1 %v909_v11  ;;  %v341_v10 = vld [vmem:[%s7191_s30 + $0x120] sm:$0xff]  ;;  %v342_v14 = vld [vmem:[%s7191_s30 + $0x128] sm:$0xff]  ;;  %v347_v19 = vld [vmem:[%s7191_s30 + $0x150] sm:$0xff] }
  0x76   : > { %1993 = vmatpush.xpose.msra.mxu2 %v331_v31  ;;  %1953 = vmatpush.xpose.msra.mxu0 %v329_v32  ;;  %v348_v21 = vld [vmem:[%s7191_s30 + $0x158] sm:$0xff]  ;;  %v346_v22 = vld [vmem:[%s7191_s30 + $0x148] sm:$0xff]  ;;  %v607_v23 = vld [vmem:[%s7191_s30 + $0x970] sm:$0x3] }
  0x77   : > { %2013 = vmatpush.xpose.msra.mxu3 %v332_v33  ;;  %1973 = vmatpush.xpose.msra.mxu1 %v330_v34  ;;  %v605_v24 = vld [vmem:[%s7191_s30 + $0x960] sm:$0x3]  ;;  %v608_v25 = vld [vmem:[%s7191_s30 + $0x978] sm:$0x3]  ;;  %v351_v32 = vld [vmem:[%s7191_s30 + $0x170] sm:$0xff] }
  0x78   : > { %v7324_v2 = vld.sshfl [vmem:[#allocation1 + $0x10] sm:$0xff pattern:$0x73625140]  ;;  %v7326_v3 = vld.sshfl [vmem:[#allocation1] sm:$0xff pattern:$0x73625140] }
  0x79   : > { %v7328_v4 = vld.sshfl [vmem:[#allocation1 + $0x18] sm:$0xff pattern:$0x73625140]  ;;  %v7330_v5 = vld.sshfl [vmem:[#allocation1 + $0x8] sm:$0xff pattern:$0x73625140] }
  0x7a   : > { %2072 = vmatpush.xpose.msrb.mxu2 %v591_v35  ;;  %2032 = vmatpush.xpose.msrb.mxu0 %v589_v36  ;;  %942 = vst [vmem:[#allocation1] ss:$4 sm:$0xff] %v253_v1  ;;  %v349_v36 = vld [vmem:[%s7191_s30 + $0x160] sm:$0xff]  ;;  %v352_v39 = vld [vmem:[%s7191_s30 + $0x178] sm:$0xff] }
  0x7b   : > { %2092 = vmatpush.xpose.msrb.mxu3 %v592_v37  ;;  %2052 = vmatpush.xpose.msrb.mxu1 %v590_v38  ;;  %v7333_v7 = vld.sshfl [vmem:[#allocation1 + $0x30] sm:$0xff pattern:$0x73625140]  ;;  %v7335_v8 = vld.sshfl [vmem:[#allocation1 + $0x20] sm:$0xff pattern:$0x73625140] }
  0x7c   : > { %1994 = vmatmul.f32.vlgmr.msra.gmra.mxu2 %v916_v16  ;;  %1954 = vmatmul.f32.vlgmr.msra.gmra.mxu0 %v914_v17  ;;  %v7337_v9 = vld.sshfl [vmem:[#allocation1 + $0x38] sm:$0xff pattern:$0x73625140]  ;;  %v7340_v11 = vld.sshfl [vmem:[#allocation1 + $0x28] sm:$0xff pattern:$0x73625140] }
  0x7d   : > { %2014 = vmatmul.f32.vlgmr.msra.gmra.mxu3 %v7259_v18  ;;  %1974 = vmatmul.f32.vlgmr.msra.gmra.mxu1 %v915_v20  ;;  %943 = vst [vmem:[#allocation1 + $0x20] ss:$4 sm:$0xff] %v254_v12  ;;  %v601_v16 = vld [vmem:[%s7191_s30 + $0x940] sm:$0x3]  ;;  %v604_v17 = vld [vmem:[%s7191_s30 + $0x958] sm:$0x3] }
  0x7e   : > { %2073 = vmatpush.xpose.msrb.mxu2 %v335_v44  ;;  %2033 = vmatpush.xpose.msrb.mxu0 %v333_v48  ;;  %v602_v18 = vld [vmem:[%s7191_s30 + $0x948] sm:$0x3]  ;;  %v345_v20 = vld [vmem:[%s7191_s30 + $0x140] sm:$0xff]  ;;  %v256_v38 = vld [vmem:[%s7185_s5 + $0x78] sm:$0xff] }
  0x7f   : > { %2093 = vmatpush.xpose.msrb.mxu3 %v336_v51  ;;  %2053 = vmatpush.xpose.msrb.mxu1 %v334_v52  ;;  %v610_v44 = vld [vmem:[%s7191_s30 + $0x988] sm:$0x3]  ;;  %v613_v50 = vld [vmem:[%s7191_s30 + $0x9a0] sm:$0x3]  ;;  %v616_v51 = vld [vmem:[%s7191_s30 + $0x9b8] sm:$0x3] }
  0x80   : > { %v354_v48 = vld [vmem:[%s7191_s30 + $0x188] sm:$0xff]  ;;  %v360_v1 = vld [vmem:[%s7191_s30 + $0x1b8] sm:$0xff] }
  0x81   : > { %v7370_v30 = vld.sshfl [vmem:[#allocation1 + $0x18] sm:$0xff pattern:$0x73625140]  ;;  %v7372_v31 = vld.sshfl [vmem:[#allocation1 + $0x8] sm:$0xff pattern:$0x73625140] }
  0x82   : > { %2152 = vmatpush.xpose.msra.mxu2 %v595_v53  ;;  %2112 = vmatpush.xpose.msra.mxu0 %v593_v54  ;;  %v614_v52 = vld [vmem:[%s7191_s30 + $0x9a8] sm:$0x3]  ;;  %v257_v53 = vld [vmem:[%s7185_s5 + $0x80] sm:$0xff] }
  0x83   : > { %2172 = vmatpush.xpose.msra.mxu3 %v596_v55  ;;  %2132 = vmatpush.xpose.msra.mxu1 %v594_v56 }
  0x84   : > { %2074 = vmatmul.f32.vlgmr.msrb.gmra.mxu2 %v7267_v26  ;;  %2034 = vmatmul.f32.vlgmr.msrb.gmra.mxu0 %v7269_v27  ;;  %v606_v26 = vld [vmem:[%s7191_s30 + $0x968] sm:$0x3]  ;;  %v255_v27 = vld [vmem:[%s7185_s5 + $0x70] sm:$0xff]  ;;  %v7382_v37 = vld.sshfl [vmem:[#allocation1 + $0x28] sm:$0xff pattern:$0x73625140] }
  0x85   : > { %2094 = vmatmul.f32.vlgmr.msrb.gmra.mxu3 %v7271_v28  ;;  %2054 = vmatmul.f32.vlgmr.msrb.gmra.mxu1 %v7273_v29  ;;  %v7366_v28 = vld.sshfl [vmem:[#allocation1 + $0x10] sm:$0xff pattern:$0x73625140]  ;;  %v7368_v29 = vld.sshfl [vmem:[#allocation1] sm:$0xff pattern:$0x73625140] }
  0x86   : > { %2153 = vmatpush.xpose.msra.mxu2 %v339_v57  ;;  %2113 = vmatpush.xpose.msra.mxu0 %v337_v58  ;;  %952 = vst [vmem:[#allocation1] ss:$4 sm:$0xff] %v255_v27  ;;  %v7375_v33 = vld.sshfl [vmem:[#allocation1 + $0x30] sm:$0xff pattern:$0x73625140]  ;;  %v359_v58 = vld [vmem:[%s7191_s30 + $0x1b0] sm:$0xff] }
  0x87   : > { %2173 = vmatpush.xpose.msra.mxu3 %v340_v59  ;;  %2133 = vmatpush.xpose.msra.mxu1 %v338_v60  ;;  %v7377_v34 = vld.sshfl [vmem:[#allocation1 + $0x20] sm:$0xff pattern:$0x73625140]  ;;  %v7379_v35 = vld.sshfl [vmem:[#allocation1 + $0x38] sm:$0xff pattern:$0x73625140] }
  0x88   : > { %953 = vst [vmem:[#allocation1 + $0x20] ss:$4 sm:$0xff] %v256_v38  ;;  %v368_v27 = vld [vmem:[%s7191_s30 + $0x1f8] sm:$0xff] }
  0x8a   : > { %2232 = vmatpush.xpose.msrb.mxu2 %v599_v61  ;;  %2192 = vmatpush.xpose.msrb.mxu0 %v597_v62  ;;  %v357_v62 = vld [vmem:[%s7191_s30 + $0x1a0] sm:$0xff] }
  0x8b   : > { %2252 = vmatpush.xpose.msrb.mxu3 %v600_v63  ;;  %2212 = vmatpush.xpose.msrb.mxu1 %v598_v0  ;;  %v258_v0 = vld [vmem:[%s7185_s5 + $0x88] sm:$0xff] }
  0x8c   : > { %2154 = vmatmul.f32.vlgmr.msra.gmra.mxu2 %v7285_v40  ;;  %2114 = vmatmul.f32.vlgmr.msra.gmra.mxu0 %v7287_v41  ;;  %v350_v40 = vld [vmem:[%s7191_s30 + $0x168] sm:$0xff]  ;;  %v611_v41 = vld [vmem:[%s7191_s30 + $0x990] sm:$0x3] }
  0x8d   : > { %2174 = vmatmul.f32.vlgmr.msra.gmra.mxu3 %v7289_v42  ;;  %2134 = vmatmul.f32.vlgmr.msra.gmra.mxu1 %v7291_v43  ;;  %v609_v42 = vld [vmem:[%s7191_s30 + $0x980] sm:$0x3]  ;;  %v612_v43 = vld [vmem:[%s7191_s30 + $0x998] sm:$0x3] }
  0x8e   : > { %2233 = vmatpush.xpose.msrb.mxu2 %v343_v6  ;;  %2193 = vmatpush.xpose.msrb.mxu0 %v341_v10  ;;  %v7408_v54 = vld.sshfl [vmem:[#allocation1 + $0x10] sm:$0xff pattern:$0x73625140]  ;;  %v7410_v55 = vld.sshfl [vmem:[#allocation1] sm:$0xff pattern:$0x73625140] }
  0x8f   : > { %2253 = vmatpush.xpose.msrb.mxu3 %v344_v13  ;;  %2213 = vmatpush.xpose.msrb.mxu1 %v342_v14  ;;  %v7412_v56 = vld.sshfl [vmem:[#allocation1 + $0x18] sm:$0xff pattern:$0x73625140]  ;;  %v7414_v57 = vld.sshfl [vmem:[#allocation1 + $0x8] sm:$0xff pattern:$0x73625140] }
  0x90   : > { %962 = vst [vmem:[#allocation1] ss:$4 sm:$0xff] %v257_v53  ;;  %v7417_v59 = vld.sshfl [vmem:[#allocation1 + $0x30] sm:$0xff pattern:$0x73625140]  ;;  %v259_v13 = vld [vmem:[%s7185_s5 + $0x90] sm:$0xff] }
  0x91   : > { %v7419_v60 = vld.sshfl [vmem:[#allocation1 + $0x20] sm:$0xff pattern:$0x73625140]  ;;  %v7421_v61 = vld.sshfl [vmem:[#allocation1 + $0x38] sm:$0xff pattern:$0x73625140] }
  0x92   : > { %2312 = vmatpush.xpose.msra.mxu2 %v603_v15  ;;  %2272 = vmatpush.xpose.msra.mxu0 %v601_v16  ;;  %v7424_v63 = vld.sshfl [vmem:[#allocation1 + $0x28] sm:$0xff pattern:$0x73625140]  ;;  %v618_v6 = vld [vmem:[%s7191_s30 + $0x9c8] sm:$0x3] }
  0x93   : > { %2332 = vmatpush.xpose.msra.mxu3 %v604_v17  ;;  %2292 = vmatpush.xpose.msra.mxu1 %v602_v18  ;;  %963 = vst [vmem:[#allocation1 + $0x20] ss:$4 sm:$0xff] %v258_v0  ;;  %v364_v14 = vld [vmem:[%s7191_s30 + $0x1d8] sm:$0xff]  ;;  %v362_v15 = vld [vmem:[%s7191_s30 + $0x1c8] sm:$0xff]  ;;  %v623_v16 = vld [vmem:[%s7191_s30 + $0x9f0] sm:$0x3] }
  0x94   : > { %2234 = vmatmul.f32.vlgmr.msrb.gmra.mxu2 %v7294_v45  ;;  %2194 = vmatmul.f32.vlgmr.msrb.gmra.mxu0 %v7296_v46  ;;  %v355_v45 = vld [vmem:[%s7191_s30 + $0x190] sm:$0xff]  ;;  %v353_v46 = vld [vmem:[%s7191_s30 + $0x180] sm:$0xff]  ;;  %v624_v18 = vld [vmem:[%s7191_s30 + $0x9f8] sm:$0x3] }
  0x95   : > { %2254 = vmatmul.f32.vlgmr.msrb.gmra.mxu3 %v7298_v47  ;;  %2214 = vmatmul.f32.vlgmr.msrb.gmra.mxu1 %v7301_v49  ;;  %v356_v47 = vld [vmem:[%s7191_s30 + $0x198] sm:$0xff]  ;;  %v615_v49 = vld [vmem:[%s7191_s30 + $0x9b0] sm:$0x3]  ;;  %v621_v17 = vld [vmem:[%s7191_s30 + $0x9e0] sm:$0x3] }
  0x96   : > { %2313 = vmatpush.xpose.msra.mxu2 %v347_v19  ;;  %2273 = vmatpush.xpose.msra.mxu0 %v345_v20  ;;  %v622_v19 = vld [vmem:[%s7191_s30 + $0x9e8] sm:$0x3]  ;;  %v367_v20 = vld [vmem:[%s7191_s30 + $0x1f0] sm:$0xff] }
  0x97   : > { %2333 = vmatpush.xpose.msra.mxu3 %v348_v21  ;;  %2293 = vmatpush.xpose.msra.mxu1 %v346_v22  ;;  %v7442_v10 = vld.sshfl [vmem:[#allocation1 + $0x18] sm:$0xff pattern:$0x73625140]  ;;  %v7445_v12 = vld.sshfl [vmem:[#allocation1 + $0x8] sm:$0xff pattern:$0x73625140] }
  0x9a   : > { %2392 = vmatpush.xpose.msrb.mxu2 %v607_v23  ;;  %2352 = vmatpush.xpose.msrb.mxu0 %v605_v24  ;;  %v7459_v21 = vld.sshfl [vmem:[#allocation1 + $0x30] sm:$0xff pattern:$0x73625140]  ;;  %v7461_v22 = vld.sshfl [vmem:[#allocation1 + $0x20] sm:$0xff pattern:$0x73625140] }
  0x9b   : > { %2412 = vmatpush.xpose.msrb.mxu3 %v608_v25  ;;  %2372 = vmatpush.xpose.msrb.mxu1 %v606_v26  ;;  %v7463_v23 = vld.sshfl [vmem:[#allocation1 + $0x38] sm:$0xff pattern:$0x73625140]  ;;  %v365_v24 = vld [vmem:[%s7191_s30 + $0x1e0] sm:$0xff]  ;;  %v260_v26 = vld [vmem:[%s7185_s5 + $0x98] sm:$0xff] }
  0x9c   : > { %2314 = vmatmul.f32.vlgmr.msra.gmra.mxu2 %v7324_v2  ;;  %2274 = vmatmul.f32.vlgmr.msra.gmra.mxu0 %v7326_v3  ;;  %v358_v2 = vld [vmem:[%s7191_s30 + $0x1a8] sm:$0xff]  ;;  %v619_v3 = vld [vmem:[%s7191_s30 + $0x9d0] sm:$0x3]  ;;  %v7466_v25 = vld.sshfl [vmem:[#allocation1 + $0x28] sm:$0xff pattern:$0x73625140] }
  0x9d   : > { %2334 = vmatmul.f32.vlgmr.msra.gmra.mxu3 %v7328_v4  ;;  %2294 = vmatmul.f32.vlgmr.msra.gmra.mxu1 %v7330_v5  ;;  %v617_v4 = vld [vmem:[%s7191_s30 + $0x9c0] sm:$0x3]  ;;  %v620_v5 = vld [vmem:[%s7191_s30 + $0x9d8] sm:$0x3]  ;;  %973 = vst [vmem:[#allocation1 + $0x20] ss:$4 sm:$0xff] %v260_v26 }
  0x9e   : > { %2393 = vmatpush.xpose.msrb.mxu2 %v351_v32  ;;  %2353 = vmatpush.xpose.msrb.mxu0 %v349_v36  ;;  %v626_v32 = vld [vmem:[%s7191_s30 + $0xa08] sm:$0x3] }
  0x9f   : > { %2413 = vmatpush.xpose.msrb.mxu3 %v352_v39  ;;  %2373 = vmatpush.xpose.msrb.mxu1 %v350_v40  ;;  %v261_v39 = vld [vmem:[%s7185_s5 + $0xa0] sm:$0xff]  ;;  %v372_v40 = vld [vmem:[%s7191_s30 + $0x218] sm:$0xff] }
  0xa2   : > { %2472 = vmatpush.xpose.msra.mxu2 %v611_v41  ;;  %2432 = vmatpush.xpose.msra.mxu0 %v609_v42  ;;  %v370_v41 = vld [vmem:[%s7191_s30 + $0x208] sm:$0xff]  ;;  %v631_v42 = vld [vmem:[%s7191_s30 + $0xa30] sm:$0x3] }
  0xa3   : > { %2492 = vmatpush.xpose.msra.mxu3 %v612_v43  ;;  %2452 = vmatpush.xpose.msra.mxu1 %v610_v44  ;;  %v629_v43 = vld [vmem:[%s7191_s30 + $0xa20] sm:$0x3]  ;;  %v632_v44 = vld [vmem:[%s7191_s30 + $0xa38] sm:$0x3] }
  0xa4   : > { %2394 = vmatmul.f32.vlgmr.msrb.gmra.mxu2 %v7333_v7  ;;  %2354 = vmatmul.f32.vlgmr.msrb.gmra.mxu0 %v7335_v8  ;;  %v363_v7 = vld [vmem:[%s7191_s30 + $0x1d0] sm:$0xff]  ;;  %v7438_v8 = vld.sshfl [vmem:[#allocation1 + $0x10] sm:$0xff pattern:$0x73625140] }
  0xa5   : > { %2414 = vmatmul.f32.vlgmr.msrb.gmra.mxu3 %v7337_v9  ;;  %2374 = vmatmul.f32.vlgmr.msrb.gmra.mxu1 %v7340_v11  ;;  %v7440_v9 = vld.sshfl [vmem:[#allocation1] sm:$0xff pattern:$0x73625140]  ;;  %v361_v11 = vld [vmem:[%s7191_s30 + $0x1c0] sm:$0xff] }
  0xa6   : > { %2473 = vmatpush.xpose.msra.mxu2 %v355_v45  ;;  %2433 = vmatpush.xpose.msra.mxu0 %v353_v46  ;;  %972 = vst [vmem:[#allocation1] ss:$4 sm:$0xff] %v259_v13  ;;  %v630_v45 = vld [vmem:[%s7191_s30 + $0xa28] sm:$0x3] }
  0xa7   : > { %2493 = vmatpush.xpose.msra.mxu3 %v356_v47  ;;  %2453 = vmatpush.xpose.msra.mxu1 %v354_v48  ;;  %v375_v47 = vld [vmem:[%s7191_s30 + $0x230] sm:$0xff]  ;;  %v7501_v48 = vld.sshfl [vmem:[#allocation1 + $0x30] sm:$0xff pattern:$0x73625140] }
  0xa8   : > { %v7508_v53 = vld.sshfl [vmem:[#allocation1 + $0x28] sm:$0xff pattern:$0x73625140]  ;;  %v378_v13 = vld [vmem:[%s7191_s30 + $0x248] sm:$0xff] }
  0xaa   : > { %2552 = vmatpush.xpose.msrb.mxu2 %v615_v49  ;;  %2512 = vmatpush.xpose.msrb.mxu0 %v613_v50  ;;  %v7503_v50 = vld.sshfl [vmem:[#allocation1 + $0x20] sm:$0xff pattern:$0x73625140] }
  0xab   : > { %2572 = vmatpush.xpose.msrb.mxu3 %v616_v51  ;;  %2532 = vmatpush.xpose.msrb.mxu1 %v614_v52  ;;  %v7505_v51 = vld.sshfl [vmem:[#allocation1 + $0x38] sm:$0xff pattern:$0x73625140]  ;;  %v373_v52 = vld [vmem:[%s7191_s30 + $0x220] sm:$0xff] }
  0xac   : > { %2474 = vmatmul.f32.vlgmr.msra.gmra.mxu2 %v7366_v28  ;;  %2434 = vmatmul.f32.vlgmr.msra.gmra.mxu0 %v7368_v29  ;;  %v366_v28 = vld [vmem:[%s7191_s30 + $0x1e8] sm:$0xff]  ;;  %v627_v29 = vld [vmem:[%s7191_s30 + $0xa10] sm:$0x3] }
  0xad   : > { %2494 = vmatmul.f32.vlgmr.msra.gmra.mxu3 %v7370_v30  ;;  %2454 = vmatmul.f32.vlgmr.msra.gmra.mxu1 %v7372_v31  ;;  %v625_v30 = vld [vmem:[%s7191_s30 + $0xa00] sm:$0x3]  ;;  %v628_v31 = vld [vmem:[%s7191_s30 + $0xa18] sm:$0x3] }
  0xae   : > { %2553 = vmatpush.xpose.msrb.mxu2 %v359_v58  ;;  %2513 = vmatpush.xpose.msrb.mxu0 %v357_v62  ;;  %v7484_v36 = vld.sshfl [vmem:[#allocation1 + $0x18] sm:$0xff pattern:$0x73625140]  ;;  %v7487_v38 = vld.sshfl [vmem:[#allocation1 + $0x8] sm:$0xff pattern:$0x73625140] }
  0xaf   : > { %2573 = vmatpush.xpose.msrb.mxu3 %v360_v1  ;;  %2533 = vmatpush.xpose.msrb.mxu1 %v358_v2  ;;  %v633_v58 = vld [vmem:[%s7191_s30 + $0xa40] sm:$0x3]  ;;  %v379_v2 = vld [vmem:[%s7191_s30 + $0x250] sm:$0xff] }
  0xb2   : > { %2632 = vmatpush.xpose.msra.mxu2 %v619_v3  ;;  %2592 = vmatpush.xpose.msra.mxu0 %v617_v4 }
  0xb3   : > { %2652 = vmatpush.xpose.msra.mxu3 %v620_v5  ;;  %2612 = vmatpush.xpose.msra.mxu1 %v618_v6 }
  0xb4   : > { %2554 = vmatmul.f32.vlgmr.msrb.gmra.mxu2 %v7375_v33  ;;  %2514 = vmatmul.f32.vlgmr.msrb.gmra.mxu0 %v7377_v34  ;;  %v371_v33 = vld [vmem:[%s7191_s30 + $0x210] sm:$0xff]  ;;  %v7480_v34 = vld.sshfl [vmem:[#allocation1 + $0x10] sm:$0xff pattern:$0x73625140] }
  0xb5   : > { %2574 = vmatmul.f32.vlgmr.msrb.gmra.mxu3 %v7379_v35  ;;  %2534 = vmatmul.f32.vlgmr.msrb.gmra.mxu1 %v7382_v37  ;;  %v7482_v35 = vld.sshfl [vmem:[#allocation1] sm:$0xff pattern:$0x73625140]  ;;  %v369_v37 = vld [vmem:[%s7191_s30 + $0x200] sm:$0xff] }
  0xb6   : > { %2633 = vmatpush.xpose.msra.mxu2 %v363_v7  ;;  %2593 = vmatpush.xpose.msra.mxu0 %v361_v11  ;;  %982 = vst [vmem:[#allocation1] ss:$4 sm:$0xff] %v261_v39  ;;  %v643_v39 = vld [vmem:[%s7191_s30 + $0xa90] sm:$0x3] }
  0xb7   : > { %2653 = vmatpush.xpose.msra.mxu3 %v364_v14  ;;  %2613 = vmatpush.xpose.msra.mxu1 %v362_v15  ;;  %v639_v14 = vld [vmem:[%s7191_s30 + $0xa70] sm:$0x3]  ;;  %v637_v15 = vld [vmem:[%s7191_s30 + $0xa60] sm:$0x3] }
  0xba   : > { %2712 = vmatpush.xpose.msrb.mxu2 %v623_v16  ;;  %2672 = vmatpush.xpose.msrb.mxu0 %v621_v17  ;;  %v640_v17 = vld [vmem:[%s7191_s30 + $0xa78] sm:$0x3] }
  0xbb   : > { %2732 = vmatpush.xpose.msrb.mxu3 %v624_v18  ;;  %2692 = vmatpush.xpose.msrb.mxu1 %v622_v19  ;;  %v638_v18 = vld [vmem:[%s7191_s30 + $0xa68] sm:$0x3] }
  0xbc   : > { %2634 = vmatmul.f32.vlgmr.msra.gmra.mxu2 %v7408_v54  ;;  %2594 = vmatmul.f32.vlgmr.msra.gmra.mxu0 %v7410_v55  ;;  %v262_v54 = vld [vmem:[%s7185_s5 + $0xa8] sm:$0xff]  ;;  %v376_v55 = vld [vmem:[%s7191_s30 + $0x238] sm:$0xff] }
  0xbd   : > { %2654 = vmatmul.f32.vlgmr.msra.gmra.mxu3 %v7412_v56  ;;  %2614 = vmatmul.f32.vlgmr.msra.gmra.mxu1 %v7414_v57  ;;  %v374_v56 = vld [vmem:[%s7191_s30 + $0x228] sm:$0xff]  ;;  %983 = vst [vmem:[#allocation1 + $0x20] ss:$4 sm:$0xff] %v262_v54  ;;  %v635_v57 = vld [vmem:[%s7191_s30 + $0xa50] sm:$0x3]  ;;  %v385_v54 = vld [vmem:[%s7191_s30 + $0x280] sm:$0xff] }
  0xbe   : > { %2713 = vmatpush.xpose.msrb.mxu2 %v367_v20  ;;  %2673 = vmatpush.xpose.msrb.mxu0 %v365_v24  ;;  %v7522_v3 = vld.sshfl [vmem:[#allocation1 + $0x10] sm:$0xff pattern:$0x73625140]  ;;  %v7524_v6 = vld.sshfl [vmem:[#allocation1] sm:$0xff pattern:$0x73625140] }
  0xbf   : > { %2733 = vmatpush.xpose.msrb.mxu3 %v368_v27  ;;  %2693 = vmatpush.xpose.msrb.mxu1 %v366_v28  ;;  %v7526_v7 = vld.sshfl [vmem:[#allocation1 + $0x18] sm:$0xff pattern:$0x73625140] }
  0xc2   : > { %2792 = vmatpush.xpose.msra.mxu2 %v627_v29  ;;  %2752 = vmatpush.xpose.msra.mxu0 %v625_v30  ;;  %v381_v29 = vld [vmem:[%s7191_s30 + $0x260] sm:$0xff] }
  0xc3   : > { %2812 = vmatpush.xpose.msra.mxu3 %v628_v31  ;;  %2772 = vmatpush.xpose.msra.mxu1 %v626_v32  ;;  %v264_v31 = vld [vmem:[%s7185_s5 + $0xb8] sm:$0xff] }
  0xc4   : > { %2714 = vmatmul.f32.vlgmr.msrb.gmra.mxu2 %v7417_v59  ;;  %2674 = vmatmul.f32.vlgmr.msrb.gmra.mxu0 %v7419_v60  ;;  %v636_v60 = vld [vmem:[%s7191_s30 + $0xa58] sm:$0x3]  ;;  %v7543_v24 = vld.sshfl [vmem:[#allocation1 + $0x30] sm:$0xff pattern:$0x73625140] }
  0xc5   : > { %2734 = vmatmul.f32.vlgmr.msrb.gmra.mxu3 %v7421_v61  ;;  %2694 = vmatmul.f32.vlgmr.msrb.gmra.mxu1 %v7424_v63  ;;  %v634_v61 = vld [vmem:[%s7191_s30 + $0xa48] sm:$0x3]  ;;  %v7545_v27 = vld.sshfl [vmem:[#allocation1 + $0x20] sm:$0xff pattern:$0x73625140] }
  0xc6   : > { %2793 = vmatpush.xpose.msra.mxu2 %v371_v33  ;;  %2753 = vmatpush.xpose.msra.mxu0 %v369_v37  ;;  %v7547_v28 = vld.sshfl [vmem:[#allocation1 + $0x38] sm:$0xff pattern:$0x73625140]  ;;  %v7550_v30 = vld.sshfl [vmem:[#allocation1 + $0x28] sm:$0xff pattern:$0x73625140] }
  0xc7   : > { %2813 = vmatpush.xpose.msra.mxu3 %v372_v40  ;;  %2773 = vmatpush.xpose.msra.mxu1 %v370_v41  ;;  %v384_v33 = vld [vmem:[%s7191_s30 + $0x278] sm:$0xff]  ;;  %v382_v37 = vld [vmem:[%s7191_s30 + $0x268] sm:$0xff]  ;;  %993 = vst [vmem:[#allocation1 + $0x20] ss:$4 sm:$0xff] %v264_v31  ;;  %v641_v40 = vld [vmem:[%s7191_s30 + $0xa80] sm:$0x3] }
  0xc9   : > { %v1475_v46 = vpop.f32.mrf.mxu0 }
  0xca   : > { %2872 = vmatpush.xpose.msrb.mxu2 %v631_v42  ;;  %2832 = vmatpush.xpose.msrb.mxu0 %v629_v43  ;;  %v1495_v49 = vpop.f32.mrf.mxu1  ;;  %v644_v42 = vld [vmem:[%s7191_s30 + $0xa98] sm:$0x3]  ;;  %v642_v43 = vld [vmem:[%s7191_s30 + $0xa88] sm:$0x3] }
  0xcb   : > { %2892 = vmatpush.xpose.msrb.mxu3 %v632_v44  ;;  %2852 = vmatpush.xpose.msrb.mxu1 %v630_v45  ;;  %v1496_v59 = vadd.f32 %v1495_v49, %v1475_v46 }
  0xcc   : > { %2794 = vmatmul.f32.vlgmr.msra.gmra.mxu2 %v7438_v8  ;;  %2754 = vmatmul.f32.vlgmr.msra.gmra.mxu0 %v7440_v9  ;;  %v377_v8 = vld [vmem:[%s7191_s30 + $0x240] sm:$0xff] }
  0xcd   : > { %2814 = vmatmul.f32.vlgmr.msra.gmra.mxu3 %v7442_v10  ;;  %2774 = vmatmul.f32.vlgmr.msra.gmra.mxu1 %v7445_v12  ;;  %v7529_v9 = vld.sshfl [vmem:[#allocation1 + $0x8] sm:$0xff pattern:$0x73625140]  ;;  %v263_v10 = vld [vmem:[%s7185_s5 + $0xb0] sm:$0xff] }
  0xce   : > { %2873 = vmatpush.xpose.msrb.mxu2 %v375_v47  ;;  %2833 = vmatpush.xpose.msrb.mxu0 %v373_v52  ;;  %v380_v12 = vld [vmem:[%s7191_s30 + $0x258] sm:$0xff]  ;;  %992 = vst [vmem:[#allocation1] ss:$4 sm:$0xff] %v263_v10  ;;  %v7589_v10 = vld.sshfl [vmem:[#allocation1 + $0x38] sm:$0xff pattern:$0x73625140] }
  0xcf   : > { %v1515_v62 = vpop.f32.mrf.mxu2  ;;  %2893 = vmatpush.xpose.msrb.mxu3 %v376_v55  ;;  %2853 = vmatpush.xpose.msrb.mxu1 %v374_v56  ;;  %v265_v56 = vld [vmem:[%s7185_s5 + $0xc0] sm:$0xff] }
  0xd0   : > { %v1516_v63 = vadd.f32 %v1515_v62, %v1496_v59  ;;  %v1535_v0 = vpop.f32.mrf.mxu3  ;;  %v386_v59 = vld [vmem:[%s7191_s30 + $0x288] sm:$0xff] }
  0xd1   : > { %v1555_v1 = vpop.f32.mrf.mxu0 }
  0xd2   : > { %2952 = vmatpush.xpose.msra.mxu2 %v635_v57  ;;  %2912 = vmatpush.xpose.msra.mxu0 %v633_v58  ;;  %v1536_v4 = vadd.f32 %v1535_v0, %v1516_v63  ;;  %v1575_v5 = vpop.f32.mrf.mxu1  ;;  %v388_v58 = vld [vmem:[%s7191_s30 + $0x298] sm:$0xff]  ;;  %v646_v0 = vld [vmem:[%s7191_s30 + $0xaa8] sm:$0x3] }
  0xd3   : > { %2972 = vmatpush.xpose.msra.mxu3 %v636_v60  ;;  %2932 = vmatpush.xpose.msra.mxu1 %v634_v61  ;;  %v647_v60 = vld [vmem:[%s7191_s30 + $0xab0] sm:$0x3]  ;;  %v645_v61 = vld [vmem:[%s7191_s30 + $0xaa0] sm:$0x3]  ;;  %v648_v63 = vld [vmem:[%s7191_s30 + $0xab8] sm:$0x3] }
  0xd4   : > { %v1556_v11 = vadd.f32 %v1555_v1, %v1536_v4  ;;  %2874 = vmatmul.f32.vlgmr.msrb.gmra.mxu2 %v7459_v21  ;;  %2834 = vmatmul.f32.vlgmr.msrb.gmra.mxu0 %v7461_v22 }
  0xd5   : > { %2894 = vmatmul.f32.vlgmr.msrb.gmra.mxu3 %v7463_v23  ;;  %2854 = vmatmul.f32.vlgmr.msrb.gmra.mxu1 %v7466_v25  ;;  %v383_v23 = vld [vmem:[%s7191_s30 + $0x270] sm:$0xff]  ;;  %v7564_v45 = vld.sshfl [vmem:[#allocation1 + $0x10] sm:$0xff pattern:$0x73625140] }
  0xd6   : > { %v1576_v16 = vadd.f32 %v1575_v5, %v1556_v11  ;;  %2953 = vmatpush.xpose.msra.mxu2 %v379_v2  ;;  %2913 = vmatpush.xpose.msra.mxu0 %v377_v8  ;;  %v7566_v49 = vld.sshfl [vmem:[#allocation1] sm:$0xff pattern:$0x73625140]  ;;  %v7568_v52 = vld.sshfl [vmem:[#allocation1 + $0x18] sm:$0xff pattern:$0x73625140] }
  0xd7   : > { %v1595_v19 = vpop.f32.mrf.mxu2  ;;  %2973 = vmatpush.xpose.msra.mxu3 %v380_v12  ;;  %2933 = vmatpush.xpose.msra.mxu1 %v378_v13  ;;  %v7571_v55 = vld.sshfl [vmem:[#allocation1 + $0x8] sm:$0xff pattern:$0x73625140]  ;;  %v7585_v2 = vld.sshfl [vmem:[#allocation1 + $0x30] sm:$0xff pattern:$0x73625140] }
  0xd8   : > { %v1596_v20 = vadd.f32 %v1595_v19, %v1576_v16  ;;  %v1615_v21 = vpop.f32.mrf.mxu3  ;;  %1002 = vst [vmem:[#allocation1] ss:$4 sm:$0xff] %v265_v56  ;;  %v7587_v8 = vld.sshfl [vmem:[#allocation1 + $0x20] sm:$0xff pattern:$0x73625140]  ;;  %v389_v11 = vld [vmem:[%s7191_s30 + $0x2a0] sm:$0xff] }
  0xd9   : > { %v1635_v22 = vpop.f32.mrf.mxu0  ;;  %v7592_v12 = vld.sshfl [vmem:[#allocation1 + $0x28] sm:$0xff pattern:$0x73625140]  ;;  %v266_v13 = vld [vmem:[%s7185_s5 + $0xc8] sm:$0xff] }
  0xda   : > { %3032 = vmatpush.xpose.msrb.mxu2 %v639_v14  ;;  %2992 = vmatpush.xpose.msrb.mxu0 %v637_v15  ;;  %v1616_v25 = vadd.f32 %v1615_v21, %v1596_v20  ;;  %v1655_v26 = vpop.f32.mrf.mxu1  ;;  %v392_v15 = vld [vmem:[%s7191_s30 + $0x2b8] sm:$0xff]  ;;  %v390_v16 = vld [vmem:[%s7191_s30 + $0x2a8] sm:$0xff]  ;;  %1003 = vst [vmem:[#allocation1 + $0x20] ss:$4 sm:$0xff] %v266_v13 }
  0xdb   : > { %3052 = vmatpush.xpose.msrb.mxu3 %v640_v17  ;;  %3012 = vmatpush.xpose.msrb.mxu1 %v638_v18  ;;  %v651_v17 = vld [vmem:[%s7191_s30 + $0xad0] sm:$0x3]  ;;  %v649_v18 = vld [vmem:[%s7191_s30 + $0xac0] sm:$0x3]  ;;  %v652_v20 = vld [vmem:[%s7191_s30 + $0xad8] sm:$0x3] }
  0xdc   : > { %v1636_v32 = vadd.f32 %v1635_v22, %v1616_v25  ;;  %2954 = vmatmul.f32.vlgmr.msra.gmra.mxu2 %v7480_v34  ;;  %2914 = vmatmul.f32.vlgmr.msra.gmra.mxu0 %v7482_v35  ;;  %v650_v21 = vld [vmem:[%s7191_s30 + $0xac8] sm:$0x3] }
  0xdd   : > { %2974 = vmatmul.f32.vlgmr.msra.gmra.mxu3 %v7484_v36  ;;  %2934 = vmatmul.f32.vlgmr.msra.gmra.mxu1 %v7487_v38  ;;  %v387_v38 = vld [vmem:[%s7191_s30 + $0x290] sm:$0xff] }
  0xde   : > { %v1656_v41 = vadd.f32 %v1655_v26, %v1636_v32  ;;  %3033 = vmatpush.xpose.msrb.mxu2 %v383_v23  ;;  %2993 = vmatpush.xpose.msrb.mxu0 %v381_v29  ;;  %v393_v32 = vld [vmem:[%s7191_s30 + $0x2c0] sm:$0xff] }
  0xdf   : > { %v1675_v44 = vpop.f32.mrf.mxu2  ;;  %3053 = vmatpush.xpose.msrb.mxu3 %v384_v33  ;;  %3013 = vmatpush.xpose.msrb.mxu1 %v382_v37  ;;  %v7606_v23 = vld.sshfl [vmem:[#allocation1 + $0x10] sm:$0xff pattern:$0x73625140]  ;;  %v7608_v29 = vld.sshfl [vmem:[#allocation1] sm:$0xff pattern:$0x73625140] }
  0xe0   : > { %v1676_v34 = vadd.f32 %v1675_v44, %v1656_v41  ;;  %v1695_v35 = vpop.f32.mrf.mxu3  ;;  %v7610_v31 = vld.sshfl [vmem:[#allocation1 + $0x18] sm:$0xff pattern:$0x73625140]  ;;  %v7613_v33 = vld.sshfl [vmem:[#allocation1 + $0x8] sm:$0xff pattern:$0x73625140] }
  0xe1   : > { %v1715_v36 = vpop.f32.mrf.mxu0  ;;  %v267_v37 = vld [vmem:[%s7185_s5 + $0xd0] sm:$0xff]  ;;  %v394_v41 = vld [vmem:[%s7191_s30 + $0x2c8] sm:$0xff] }
  0xe2   : > { %3112 = vmatpush.xpose.msra.mxu2 %v643_v39  ;;  %3072 = vmatpush.xpose.msra.mxu0 %v641_v40  ;;  %v1696_v46 = vadd.f32 %v1695_v35, %v1676_v34  ;;  %v1735_v47 = vpop.f32.mrf.mxu1  ;;  %v396_v40 = vld [vmem:[%s7191_s30 + $0x2d8] sm:$0xff]  ;;  %1012 = vst [vmem:[#allocation1] ss:$4 sm:$0xff] %v267_v37  ;;  %v654_v35 = vld [vmem:[%s7191_s30 + $0xae8] sm:$0x3] }
  0xe3   : > { %3132 = vmatpush.xpose.msra.mxu3 %v644_v42  ;;  %3092 = vmatpush.xpose.msra.mxu1 %v642_v43  ;;  %v655_v42 = vld [vmem:[%s7191_s30 + $0xaf0] sm:$0x3]  ;;  %v653_v43 = vld [vmem:[%s7191_s30 + $0xae0] sm:$0x3]  ;;  %v656_v34 = vld [vmem:[%s7191_s30 + $0xaf8] sm:$0x3] }
  0xe4   : > { %v1716_v57 = vadd.f32 %v1715_v36, %v1696_v46  ;;  %3034 = vmatmul.f32.vlgmr.msrb.gmra.mxu2 %v7501_v48  ;;  %2994 = vmatmul.f32.vlgmr.msrb.gmra.mxu0 %v7503_v50  ;;  %v7631_v56 = vld.sshfl [vmem:[#allocation1 + $0x38] sm:$0xff pattern:$0x73625140] }
  0xe5   : > { %3054 = vmatmul.f32.vlgmr.msrb.gmra.mxu3 %v7505_v51  ;;  %3014 = vmatmul.f32.vlgmr.msrb.gmra.mxu1 %v7508_v53  ;;  %v391_v53 = vld [vmem:[%s7191_s30 + $0x2b0] sm:$0xff] }
  0xe6   : > { %v1736_v62 = vadd.f32 %v1735_v47, %v1716_v57  ;;  %3113 = vmatpush.xpose.msra.mxu2 %v387_v38  ;;  %3073 = vmatpush.xpose.msra.mxu0 %v385_v54  ;;  %v7627_v38 = vld.sshfl [vmem:[#allocation1 + $0x30] sm:$0xff pattern:$0x73625140]  ;;  %v7629_v54 = vld.sshfl [vmem:[#allocation1 + $0x20] sm:$0xff pattern:$0x73625140] }
  0xe7   : > { %v1755_v1 = vpop.f32.mrf.mxu2  ;;  %3133 = vmatpush.xpose.msra.mxu3 %v388_v58  ;;  %3093 = vmatpush.xpose.msra.mxu1 %v386_v59  ;;  %v397_v57 = vld [vmem:[%s7191_s30 + $0x2e0] sm:$0xff]  ;;  %v268_v59 = vld [vmem:[%s7185_s5 + $0xd8] sm:$0xff] }
  0xe8   : > { %v1756_v48 = vadd.f32 %v1755_v1, %v1736_v62  ;;  %v1775_v50 = vpop.f32.mrf.mxu3  ;;  %v7634_v58 = vld.sshfl [vmem:[#allocation1 + $0x28] sm:$0xff pattern:$0x73625140]  ;;  %v398_v62 = vld [vmem:[%s7191_s30 + $0x2e8] sm:$0xff] }
  0xe9   : > { %v1795_v51 = vpop.f32.mrf.mxu0  ;;  %1013 = vst [vmem:[#allocation1 + $0x20] ss:$4 sm:$0xff] %v268_v59  ;;  %v7652_v13 = vld.sshfl [vmem:[#allocation1 + $0x18] sm:$0xff pattern:$0x73625140] }
  0xea   : > { %3192 = vmatpush.xpose.msrb.mxu2 %v647_v60  ;;  %3152 = vmatpush.xpose.msrb.mxu0 %v645_v61  ;;  %v1776_v4 = vadd.f32 %v1775_v50, %v1756_v48  ;;  %v1815_v5 = vpop.f32.mrf.mxu1  ;;  %v400_v61 = vld [vmem:[%s7191_s30 + $0x2f8] sm:$0xff]  ;;  %v658_v50 = vld [vmem:[%s7191_s30 + $0xb08] sm:$0x3] }
  0xeb   : > { %3212 = vmatpush.xpose.msrb.mxu3 %v648_v63  ;;  %3172 = vmatpush.xpose.msrb.mxu1 %v646_v0  ;;  %v659_v63 = vld [vmem:[%s7191_s30 + $0xb10] sm:$0x3]  ;;  %v657_v0 = vld [vmem:[%s7191_s30 + $0xb00] sm:$0x3]  ;;  %v660_v48 = vld [vmem:[%s7191_s30 + $0xb18] sm:$0x3] }
  0xec   : > { %v1796_v14 = vadd.f32 %v1795_v51, %v1776_v4  ;;  %3114 = vmatmul.f32.vlgmr.msra.gmra.mxu2 %v7522_v3  ;;  %3074 = vmatmul.f32.vlgmr.msra.gmra.mxu0 %v7524_v6 }
  0xed   : > { %3134 = vmatmul.f32.vlgmr.msra.gmra.mxu3 %v7526_v7  ;;  %3094 = vmatmul.f32.vlgmr.msra.gmra.mxu1 %v7529_v9  ;;  %v395_v9 = vld [vmem:[%s7191_s30 + $0x2d0] sm:$0xff] }
  0xee   : > { %v1816_v19 = vadd.f32 %v1815_v5, %v1796_v14  ;;  %3193 = vmatpush.xpose.msrb.mxu2 %v391_v53  ;;  %3153 = vmatpush.xpose.msrb.mxu0 %v389_v11  ;;  %v7648_v53 = vld.sshfl [vmem:[#allocation1 + $0x10] sm:$0xff pattern:$0x73625140]  ;;  %v7650_v11 = vld.sshfl [vmem:[#allocation1] sm:$0xff pattern:$0x73625140] }
  0xef   : > { %v1835_v22 = vpop.f32.mrf.mxu2  ;;  %3213 = vmatpush.xpose.msrb.mxu3 %v392_v15  ;;  %3173 = vmatpush.xpose.msrb.mxu1 %v390_v16  ;;  %v401_v14 = vld [vmem:[%s7191_s30 + $0x300] sm:$0xff] }
  0xf0   : > { %v1836_v3 = vadd.f32 %v1835_v22, %v1816_v19  ;;  %v1855_v6 = vpop.f32.mrf.mxu3  ;;  %v7655_v15 = vld.sshfl [vmem:[#allocation1 + $0x8] sm:$0xff pattern:$0x73625140]  ;;  %v402_v19 = vld [vmem:[%s7191_s30 + $0x308] sm:$0xff] }
  0xf1   : > { %v1875_v7 = vpop.f32.mrf.mxu0  ;;  %v269_v16 = vld [vmem:[%s7185_s5 + $0xe0] sm:$0xff]  ;;  %v7673_v37 = vld.sshfl [vmem:[#allocation1 + $0x38] sm:$0xff pattern:$0x73625140] }
  0xf2   : > { %3272 = vmatpush.xpose.msra.mxu2 %v651_v17  ;;  %3232 = vmatpush.xpose.msra.mxu0 %v649_v18  ;;  %v1856_v25 = vadd.f32 %v1855_v6, %v1836_v3  ;;  %v1895_v26 = vpop.f32.mrf.mxu1  ;;  %v404_v18 = vld [vmem:[%s7191_s30 + $0x318] sm:$0xff]  ;;  %1022 = vst [vmem:[#allocation1] ss:$4 sm:$0xff] %v269_v16  ;;  %v662_v6 = vld [vmem:[%s7191_s30 + $0xb28] sm:$0x3] }
  0xf3   : > { %3292 = vmatpush.xpose.msra.mxu3 %v652_v20  ;;  %3252 = vmatpush.xpose.msra.mxu1 %v650_v21  ;;  %v663_v20 = vld [vmem:[%s7191_s30 + $0xb30] sm:$0x3]  ;;  %v661_v21 = vld [vmem:[%s7191_s30 + $0xb20] sm:$0x3]  ;;  %v664_v3 = vld [vmem:[%s7191_s30 + $0xb38] sm:$0x3] }
  0xf4   : > { %v1876_v39 = vadd.f32 %v1875_v7, %v1856_v25  ;;  %3194 = vmatmul.f32.vlgmr.msrb.gmra.mxu2 %v7543_v24  ;;  %3154 = vmatmul.f32.vlgmr.msrb.gmra.mxu0 %v7545_v27 }
  0xf5   : > { %3214 = vmatmul.f32.vlgmr.msrb.gmra.mxu3 %v7547_v28  ;;  %3174 = vmatmul.f32.vlgmr.msrb.gmra.mxu1 %v7550_v30  ;;  %v399_v30 = vld [vmem:[%s7191_s30 + $0x2f0] sm:$0xff] }
  0xf6   : > { %v1896_v44 = vadd.f32 %v1895_v26, %v1876_v39  ;;  %3273 = vmatpush.xpose.msra.mxu2 %v395_v9  ;;  %3233 = vmatpush.xpose.msra.mxu0 %v393_v32  ;;  %v7669_v9 = vld.sshfl [vmem:[#allocation1 + $0x30] sm:$0xff pattern:$0x73625140]  ;;  %v7671_v32 = vld.sshfl [vmem:[#allocation1 + $0x20] sm:$0xff pattern:$0x73625140] }
  0xf7   : > { %v1915_v36 = vpop.f32.mrf.mxu2  ;;  %3293 = vmatpush.xpose.msra.mxu3 %v396_v40  ;;  %3253 = vmatpush.xpose.msra.mxu1 %v394_v41  ;;  %v405_v39 = vld [vmem:[%s7191_s30 + $0x320] sm:$0xff]  ;;  %v270_v41 = vld [vmem:[%s7185_s5 + $0xe8] sm:$0xff] }
  0xf8   : > { %v1916_v24 = vadd.f32 %v1915_v36, %v1896_v44  ;;  %v1935_v27 = vpop.f32.mrf.mxu3  ;;  %v7676_v40 = vld.sshfl [vmem:[#allocation1 + $0x28] sm:$0xff pattern:$0x73625140]  ;;  %v406_v44 = vld [vmem:[%s7191_s30 + $0x328] sm:$0xff] }
  0xf9   : > { %v1955_v28 = vpop.f32.mrf.mxu0  ;;  %1023 = vst [vmem:[#allocation1 + $0x20] ss:$4 sm:$0xff] %v270_v41  ;;  %v7694_v59 = vld.sshfl [vmem:[#allocation1 + $0x18] sm:$0xff pattern:$0x73625140] }
  0xfa   : > { %3352 = vmatpush.xpose.msrb.mxu2 %v655_v42  ;;  %3312 = vmatpush.xpose.msrb.mxu0 %v653_v43  ;;  %v1936_v46 = vadd.f32 %v1935_v27, %v1916_v24  ;;  %v1975_v47 = vpop.f32.mrf.mxu1  ;;  %v408_v43 = vld [vmem:[%s7191_s30 + $0x338] sm:$0xff]  ;;  %v666_v27 = vld [vmem:[%s7191_s30 + $0xb48] sm:$0x3] }
  0xfb   : > { %3372 = vmatpush.xpose.msrb.mxu3 %v656_v34  ;;  %3332 = vmatpush.xpose.msrb.mxu1 %v654_v35  ;;  %v667_v34 = vld [vmem:[%s7191_s30 + $0xb50] sm:$0x3]  ;;  %v665_v35 = vld [vmem:[%s7191_s30 + $0xb40] sm:$0x3]  ;;  %v668_v24 = vld [vmem:[%s7191_s30 + $0xb58] sm:$0x3] }
  0xfc   : > { %v1956_v60 = vadd.f32 %v1955_v28, %v1936_v46  ;;  %3274 = vmatmul.f32.vlgmr.msra.gmra.mxu2 %v7564_v45  ;;  %3234 = vmatmul.f32.vlgmr.msra.gmra.mxu0 %v7566_v49 }
  0xfd   : > { %3294 = vmatmul.f32.vlgmr.msra.gmra.mxu3 %v7568_v52  ;;  %3254 = vmatmul.f32.vlgmr.msra.gmra.mxu1 %v7571_v55  ;;  %v403_v55 = vld [vmem:[%s7191_s30 + $0x310] sm:$0xff] }
  0xfe   : > { %v1976_v1 = vadd.f32 %v1975_v47, %v1956_v60  ;;  %3353 = vmatpush.xpose.msrb.mxu2 %v399_v30  ;;  %3313 = vmatpush.xpose.msrb.mxu0 %v397_v57  ;;  %v7690_v30 = vld.sshfl [vmem:[#allocation1 + $0x10] sm:$0xff pattern:$0x73625140]  ;;  %v7692_v57 = vld.sshfl [vmem:[#allocation1] sm:$0xff pattern:$0x73625140] }
  0xff   : > { %v1995_v51 = vpop.f32.mrf.mxu2  ;;  %3373 = vmatpush.xpose.msrb.mxu3 %v400_v61  ;;  %3333 = vmatpush.xpose.msrb.mxu1 %v398_v62  ;;  %v409_v60 = vld [vmem:[%s7191_s30 + $0x340] sm:$0xff]  ;;  %v271_v62 = vld [vmem:[%s7185_s5 + $0xf0] sm:$0xff] }
 0x100   : > { %v1996_v45 = vadd.f32 %v1995_v51, %v1976_v1  ;;  %v2015_v49 = vpop.f32.mrf.mxu3  ;;  %v7697_v61 = vld.sshfl [vmem:[#allocation1 + $0x8] sm:$0xff pattern:$0x73625140]  ;;  %v410_v1 = vld [vmem:[%s7191_s30 + $0x348] sm:$0xff] }
 0x101   : > { %v2035_v52 = vpop.f32.mrf.mxu0  ;;  %1032 = vst [vmem:[#allocation1] ss:$4 sm:$0xff] %v271_v62  ;;  %v7715_v16 = vld.sshfl [vmem:[#allocation1 + $0x38] sm:$0xff pattern:$0x73625140] }
 0x102   : > { %3432 = vmatpush.xpose.msra.mxu2 %v659_v63  ;;  %3392 = vmatpush.xpose.msra.mxu0 %v657_v0  ;;  %v2016_v4 = vadd.f32 %v2015_v49, %v1996_v45  ;;  %v2055_v5 = vpop.f32.mrf.mxu1  ;;  %v412_v0 = vld [vmem:[%s7191_s30 + $0x358] sm:$0xff]  ;;  %v670_v49 = vld [vmem:[%s7191_s30 + $0xb68] sm:$0x3] }
 0x103   : > { %3452 = vmatpush.xpose.msra.mxu3 %v660_v48  ;;  %3412 = vmatpush.xpose.msra.mxu1 %v658_v50  ;;  %v671_v48 = vld [vmem:[%s7191_s30 + $0xb70] sm:$0x3]  ;;  %v669_v50 = vld [vmem:[%s7191_s30 + $0xb60] sm:$0x3]  ;;  %v672_v45 = vld [vmem:[%s7191_s30 + $0xb78] sm:$0x3] }
 0x104   : > { %v2036_v17 = vadd.f32 %v2035_v52, %v2016_v4  ;;  %3354 = vmatmul.f32.vlgmr.msrb.gmra.mxu2 %v7585_v2  ;;  %3314 = vmatmul.f32.vlgmr.msrb.gmra.mxu0 %v7587_v8 }
 0x105   : > { %3374 = vmatmul.f32.vlgmr.msrb.gmra.mxu3 %v7589_v10  ;;  %3334 = vmatmul.f32.vlgmr.msrb.gmra.mxu1 %v7592_v12  ;;  %v407_v12 = vld [vmem:[%s7191_s30 + $0x330] sm:$0xff] }
 0x106   : > { %v2056_v22 = vadd.f32 %v2055_v5, %v2036_v17  ;;  %3433 = vmatpush.xpose.msra.mxu2 %v403_v55  ;;  %3393 = vmatpush.xpose.msra.mxu0 %v401_v14  ;;  %v7711_v55 = vld.sshfl [vmem:[#allocation1 + $0x30] sm:$0xff pattern:$0x73625140]  ;;  %v7713_v14 = vld.sshfl [vmem:[#allocation1 + $0x20] sm:$0xff pattern:$0x73625140] }
 0x107   : > { %v2075_v7 = vpop.f32.mrf.mxu2  ;;  %3453 = vmatpush.xpose.msra.mxu3 %v404_v18  ;;  %3413 = vmatpush.xpose.msra.mxu1 %v402_v19  ;;  %v413_v17 = vld [vmem:[%s7191_s30 + $0x360] sm:$0xff]  ;;  %v272_v19 = vld [vmem:[%s7185_s5 + $0xf8] sm:$0xff] }
 0x108   : > { %v2076_v2 = vadd.f32 %v2075_v7, %v2056_v22  ;;  %v2095_v8 = vpop.f32.mrf.mxu3  ;;  %v7718_v18 = vld.sshfl [vmem:[#allocation1 + $0x28] sm:$0xff pattern:$0x73625140]  ;;  %v414_v22 = vld [vmem:[%s7191_s30 + $0x368] sm:$0xff] }
 0x109   : > { %v2115_v10 = vpop.f32.mrf.mxu0  ;;  %1033 = vst [vmem:[#allocation1 + $0x20] ss:$4 sm:$0xff] %v272_v19  ;;  %v7736_v41 = vld.sshfl [vmem:[#allocation1 + $0x18] sm:$0xff pattern:$0x73625140] }
 0x10a   : > { %3512 = vmatpush.xpose.msrb.mxu2 %v663_v20  ;;  %3472 = vmatpush.xpose.msrb.mxu0 %v661_v21  ;;  %v2096_v25 = vadd.f32 %v2095_v8, %v2076_v2  ;;  %v2135_v26 = vpop.f32.mrf.mxu1  ;;  %v416_v21 = vld [vmem:[%s7191_s30 + $0x378] sm:$0xff]  ;;  %v674_v8 = vld [vmem:[%s7191_s30 + $0xb88] sm:$0x3] }
 0x10b   : > { %3532 = vmatpush.xpose.msrb.mxu3 %v664_v3  ;;  %3492 = vmatpush.xpose.msrb.mxu1 %v662_v6  ;;  %v675_v3 = vld [vmem:[%s7191_s30 + $0xb90] sm:$0x3]  ;;  %v673_v6 = vld [vmem:[%s7191_s30 + $0xb80] sm:$0x3]  ;;  %v676_v2 = vld [vmem:[%s7191_s30 + $0xb98] sm:$0x3] }
 0x10c   : > { %v2116_v42 = vadd.f32 %v2115_v10, %v2096_v25  ;;  %3434 = vmatmul.f32.vlgmr.msra.gmra.mxu2 %v7606_v23  ;;  %3394 = vmatmul.f32.vlgmr.msra.gmra.mxu0 %v7608_v29 }
 0x10d   : > { %3454 = vmatmul.f32.vlgmr.msra.gmra.mxu3 %v7610_v31  ;;  %3414 = vmatmul.f32.vlgmr.msra.gmra.mxu1 %v7613_v33  ;;  %v411_v33 = vld [vmem:[%s7191_s30 + $0x350] sm:$0xff] }
 0x10e   : > { %v2136_v36 = vadd.f32 %v2135_v26, %v2116_v42  ;;  %3513 = vmatpush.xpose.msrb.mxu2 %v407_v12  ;;  %3473 = vmatpush.xpose.msrb.mxu0 %v405_v39  ;;  %v7732_v12 = vld.sshfl [vmem:[#allocation1 + $0x10] sm:$0xff pattern:$0x73625140]  ;;  %v7734_v39 = vld.sshfl [vmem:[#allocation1] sm:$0xff pattern:$0x73625140] }
 0x10f   : > { %v2155_v28 = vpop.f32.mrf.mxu2  ;;  %3533 = vmatpush.xpose.msrb.mxu3 %v408_v43  ;;  %3493 = vmatpush.xpose.msrb.mxu1 %v406_v44  ;;  %v417_v42 = vld [vmem:[%s7191_s30 + $0x380] sm:$0xff] }
 0x110   : > { %v2156_v23 = vadd.f32 %v2155_v28, %v2136_v36  ;;  %v2175_v29 = vpop.f32.mrf.mxu3  ;;  %v7739_v43 = vld.sshfl [vmem:[#allocation1 + $0x8] sm:$0xff pattern:$0x73625140]  ;;  %v418_v36 = vld [vmem:[%s7191_s30 + $0x388] sm:$0xff] }
 0x111   : > { %v2195_v31 = vpop.f32.mrf.mxu0  ;;  %v273_v44 = vld [vmem:[%s7185_s5 + $0x100] sm:$0xff]  ;;  %v7757_v62 = vld.sshfl [vmem:[#allocation1 + $0x38] sm:$0xff pattern:$0x73625140] }
 0x112   : > { %3592 = vmatpush.xpose.msra.mxu2 %v667_v34  ;;  %3552 = vmatpush.xpose.msra.mxu0 %v665_v35  ;;  %v2176_v46 = vadd.f32 %v2175_v29, %v2156_v23  ;;  %v2215_v47 = vpop.f32.mrf.mxu1  ;;  %v420_v35 = vld [vmem:[%s7191_s30 + $0x398] sm:$0xff]  ;;  %1042 = vst [vmem:[#allocation1] ss:$4 sm:$0xff] %v273_v44  ;;  %v678_v29 = vld [vmem:[%s7191_s30 + $0xba8] sm:$0x3] }
 0x113   : > { %3612 = vmatpush.xpose.msra.mxu3 %v668_v24  ;;  %3572 = vmatpush.xpose.msra.mxu1 %v666_v27  ;;  %v679_v24 = vld [vmem:[%s7191_s30 + $0xbb0] sm:$0x3]  ;;  %v677_v27 = vld [vmem:[%s7191_s30 + $0xba0] sm:$0x3]  ;;  %v680_v23 = vld [vmem:[%s7191_s30 + $0xbb8] sm:$0x3] }
 0x114   : > { %v2196_v63 = vadd.f32 %v2195_v31, %v2176_v46  ;;  %3514 = vmatmul.f32.vlgmr.msrb.gmra.mxu2 %v7627_v38  ;;  %3474 = vmatmul.f32.vlgmr.msrb.gmra.mxu0 %v7629_v54 }
 0x115   : > { %3534 = vmatmul.f32.vlgmr.msrb.gmra.mxu3 %v7631_v56  ;;  %3494 = vmatmul.f32.vlgmr.msrb.gmra.mxu1 %v7634_v58  ;;  %v415_v58 = vld [vmem:[%s7191_s30 + $0x370] sm:$0xff] }
 0x116   : > { %v2216_v51 = vadd.f32 %v2215_v47, %v2196_v63  ;;  %3593 = vmatpush.xpose.msra.mxu2 %v411_v33  ;;  %3553 = vmatpush.xpose.msra.mxu0 %v409_v60  ;;  %v7753_v33 = vld.sshfl [vmem:[#allocation1 + $0x30] sm:$0xff pattern:$0x73625140]  ;;  %v7755_v60 = vld.sshfl [vmem:[#allocation1 + $0x20] sm:$0xff pattern:$0x73625140] }
 0x117   : > { %v2235_v52 = vpop.f32.mrf.mxu2  ;;  %3613 = vmatpush.xpose.msra.mxu3 %v412_v0  ;;  %3573 = vmatpush.xpose.msra.mxu1 %v410_v1  ;;  %v421_v63 = vld [vmem:[%s7191_s30 + $0x3a0] sm:$0xff]  ;;  %v274_v1 = vld [vmem:[%s7185_s5 + $0x108] sm:$0xff] }
 0x118   : > { %v2236_v38 = vadd.f32 %v2235_v52, %v2216_v51  ;;  %v2255_v54 = vpop.f32.mrf.mxu3  ;;  %v7760_v0 = vld.sshfl [vmem:[#allocation1 + $0x28] sm:$0xff pattern:$0x73625140]  ;;  %v422_v51 = vld [vmem:[%s7191_s30 + $0x3a8] sm:$0xff] }
 0x119   : > { %v2275_v56 = vpop.f32.mrf.mxu0  ;;  %1043 = vst [vmem:[#allocation1 + $0x20] ss:$4 sm:$0xff] %v274_v1  ;;  %v7778_v19 = vld.sshfl [vmem:[#allocation1 + $0x18] sm:$0xff pattern:$0x73625140] }
 0x11a   : > { %3672 = vmatpush.xpose.msrb.mxu2 %v671_v48  ;;  %3632 = vmatpush.xpose.msrb.mxu0 %v669_v50  ;;  %v2256_v4 = vadd.f32 %v2255_v54, %v2236_v38  ;;  %v2295_v5 = vpop.f32.mrf.mxu1  ;;  %v424_v50 = vld [vmem:[%s7191_s30 + $0x3b8] sm:$0xff]  ;;  %v682_v54 = vld [vmem:[%s7191_s30 + $0xbc8] sm:$0x3] }
 0x11b   : > { %3692 = vmatpush.xpose.msrb.mxu3 %v672_v45  ;;  %3652 = vmatpush.xpose.msrb.mxu1 %v670_v49  ;;  %v683_v45 = vld [vmem:[%s7191_s30 + $0xbd0] sm:$0x3]  ;;  %v681_v49 = vld [vmem:[%s7191_s30 + $0xbc0] sm:$0x3]  ;;  %v684_v38 = vld [vmem:[%s7191_s30 + $0xbd8] sm:$0x3] }
 0x11c   : > { %v2276_v20 = vadd.f32 %v2275_v56, %v2256_v4  ;;  %3594 = vmatmul.f32.vlgmr.msra.gmra.mxu2 %v7648_v53  ;;  %3554 = vmatmul.f32.vlgmr.msra.gmra.mxu0 %v7650_v11 }
 0x11d   : > { %3614 = vmatmul.f32.vlgmr.msra.gmra.mxu3 %v7652_v13  ;;  %3574 = vmatmul.f32.vlgmr.msra.gmra.mxu1 %v7655_v15  ;;  %v419_v15 = vld [vmem:[%s7191_s30 + $0x390] sm:$0xff] }
 0x11e   : > { %v2296_v7 = vadd.f32 %v2295_v5, %v2276_v20  ;;  %3673 = vmatpush.xpose.msrb.mxu2 %v415_v58  ;;  %3633 = vmatpush.xpose.msrb.mxu0 %v413_v17  ;;  %v7774_v58 = vld.sshfl [vmem:[#allocation1 + $0x10] sm:$0xff pattern:$0x73625140]  ;;  %v7776_v17 = vld.sshfl [vmem:[#allocation1] sm:$0xff pattern:$0x73625140] }
 0x11f   : > { %v2315_v10 = vpop.f32.mrf.mxu2  ;;  %3693 = vmatpush.xpose.msrb.mxu3 %v416_v21  ;;  %3653 = vmatpush.xpose.msrb.mxu1 %v414_v22  ;;  %v425_v20 = vld [vmem:[%s7191_s30 + $0x3c0] sm:$0xff]  ;;  %v275_v22 = vld [vmem:[%s7185_s5 + $0x110] sm:$0xff] }
 0x120   : > { %v2316_v53 = vadd.f32 %v2315_v10, %v2296_v7  ;;  %v2335_v11 = vpop.f32.mrf.mxu3  ;;  %v7781_v21 = vld.sshfl [vmem:[#allocation1 + $0x8] sm:$0xff pattern:$0x73625140]  ;;  %v426_v7 = vld [vmem:[%s7191_s30 + $0x3c8] sm:$0xff] }
 0x121   : > { %v2355_v13 = vpop.f32.mrf.mxu0  ;;  %1052 = vst [vmem:[#allocation1] ss:$4 sm:$0xff] %v275_v22  ;;  %v7799_v44 = vld.sshfl [vmem:[#allocation1 + $0x38] sm:$0xff pattern:$0x73625140] }
 0x122   : > { %3752 = vmatpush.xpose.msra.mxu2 %v675_v3  ;;  %3712 = vmatpush.xpose.msra.mxu0 %v673_v6  ;;  %v2336_v25 = vadd.f32 %v2335_v11, %v2316_v53  ;;  %v2375_v26 = vpop.f32.mrf.mxu1  ;;  %v428_v6 = vld [vmem:[%s7191_s30 + $0x3d8] sm:$0xff]  ;;  %v686_v11 = vld [vmem:[%s7191_s30 + $0xbe8] sm:$0x3] }
 0x123   : > { %3772 = vmatpush.xpose.msra.mxu3 %v676_v2  ;;  %3732 = vmatpush.xpose.msra.mxu1 %v674_v8  ;;  %v687_v2 = vld [vmem:[%s7191_s30 + $0xbf0] sm:$0x3]  ;;  %v685_v8 = vld [vmem:[%s7191_s30 + $0xbe0] sm:$0x3]  ;;  %v688_v53 = vld [vmem:[%s7191_s30 + $0xbf8] sm:$0x3] }
 0x124   : > { %v2356_v34 = vadd.f32 %v2355_v13, %v2336_v25  ;;  %3674 = vmatmul.f32.vlgmr.msrb.gmra.mxu2 %v7669_v9  ;;  %3634 = vmatmul.f32.vlgmr.msrb.gmra.mxu0 %v7671_v32 }
 0x125   : > { %3694 = vmatmul.f32.vlgmr.msrb.gmra.mxu3 %v7673_v37  ;;  %3654 = vmatmul.f32.vlgmr.msrb.gmra.mxu1 %v7676_v40  ;;  %v423_v40 = vld [vmem:[%s7191_s30 + $0x3b0] sm:$0xff] }
 0x126   : > { %v2376_v28 = vadd.f32 %v2375_v26, %v2356_v34  ;;  %3753 = vmatpush.xpose.msra.mxu2 %v419_v15  ;;  %3713 = vmatpush.xpose.msra.mxu0 %v417_v42  ;;  %v7795_v15 = vld.sshfl [vmem:[#allocation1 + $0x30] sm:$0xff pattern:$0x73625140]  ;;  %v7797_v42 = vld.sshfl [vmem:[#allocation1 + $0x20] sm:$0xff pattern:$0x73625140] }
 0x127   : > { %v2395_v31 = vpop.f32.mrf.mxu2  ;;  %3773 = vmatpush.xpose.msra.mxu3 %v420_v35  ;;  %3733 = vmatpush.xpose.msra.mxu1 %v418_v36  ;;  %v429_v34 = vld [vmem:[%s7191_s30 + $0x3e0] sm:$0xff]  ;;  %v276_v36 = vld [vmem:[%s7185_s5 + $0x118] sm:$0xff] }
 0x128   : > { %v2396_v9 = vadd.f32 %v2395_v31, %v2376_v28  ;;  %v2415_v32 = vpop.f32.mrf.mxu3  ;;  %v7802_v35 = vld.sshfl [vmem:[#allocation1 + $0x28] sm:$0xff pattern:$0x73625140]  ;;  %v430_v28 = vld [vmem:[%s7191_s30 + $0x3e8] sm:$0xff] }
 0x129   : > { %v2435_v37 = vpop.f32.mrf.mxu0  ;;  %1053 = vst [vmem:[#allocation1 + $0x20] ss:$4 sm:$0xff] %v276_v36  ;;  %v7820_v1 = vld.sshfl [vmem:[#allocation1 + $0x18] sm:$0xff pattern:$0x73625140] }
 0x12a   : > { %3832 = vmatpush.xpose.msrb.mxu2 %v679_v24  ;;  %3792 = vmatpush.xpose.msrb.mxu0 %v677_v27  ;;  %v2416_v46 = vadd.f32 %v2415_v32, %v2396_v9  ;;  %v2455_v47 = vpop.f32.mrf.mxu1  ;;  %v432_v27 = vld [vmem:[%s7191_s30 + $0x3f8] sm:$0xff]  ;;  %v690_v32 = vld [vmem:[%s7191_s30 + $0xc08] sm:$0x3] }
 0x12b   : > { %3852 = vmatpush.xpose.msrb.mxu3 %v680_v23  ;;  %3812 = vmatpush.xpose.msrb.mxu1 %v678_v29  ;;  %v691_v23 = vld [vmem:[%s7191_s30 + $0xc10] sm:$0x3]  ;;  %v689_v29 = vld [vmem:[%s7191_s30 + $0xc00] sm:$0x3]  ;;  %v692_v9 = vld [vmem:[%s7191_s30 + $0xc18] sm:$0x3] }
 0x12c   : > { %v2436_v48 = vadd.f32 %v2435_v37, %v2416_v46  ;;  %3754 = vmatmul.f32.vlgmr.msra.gmra.mxu2 %v7690_v30  ;;  %3714 = vmatmul.f32.vlgmr.msra.gmra.mxu0 %v7692_v57 }
 0x12d   : > { %3774 = vmatmul.f32.vlgmr.msra.gmra.mxu3 %v7694_v59  ;;  %3734 = vmatmul.f32.vlgmr.msra.gmra.mxu1 %v7697_v61  ;;  %v427_v61 = vld [vmem:[%s7191_s30 + $0x3d0] sm:$0xff] }
 0x12e   : > { %v2456_v52 = vadd.f32 %v2455_v47, %v2436_v48  ;;  %3833 = vmatpush.xpose.msrb.mxu2 %v423_v40  ;;  %3793 = vmatpush.xpose.msrb.mxu0 %v421_v63  ;;  %v7816_v40 = vld.sshfl [vmem:[#allocation1 + $0x10] sm:$0xff pattern:$0x73625140]  ;;  %v7818_v63 = vld.sshfl [vmem:[#allocation1] sm:$0xff pattern:$0x73625140] }
 0x12f   : > { %v2475_v56 = vpop.f32.mrf.mxu2  ;;  %3853 = vmatpush.xpose.msrb.mxu3 %v424_v50  ;;  %3813 = vmatpush.xpose.msrb.mxu1 %v422_v51  ;;  %v433_v48 = vld [vmem:[%s7191_s30 + $0x400] sm:$0xff] }
 0x130   : > { %v2476_v30 = vadd.f32 %v2475_v56, %v2456_v52  ;;  %v2495_v57 = vpop.f32.mrf.mxu3  ;;  %v7823_v50 = vld.sshfl [vmem:[#allocation1 + $0x8] sm:$0xff pattern:$0x73625140]  ;;  %v434_v52 = vld [vmem:[%s7191_s30 + $0x408] sm:$0xff] }
 0x131   : > { %v2515_v59 = vpop.f32.mrf.mxu0  ;;  %v277_v51 = vld [vmem:[%s7185_s5 + $0x120] sm:$0xff]  ;;  %v7841_v22 = vld.sshfl [vmem:[#allocation1 + $0x38] sm:$0xff pattern:$0x73625140] }
 0x132   : > { %3912 = vmatpush.xpose.msra.mxu2 %v683_v45  ;;  %3872 = vmatpush.xpose.msra.mxu0 %v681_v49  ;;  %v2496_v4 = vadd.f32 %v2495_v57, %v2476_v30  ;;  %v2535_v5 = vpop.f32.mrf.mxu1  ;;  %v436_v49 = vld [vmem:[%s7191_s30 + $0x418] sm:$0xff]  ;;  %1062 = vst [vmem:[#allocation1] ss:$4 sm:$0xff] %v277_v51  ;;  %v694_v57 = vld [vmem:[%s7191_s30 + $0xc28] sm:$0x3] }
 0x133   : > { %3932 = vmatpush.xpose.msra.mxu3 %v684_v38  ;;  %3892 = vmatpush.xpose.msra.mxu1 %v682_v54  ;;  %v695_v38 = vld [vmem:[%s7191_s30 + $0xc30] sm:$0x3]  ;;  %v693_v54 = vld [vmem:[%s7191_s30 + $0xc20] sm:$0x3]  ;;  %v696_v30 = vld [vmem:[%s7191_s30 + $0xc38] sm:$0x3] }
 0x134   : > { %v2516_v3 = vadd.f32 %v2515_v59, %v2496_v4  ;;  %3834 = vmatmul.f32.vlgmr.msrb.gmra.mxu2 %v7711_v55  ;;  %3794 = vmatmul.f32.vlgmr.msrb.gmra.mxu0 %v7713_v14 }
 0x135   : > { %3854 = vmatmul.f32.vlgmr.msrb.gmra.mxu3 %v7715_v16  ;;  %3814 = vmatmul.f32.vlgmr.msrb.gmra.mxu1 %v7718_v18  ;;  %v431_v18 = vld [vmem:[%s7191_s30 + $0x3f0] sm:$0xff] }
 0x136   : > { %v2536_v10 = vadd.f32 %v2535_v5, %v2516_v3  ;;  %3913 = vmatpush.xpose.msra.mxu2 %v427_v61  ;;  %3873 = vmatpush.xpose.msra.mxu0 %v425_v20  ;;  %v7837_v61 = vld.sshfl [vmem:[#allocation1 + $0x30] sm:$0xff pattern:$0x73625140]  ;;  %v7839_v20 = vld.sshfl [vmem:[#allocation1 + $0x20] sm:$0xff pattern:$0x73625140] }
 0x137   : > { %v2555_v13 = vpop.f32.mrf.mxu2  ;;  %3933 = vmatpush.xpose.msra.mxu3 %v428_v6  ;;  %3893 = vmatpush.xpose.msra.mxu1 %v426_v7  ;;  %v437_v3 = vld [vmem:[%s7191_s30 + $0x420] sm:$0xff]  ;;  %v278_v7 = vld [vmem:[%s7185_s5 + $0x128] sm:$0xff] }
 0x138   : > { %v2556_v55 = vadd.f32 %v2555_v13, %v2536_v10  ;;  %v2575_v14 = vpop.f32.mrf.mxu3  ;;  %v7844_v6 = vld.sshfl [vmem:[#allocation1 + $0x28] sm:$0xff pattern:$0x73625140]  ;;  %v438_v10 = vld [vmem:[%s7191_s30 + $0x428] sm:$0xff] }
 0x139   : > { %v2595_v16 = vpop.f32.mrf.mxu0  ;;  %1063 = vst [vmem:[#allocation1 + $0x20] ss:$4 sm:$0xff] %v278_v7  ;;  %v7862_v36 = vld.sshfl [vmem:[#allocation1 + $0x18] sm:$0xff pattern:$0x73625140] }
 0x13a   : > { %3992 = vmatpush.xpose.msrb.mxu2 %v687_v2  ;;  %3952 = vmatpush.xpose.msrb.mxu0 %v685_v8  ;;  %v2576_v25 = vadd.f32 %v2575_v14, %v2556_v55  ;;  %v2615_v26 = vpop.f32.mrf.mxu1  ;;  %v440_v8 = vld [vmem:[%s7191_s30 + $0x438] sm:$0xff]  ;;  %v698_v14 = vld [vmem:[%s7191_s30 + $0xc48] sm:$0x3] }
 0x13b   : > { %4012 = vmatpush.xpose.msrb.mxu3 %v688_v53  ;;  %3972 = vmatpush.xpose.msrb.mxu1 %v686_v11  ;;  %v699_v53 = vld [vmem:[%s7191_s30 + $0xc50] sm:$0x3]  ;;  %v697_v11 = vld [vmem:[%s7191_s30 + $0xc40] sm:$0x3]  ;;  %v700_v55 = vld [vmem:[%s7191_s30 + $0xc58] sm:$0x3] }
 0x13c   : > { %v2596_v24 = vadd.f32 %v2595_v16, %v2576_v25  ;;  %3914 = vmatmul.f32.vlgmr.msra.gmra.mxu2 %v7732_v12  ;;  %3874 = vmatmul.f32.vlgmr.msra.gmra.mxu0 %v7734_v39 }
 0x13d   : > { %3934 = vmatmul.f32.vlgmr.msra.gmra.mxu3 %v7736_v41  ;;  %3894 = vmatmul.f32.vlgmr.msra.gmra.mxu1 %v7739_v43  ;;  %v435_v43 = vld [vmem:[%s7191_s30 + $0x410] sm:$0xff] }
 0x13e   : > { %v2616_v31 = vadd.f32 %v2615_v26, %v2596_v24  ;;  %3993 = vmatpush.xpose.msrb.mxu2 %v431_v18  ;;  %3953 = vmatpush.xpose.msrb.mxu0 %v429_v34  ;;  %v7858_v18 = vld.sshfl [vmem:[#allocation1 + $0x10] sm:$0xff pattern:$0x73625140]  ;;  %v7860_v34 = vld.sshfl [vmem:[#allocation1] sm:$0xff pattern:$0x73625140] }
 0x13f   : > { %v2635_v37 = vpop.f32.mrf.mxu2  ;;  %4013 = vmatpush.xpose.msrb.mxu3 %v432_v27  ;;  %3973 = vmatpush.xpose.msrb.mxu1 %v430_v28  ;;  %v441_v24 = vld [vmem:[%s7191_s30 + $0x440] sm:$0xff]  ;;  %v279_v28 = vld [vmem:[%s7185_s5 + $0x130] sm:$0xff] }
 0x140   : > { %v2636_v12 = vadd.f32 %v2635_v37, %v2616_v31  ;;  %v2655_v39 = vpop.f32.mrf.mxu3  ;;  %v7865_v27 = vld.sshfl [vmem:[#allocation1 + $0x8] sm:$0xff pattern:$0x73625140]  ;;  %v442_v31 = vld [vmem:[%s7191_s30 + $0x448] sm:$0xff] }
 0x141   : > { %v2675_v41 = vpop.f32.mrf.mxu0  ;;  %1072 = vst [vmem:[#allocation1] ss:$4 sm:$0xff] %v279_v28  ;;  %v7883_v51 = vld.sshfl [vmem:[#allocation1 + $0x38] sm:$0xff pattern:$0x73625140] }
 0x142   : > { %4072 = vmatpush.xpose.msra.mxu2 %v691_v23  ;;  %4032 = vmatpush.xpose.msra.mxu0 %v689_v29  ;;  %v2656_v46 = vadd.f32 %v2655_v39, %v2636_v12  ;;  %v2695_v47 = vpop.f32.mrf.mxu1  ;;  %v444_v29 = vld [vmem:[%s7191_s30 + $0x458] sm:$0xff]  ;;  %v702_v39 = vld [vmem:[%s7191_s30 + $0xc68] sm:$0x3] }
 0x143   : > { %4092 = vmatpush.xpose.msra.mxu3 %v692_v9  ;;  %4052 = vmatpush.xpose.msra.mxu1 %v690_v32  ;;  %v703_v9 = vld [vmem:[%s7191_s30 + $0xc70] sm:$0x3]  ;;  %v701_v32 = vld [vmem:[%s7191_s30 + $0xc60] sm:$0x3]  ;;  %v704_v12 = vld [vmem:[%s7191_s30 + $0xc78] sm:$0x3] }
 0x144   : > { %v2676_v45 = vadd.f32 %v2675_v41, %v2656_v46  ;;  %3994 = vmatmul.f32.vlgmr.msrb.gmra.mxu2 %v7753_v33  ;;  %3954 = vmatmul.f32.vlgmr.msrb.gmra.mxu0 %v7755_v60 }
 0x145   : > { %4014 = vmatmul.f32.vlgmr.msrb.gmra.mxu3 %v7757_v62  ;;  %3974 = vmatmul.f32.vlgmr.msrb.gmra.mxu1 %v7760_v0  ;;  %v439_v0 = vld [vmem:[%s7191_s30 + $0x430] sm:$0xff] }
 0x146   : > { %v2696_v56 = vadd.f32 %v2695_v47, %v2676_v45  ;;  %4073 = vmatpush.xpose.msra.mxu2 %v435_v43  ;;  %4033 = vmatpush.xpose.msra.mxu0 %v433_v48  ;;  %v7879_v43 = vld.sshfl [vmem:[#allocation1 + $0x30] sm:$0xff pattern:$0x73625140]  ;;  %v7881_v48 = vld.sshfl [vmem:[#allocation1 + $0x20] sm:$0xff pattern:$0x73625140] }
 0x147   : > { %v2715_v59 = vpop.f32.mrf.mxu2  ;;  %4093 = vmatpush.xpose.msra.mxu3 %v436_v49  ;;  %4053 = vmatpush.xpose.msra.mxu1 %v434_v52  ;;  %v445_v45 = vld [vmem:[%s7191_s30 + $0x460] sm:$0xff]  ;;  %v280_v52 = vld [vmem:[%s7185_s5 + $0x138] sm:$0xff] }
 0x148   : > { %v2716_v33 = vadd.f32 %v2715_v59, %v2696_v56  ;;  %v2735_v60 = vpop.f32.mrf.mxu3  ;;  %v7886_v49 = vld.sshfl [vmem:[#allocation1 + $0x28] sm:$0xff pattern:$0x73625140]  ;;  %v446_v56 = vld [vmem:[%s7191_s30 + $0x468] sm:$0xff] }
 0x149   : > { %v2755_v62 = vpop.f32.mrf.mxu0  ;;  %1073 = vst [vmem:[#allocation1 + $0x20] ss:$4 sm:$0xff] %v280_v52  ;;  %v7904_v7 = vld.sshfl [vmem:[#allocation1 + $0x18] sm:$0xff pattern:$0x73625140] }
 0x14a   : > { %4152 = vmatpush.xpose.msrb.mxu2 %v695_v38  ;;  %4112 = vmatpush.xpose.msrb.mxu0 %v693_v54  ;;  %v2736_v4 = vadd.f32 %v2735_v60, %v2716_v33  ;;  %v2775_v5 = vpop.f32.mrf.mxu1  ;;  %v448_v54 = vld [vmem:[%s7191_s30 + $0x478] sm:$0xff]  ;;  %v706_v60 = vld [vmem:[%s7191_s30 + $0xc88] sm:$0x3] }
 0x14b   : > { %4172 = vmatpush.xpose.msrb.mxu3 %v696_v30  ;;  %4132 = vmatpush.xpose.msrb.mxu1 %v694_v57  ;;  %v707_v30 = vld [vmem:[%s7191_s30 + $0xc90] sm:$0x3]  ;;  %v705_v57 = vld [vmem:[%s7191_s30 + $0xc80] sm:$0x3]  ;;  %v708_v33 = vld [vmem:[%s7191_s30 + $0xc98] sm:$0x3] }
 0x14c   : > { %v2756_v2 = vadd.f32 %v2755_v62, %v2736_v4  ;;  %4074 = vmatmul.f32.vlgmr.msra.gmra.mxu2 %v7774_v58  ;;  %4034 = vmatmul.f32.vlgmr.msra.gmra.mxu0 %v7776_v17 }
 0x14d   : > { %4094 = vmatmul.f32.vlgmr.msra.gmra.mxu3 %v7778_v19  ;;  %4054 = vmatmul.f32.vlgmr.msra.gmra.mxu1 %v7781_v21  ;;  %v443_v21 = vld [vmem:[%s7191_s30 + $0x450] sm:$0xff] }
 0x14e   : > { %v2776_v13 = vadd.f32 %v2775_v5, %v2756_v2  ;;  %4153 = vmatpush.xpose.msrb.mxu2 %v439_v0  ;;  %4113 = vmatpush.xpose.msrb.mxu0 %v437_v3  ;;  %v7900_v0 = vld.sshfl [vmem:[#allocation1 + $0x10] sm:$0xff pattern:$0x73625140]  ;;  %v7902_v3 = vld.sshfl [vmem:[#allocation1] sm:$0xff pattern:$0x73625140] }
 0x14f   : > { %v2795_v16 = vpop.f32.mrf.mxu2  ;;  %4173 = vmatpush.xpose.msrb.mxu3 %v440_v8  ;;  %4133 = vmatpush.xpose.msrb.mxu1 %v438_v10  ;;  %v449_v2 = vld [vmem:[%s7191_s30 + $0x480] sm:$0xff] }
 0x150   : > { %v2796_v58 = vadd.f32 %v2795_v16, %v2776_v13  ;;  %v2815_v17 = vpop.f32.mrf.mxu3  ;;  %v7907_v8 = vld.sshfl [vmem:[#allocation1 + $0x8] sm:$0xff pattern:$0x73625140]  ;;  %v450_v13 = vld [vmem:[%s7191_s30 + $0x488] sm:$0xff] }
 0x151   : > { %v2835_v19 = vpop.f32.mrf.mxu0  ;;  %v281_v10 = vld [vmem:[%s7185_s5 + $0x140] sm:$0xff]  ;;  %v7925_v28 = vld.sshfl [vmem:[#allocation1 + $0x38] sm:$0xff pattern:$0x73625140] }
 0x152   : > { %4232 = vmatpush.xpose.msra.mxu2 %v699_v53  ;;  %4192 = vmatpush.xpose.msra.mxu0 %v697_v11  ;;  %v2816_v25 = vadd.f32 %v2815_v17, %v2796_v58  ;;  %v2855_v26 = vpop.f32.mrf.mxu1  ;;  %v452_v11 = vld [vmem:[%s7191_s30 + $0x498] sm:$0xff]  ;;  %1082 = vst [vmem:[#allocation1] ss:$4 sm:$0xff] %v281_v10  ;;  %v710_v17 = vld [vmem:[%s7191_s30 + $0xca8] sm:$0x3] }
 0x153   : > { %4252 = vmatpush.xpose.msra.mxu3 %v700_v55  ;;  %4212 = vmatpush.xpose.msra.mxu1 %v698_v14  ;;  %v711_v55 = vld [vmem:[%s7191_s30 + $0xcb0] sm:$0x3]  ;;  %v709_v14 = vld [vmem:[%s7191_s30 + $0xca0] sm:$0x3]  ;;  %v712_v58 = vld [vmem:[%s7191_s30 + $0xcb8] sm:$0x3] }
 0x154   : > { %v2836_v23 = vadd.f32 %v2835_v19, %v2816_v25  ;;  %4154 = vmatmul.f32.vlgmr.msrb.gmra.mxu2 %v7795_v15  ;;  %4114 = vmatmul.f32.vlgmr.msrb.gmra.mxu0 %v7797_v42 }
 0x155   : > { %4174 = vmatmul.f32.vlgmr.msrb.gmra.mxu3 %v7799_v44  ;;  %4134 = vmatmul.f32.vlgmr.msrb.gmra.mxu1 %v7802_v35  ;;  %v447_v35 = vld [vmem:[%s7191_s30 + $0x470] sm:$0xff] }
 0x156   : > { %v2856_v37 = vadd.f32 %v2855_v26, %v2836_v23  ;;  %4233 = vmatpush.xpose.msra.mxu2 %v443_v21  ;;  %4193 = vmatpush.xpose.msra.mxu0 %v441_v24  ;;  %v7921_v21 = vld.sshfl [vmem:[#allocation1 + $0x30] sm:$0xff pattern:$0x73625140]  ;;  %v7923_v24 = vld.sshfl [vmem:[#allocation1 + $0x20] sm:$0xff pattern:$0x73625140] }
 0x157   : > { %v2875_v41 = vpop.f32.mrf.mxu2  ;;  %4253 = vmatpush.xpose.msra.mxu3 %v444_v29  ;;  %4213 = vmatpush.xpose.msra.mxu1 %v442_v31  ;;  %v453_v23 = vld [vmem:[%s7191_s30 + $0x4a0] sm:$0xff]  ;;  %v282_v31 = vld [vmem:[%s7185_s5 + $0x148] sm:$0xff] }
 0x158   : > { %v2876_v15 = vadd.f32 %v2875_v41, %v2856_v37  ;;  %v2895_v42 = vpop.f32.mrf.mxu3  ;;  %v7928_v29 = vld.sshfl [vmem:[#allocation1 + $0x28] sm:$0xff pattern:$0x73625140]  ;;  %v454_v37 = vld [vmem:[%s7191_s30 + $0x4a8] sm:$0xff] }
 0x159   : > { %v2915_v44 = vpop.f32.mrf.mxu0  ;;  %1083 = vst [vmem:[#allocation1 + $0x20] ss:$4 sm:$0xff] %v282_v31  ;;  %v7946_v52 = vld.sshfl [vmem:[#allocation1 + $0x18] sm:$0xff pattern:$0x73625140] }
 0x15a   : > { %4312 = vmatpush.xpose.msrb.mxu2 %v703_v9  ;;  %4272 = vmatpush.xpose.msrb.mxu0 %v701_v32  ;;  %v2896_v46 = vadd.f32 %v2895_v42, %v2876_v15  ;;  %v2935_v47 = vpop.f32.mrf.mxu1  ;;  %v456_v32 = vld [vmem:[%s7191_s30 + $0x4b8] sm:$0xff]  ;;  %v714_v42 = vld [vmem:[%s7191_s30 + $0xcc8] sm:$0x3] }
 0x15b   : > { %4332 = vmatpush.xpose.msrb.mxu3 %v704_v12  ;;  %4292 = vmatpush.xpose.msrb.mxu1 %v702_v39  ;;  %v715_v12 = vld [vmem:[%s7191_s30 + $0xcd0] sm:$0x3]  ;;  %v713_v39 = vld [vmem:[%s7191_s30 + $0xcc0] sm:$0x3]  ;;  %v716_v15 = vld [vmem:[%s7191_s30 + $0xcd8] sm:$0x3] }
 0x15c   : > { %v2916_v38 = vadd.f32 %v2915_v44, %v2896_v46  ;;  %4234 = vmatmul.f32.vlgmr.msra.gmra.mxu2 %v7816_v40  ;;  %4194 = vmatmul.f32.vlgmr.msra.gmra.mxu0 %v7818_v63 }
 0x15d   : > { %4254 = vmatmul.f32.vlgmr.msra.gmra.mxu3 %v7820_v1  ;;  %4214 = vmatmul.f32.vlgmr.msra.gmra.mxu1 %v7823_v50  ;;  %v451_v50 = vld [vmem:[%s7191_s30 + $0x490] sm:$0xff] }
 0x15e   : > { %v2936_v59 = vadd.f32 %v2935_v47, %v2916_v38  ;;  %4313 = vmatpush.xpose.msrb.mxu2 %v447_v35  ;;  %4273 = vmatpush.xpose.msrb.mxu0 %v445_v45  ;;  %v7942_v35 = vld.sshfl [vmem:[#allocation1 + $0x10] sm:$0xff pattern:$0x73625140]  ;;  %v7944_v45 = vld.sshfl [vmem:[#allocation1] sm:$0xff pattern:$0x73625140] }
 0x15f   : > { %v2955_v62 = vpop.f32.mrf.mxu2  ;;  %4333 = vmatpush.xpose.msrb.mxu3 %v448_v54  ;;  %4293 = vmatpush.xpose.msrb.mxu1 %v446_v56  ;;  %v457_v38 = vld [vmem:[%s7191_s30 + $0x4c0] sm:$0xff]  ;;  %v283_v56 = vld [vmem:[%s7185_s5 + $0x150] sm:$0xff] }
 0x160   : > { %v2956_v40 = vadd.f32 %v2955_v62, %v2936_v59  ;;  %v2975_v63 = vpop.f32.mrf.mxu3  ;;  %v7949_v54 = vld.sshfl [vmem:[#allocation1 + $0x8] sm:$0xff pattern:$0x73625140]  ;;  %v458_v59 = vld [vmem:[%s7191_s30 + $0x4c8] sm:$0xff] }
 0x161   : > { %v2995_v1 = vpop.f32.mrf.mxu0  ;;  %1092 = vst [vmem:[#allocation1] ss:$4 sm:$0xff] %v283_v56  ;;  %v7967_v10 = vld.sshfl [vmem:[#allocation1 + $0x38] sm:$0xff pattern:$0x73625140] }
 0x162   : > { %4392 = vmatpush.xpose.msra.mxu2 %v707_v30  ;;  %4352 = vmatpush.xpose.msra.mxu0 %v705_v57  ;;  %v2976_v4 = vadd.f32 %v2975_v63, %v2956_v40  ;;  %v3015_v5 = vpop.f32.mrf.mxu1  ;;  %v460_v57 = vld [vmem:[%s7191_s30 + $0x4d8] sm:$0xff]  ;;  %v718_v63 = vld [vmem:[%s7191_s30 + $0xce8] sm:$0x3] }
 0x163   : > { %4412 = vmatpush.xpose.msra.mxu3 %v708_v33  ;;  %4372 = vmatpush.xpose.msra.mxu1 %v706_v60  ;;  %v719_v33 = vld [vmem:[%s7191_s30 + $0xcf0] sm:$0x3]  ;;  %v717_v60 = vld [vmem:[%s7191_s30 + $0xce0] sm:$0x3]  ;;  %v720_v40 = vld [vmem:[%s7191_s30 + $0xcf8] sm:$0x3] }
 0x164   : > { %v2996_v53 = vadd.f32 %v2995_v1, %v2976_v4  ;;  %4314 = vmatmul.f32.vlgmr.msrb.gmra.mxu2 %v7837_v61  ;;  %4274 = vmatmul.f32.vlgmr.msrb.gmra.mxu0 %v7839_v20 }
 0x165   : > { %4334 = vmatmul.f32.vlgmr.msrb.gmra.mxu3 %v7841_v22  ;;  %4294 = vmatmul.f32.vlgmr.msrb.gmra.mxu1 %v7844_v6  ;;  %v455_v6 = vld [vmem:[%s7191_s30 + $0x4b0] sm:$0xff] }
 0x166   : > { %v3016_v16 = vadd.f32 %v3015_v5, %v2996_v53  ;;  %4393 = vmatpush.xpose.msra.mxu2 %v451_v50  ;;  %4353 = vmatpush.xpose.msra.mxu0 %v449_v2  ;;  %v7963_v50 = vld.sshfl [vmem:[#allocation1 + $0x30] sm:$0xff pattern:$0x73625140]  ;;  %v7965_v2 = vld.sshfl [vmem:[#allocation1 + $0x20] sm:$0xff pattern:$0x73625140] }
 0x167   : > { %v3035_v19 = vpop.f32.mrf.mxu2  ;;  %4413 = vmatpush.xpose.msra.mxu3 %v452_v11  ;;  %4373 = vmatpush.xpose.msra.mxu1 %v450_v13  ;;  %v461_v53 = vld [vmem:[%s7191_s30 + $0x4e0] sm:$0xff]  ;;  %v284_v13 = vld [vmem:[%s7185_s5 + $0x158] sm:$0xff] }
 0x168   : > { %v3036_v61 = vadd.f32 %v3035_v19, %v3016_v16  ;;  %v3055_v20 = vpop.f32.mrf.mxu3  ;;  %v7970_v11 = vld.sshfl [vmem:[#allocation1 + $0x28] sm:$0xff pattern:$0x73625140]  ;;  %v462_v16 = vld [vmem:[%s7191_s30 + $0x4e8] sm:$0xff] }
 0x169   : > { %v3075_v22 = vpop.f32.mrf.mxu0  ;;  %1093 = vst [vmem:[#allocation1 + $0x20] ss:$4 sm:$0xff] %v284_v13  ;;  %v7988_v31 = vld.sshfl [vmem:[#allocation1 + $0x18] sm:$0xff pattern:$0x73625140] }
 0x16a   : > { %4472 = vmatpush.xpose.msrb.mxu2 %v711_v55  ;;  %4432 = vmatpush.xpose.msrb.mxu0 %v709_v14  ;;  %v3056_v25 = vadd.f32 %v3055_v20, %v3036_v61  ;;  %v3095_v26 = vpop.f32.mrf.mxu1  ;;  %v464_v14 = vld [vmem:[%s7191_s30 + $0x4f8] sm:$0xff]  ;;  %v722_v20 = vld [vmem:[%s7191_s30 + $0xd08] sm:$0x3] }
 0x16b   : > { %4492 = vmatpush.xpose.msrb.mxu3 %v712_v58  ;;  %4452 = vmatpush.xpose.msrb.mxu1 %v710_v17  ;;  %v723_v58 = vld [vmem:[%s7191_s30 + $0xd10] sm:$0x3]  ;;  %v721_v17 = vld [vmem:[%s7191_s30 + $0xd00] sm:$0x3]  ;;  %v724_v61 = vld [vmem:[%s7191_s30 + $0xd18] sm:$0x3] }
 0x16c   : > { %v3076_v9 = vadd.f32 %v3075_v22, %v3056_v25  ;;  %4394 = vmatmul.f32.vlgmr.msra.gmra.mxu2 %v7858_v18  ;;  %4354 = vmatmul.f32.vlgmr.msra.gmra.mxu0 %v7860_v34 }
 0x16d   : > { %4414 = vmatmul.f32.vlgmr.msra.gmra.mxu3 %v7862_v36  ;;  %4374 = vmatmul.f32.vlgmr.msra.gmra.mxu1 %v7865_v27  ;;  %v459_v27 = vld [vmem:[%s7191_s30 + $0x4d0] sm:$0xff] }
 0x16e   : > { %v3096_v41 = vadd.f32 %v3095_v26, %v3076_v9  ;;  %4473 = vmatpush.xpose.msrb.mxu2 %v455_v6  ;;  %4433 = vmatpush.xpose.msrb.mxu0 %v453_v23  ;;  %v7984_v6 = vld.sshfl [vmem:[#allocation1 + $0x10] sm:$0xff pattern:$0x73625140]  ;;  %v7986_v23 = vld.sshfl [vmem:[#allocation1] sm:$0xff pattern:$0x73625140] }
 0x16f   : > { %v3115_v44 = vpop.f32.mrf.mxu2  ;;  %4493 = vmatpush.xpose.msrb.mxu3 %v456_v32  ;;  %4453 = vmatpush.xpose.msrb.mxu1 %v454_v37  ;;  %v465_v9 = vld [vmem:[%s7191_s30 + $0x500] sm:$0xff] }
 0x170   : > { %v3116_v18 = vadd.f32 %v3115_v44, %v3096_v41  ;;  %v3135_v34 = vpop.f32.mrf.mxu3  ;;  %v7991_v32 = vld.sshfl [vmem:[#allocation1 + $0x8] sm:$0xff pattern:$0x73625140]  ;;  %v466_v41 = vld [vmem:[%s7191_s30 + $0x508] sm:$0xff] }
 0x171   : > { %v3155_v36 = vpop.f32.mrf.mxu0  ;;  %v285_v37 = vld [vmem:[%s7185_s5 + $0x160] sm:$0xff]  ;;  %v8009_v56 = vld.sshfl [vmem:[#allocation1 + $0x38] sm:$0xff pattern:$0x73625140] }
 0x172   : > { %4552 = vmatpush.xpose.msra.mxu2 %v715_v12  ;;  %4512 = vmatpush.xpose.msra.mxu0 %v713_v39  ;;  %v3136_v46 = vadd.f32 %v3135_v34, %v3116_v18  ;;  %v3175_v47 = vpop.f32.mrf.mxu1  ;;  %v468_v39 = vld [vmem:[%s7191_s30 + $0x518] sm:$0xff]  ;;  %1102 = vst [vmem:[#allocation1] ss:$4 sm:$0xff] %v285_v37  ;;  %v726_v34 = vld [vmem:[%s7191_s30 + $0xd28] sm:$0x3] }
 0x173   : > { %4572 = vmatpush.xpose.msra.mxu3 %v716_v15  ;;  %4532 = vmatpush.xpose.msra.mxu1 %v714_v42  ;;  %v727_v15 = vld [vmem:[%s7191_s30 + $0xd30] sm:$0x3]  ;;  %v725_v42 = vld [vmem:[%s7191_s30 + $0xd20] sm:$0x3]  ;;  %v728_v18 = vld [vmem:[%s7191_s30 + $0xd38] sm:$0x3] }
 0x174   : > { %v3156_v30 = vadd.f32 %v3155_v36, %v3136_v46  ;;  %4474 = vmatmul.f32.vlgmr.msrb.gmra.mxu2 %v7879_v43  ;;  %4434 = vmatmul.f32.vlgmr.msrb.gmra.mxu0 %v7881_v48 }
 0x175   : > { %4494 = vmatmul.f32.vlgmr.msrb.gmra.mxu3 %v7883_v51  ;;  %4454 = vmatmul.f32.vlgmr.msrb.gmra.mxu1 %v7886_v49  ;;  %v463_v49 = vld [vmem:[%s7191_s30 + $0x4f0] sm:$0xff] }
 0x176   : > { %v3176_v62 = vadd.f32 %v3175_v47, %v3156_v30  ;;  %4553 = vmatpush.xpose.msra.mxu2 %v459_v27  ;;  %4513 = vmatpush.xpose.msra.mxu0 %v457_v38  ;;  %v8005_v27 = vld.sshfl [vmem:[#allocation1 + $0x30] sm:$0xff pattern:$0x73625140]  ;;  %v8007_v38 = vld.sshfl [vmem:[#allocation1 + $0x20] sm:$0xff pattern:$0x73625140] }
 0x177   : > { %v3195_v1 = vpop.f32.mrf.mxu2  ;;  %4573 = vmatpush.xpose.msra.mxu3 %v460_v57  ;;  %4533 = vmatpush.xpose.msra.mxu1 %v458_v59  ;;  %v469_v30 = vld [vmem:[%s7191_s30 + $0x520] sm:$0xff]  ;;  %v286_v59 = vld [vmem:[%s7185_s5 + $0x168] sm:$0xff] }
 0x178   : > { %v3196_v43 = vadd.f32 %v3195_v1, %v3176_v62  ;;  %v3215_v48 = vpop.f32.mrf.mxu3  ;;  %v8012_v57 = vld.sshfl [vmem:[#allocation1 + $0x28] sm:$0xff pattern:$0x73625140]  ;;  %v470_v62 = vld [vmem:[%s7191_s30 + $0x528] sm:$0xff] }
 0x179   : > { %v3235_v51 = vpop.f32.mrf.mxu0  ;;  %1103 = vst [vmem:[#allocation1 + $0x20] ss:$4 sm:$0xff] %v286_v59  ;;  %v8030_v13 = vld.sshfl [vmem:[#allocation1 + $0x18] sm:$0xff pattern:$0x73625140] }
 0x17a   : > { %4632 = vmatpush.xpose.msrb.mxu2 %v719_v33  ;;  %4592 = vmatpush.xpose.msrb.mxu0 %v717_v60  ;;  %v3216_v4 = vadd.f32 %v3215_v48, %v3196_v43  ;;  %v3255_v5 = vpop.f32.mrf.mxu1  ;;  %v472_v60 = vld [vmem:[%s7191_s30 + $0x538] sm:$0xff]  ;;  %v730_v48 = vld [vmem:[%s7191_s30 + $0xd48] sm:$0x3] }
 0x17b   : > { %4652 = vmatpush.xpose.msrb.mxu3 %v720_v40  ;;  %4612 = vmatpush.xpose.msrb.mxu1 %v718_v63  ;;  %v731_v40 = vld [vmem:[%s7191_s30 + $0xd50] sm:$0x3]  ;;  %v729_v63 = vld [vmem:[%s7191_s30 + $0xd40] sm:$0x3]  ;;  %v732_v43 = vld [vmem:[%s7191_s30 + $0xd58] sm:$0x3] }
 0x17c   : > { %v3236_v55 = vadd.f32 %v3235_v51, %v3216_v4  ;;  %4554 = vmatmul.f32.vlgmr.msra.gmra.mxu2 %v7900_v0  ;;  %4514 = vmatmul.f32.vlgmr.msra.gmra.mxu0 %v7902_v3 }
 0x17d   : > { %4574 = vmatmul.f32.vlgmr.msra.gmra.mxu3 %v7904_v7  ;;  %4534 = vmatmul.f32.vlgmr.msra.gmra.mxu1 %v7907_v8  ;;  %v467_v8 = vld [vmem:[%s7191_s30 + $0x510] sm:$0xff] }
 0x17e   : > { %v3256_v19 = vadd.f32 %v3255_v5, %v3236_v55  ;;  %4633 = vmatpush.xpose.msrb.mxu2 %v463_v49  ;;  %4593 = vmatpush.xpose.msrb.mxu0 %v461_v53  ;;  %v8026_v49 = vld.sshfl [vmem:[#allocation1 + $0x10] sm:$0xff pattern:$0x73625140]  ;;  %v8028_v53 = vld.sshfl [vmem:[#allocation1] sm:$0xff pattern:$0x73625140] }
 0x17f   : > { %v3275_v22 = vpop.f32.mrf.mxu2  ;;  %4653 = vmatpush.xpose.msrb.mxu3 %v464_v14  ;;  %4613 = vmatpush.xpose.msrb.mxu1 %v462_v16  ;;  %v473_v55 = vld [vmem:[%s7191_s30 + $0x540] sm:$0xff]  ;;  %v287_v16 = vld [vmem:[%s7185_s5 + $0x170] sm:$0xff] }
 0x180   : > { %v3276_v0 = vadd.f32 %v3275_v22, %v3256_v19  ;;  %v3295_v3 = vpop.f32.mrf.mxu3  ;;  %v8033_v14 = vld.sshfl [vmem:[#allocation1 + $0x8] sm:$0xff pattern:$0x73625140]  ;;  %v474_v19 = vld [vmem:[%s7191_s30 + $0x548] sm:$0xff] }
 0x181   : > { %v3315_v7 = vpop.f32.mrf.mxu0  ;;  %1112 = vst [vmem:[#allocation1] ss:$4 sm:$0xff] %v287_v16  ;;  %v8051_v37 = vld.sshfl [vmem:[#allocation1 + $0x38] sm:$0xff pattern:$0x73625140] }
 0x182   : > { %4712 = vmatpush.xpose.msra.mxu2 %v723_v58  ;;  %4672 = vmatpush.xpose.msra.mxu0 %v721_v17  ;;  %v3296_v25 = vadd.f32 %v3295_v3, %v3276_v0  ;;  %v3335_v26 = vpop.f32.mrf.mxu1  ;;  %v476_v17 = vld [vmem:[%s7191_s30 + $0x558] sm:$0xff]  ;;  %v734_v3 = vld [vmem:[%s7191_s30 + $0xd68] sm:$0x3] }
 0x183   : > { %4732 = vmatpush.xpose.msra.mxu3 %v724_v61  ;;  %4692 = vmatpush.xpose.msra.mxu1 %v722_v20  ;;  %v735_v61 = vld [vmem:[%s7191_s30 + $0xd70] sm:$0x3]  ;;  %v733_v20 = vld [vmem:[%s7191_s30 + $0xd60] sm:$0x3]  ;;  %v736_v0 = vld [vmem:[%s7191_s30 + $0xd78] sm:$0x3] }
 0x184   : > { %v3316_v12 = vadd.f32 %v3315_v7, %v3296_v25  ;;  %4634 = vmatmul.f32.vlgmr.msrb.gmra.mxu2 %v7921_v21  ;;  %4594 = vmatmul.f32.vlgmr.msrb.gmra.mxu0 %v7923_v24 }
 0x185   : > { %4654 = vmatmul.f32.vlgmr.msrb.gmra.mxu3 %v7925_v28  ;;  %4614 = vmatmul.f32.vlgmr.msrb.gmra.mxu1 %v7928_v29  ;;  %v471_v29 = vld [vmem:[%s7191_s30 + $0x530] sm:$0xff] }
 0x186   : > { %v3336_v44 = vadd.f32 %v3335_v26, %v3316_v12  ;;  %4713 = vmatpush.xpose.msra.mxu2 %v467_v8  ;;  %4673 = vmatpush.xpose.msra.mxu0 %v465_v9  ;;  %v8047_v8 = vld.sshfl [vmem:[#allocation1 + $0x30] sm:$0xff pattern:$0x73625140]  ;;  %v8049_v9 = vld.sshfl [vmem:[#allocation1 + $0x20] sm:$0xff pattern:$0x73625140] }
 0x187   : > { %v3355_v36 = vpop.f32.mrf.mxu2  ;;  %4733 = vmatpush.xpose.msra.mxu3 %v468_v39  ;;  %4693 = vmatpush.xpose.msra.mxu1 %v466_v41  ;;  %v477_v12 = vld [vmem:[%s7191_s30 + $0x560] sm:$0xff]  ;;  %v288_v41 = vld [vmem:[%s7185_s5 + $0x178] sm:$0xff] }
 0x188   : > { %v3356_v21 = vadd.f32 %v3355_v36, %v3336_v44  ;;  %v3375_v24 = vpop.f32.mrf.mxu3  ;;  %v8054_v39 = vld.sshfl [vmem:[#allocation1 + $0x28] sm:$0xff pattern:$0x73625140]  ;;  %v478_v44 = vld [vmem:[%s7191_s30 + $0x568] sm:$0xff] }
 0x189   : > { %v3395_v28 = vpop.f32.mrf.mxu0  ;;  %1113 = vst [vmem:[#allocation1 + $0x20] ss:$4 sm:$0xff] %v288_v41  ;;  %v8072_v59 = vld.sshfl [vmem:[#allocation1 + $0x18] sm:$0xff pattern:$0x73625140] }
 0x18a   : > { %4792 = vmatpush.xpose.msrb.mxu2 %v727_v15  ;;  %4752 = vmatpush.xpose.msrb.mxu0 %v725_v42  ;;  %v3376_v46 = vadd.f32 %v3375_v24, %v3356_v21  ;;  %v3415_v47 = vpop.f32.mrf.mxu1  ;;  %v480_v42 = vld [vmem:[%s7191_s30 + $0x578] sm:$0xff]  ;;  %v738_v24 = vld [vmem:[%s7191_s30 + $0xd88] sm:$0x3] }
 0x18b   : > { %4812 = vmatpush.xpose.msrb.mxu3 %v728_v18  ;;  %4772 = vmatpush.xpose.msrb.mxu1 %v726_v34  ;;  %v739_v18 = vld [vmem:[%s7191_s30 + $0xd90] sm:$0x3]  ;;  %v737_v34 = vld [vmem:[%s7191_s30 + $0xd80] sm:$0x3]  ;;  %v740_v21 = vld [vmem:[%s7191_s30 + $0xd98] sm:$0x3] }
 0x18c   : > { %v3396_v33 = vadd.f32 %v3395_v28, %v3376_v46  ;;  %4714 = vmatmul.f32.vlgmr.msra.gmra.mxu2 %v7942_v35  ;;  %4674 = vmatmul.f32.vlgmr.msra.gmra.mxu0 %v7944_v45 }
 0x18d   : > { %4734 = vmatmul.f32.vlgmr.msra.gmra.mxu3 %v7946_v52  ;;  %4694 = vmatmul.f32.vlgmr.msra.gmra.mxu1 %v7949_v54  ;;  %v475_v54 = vld [vmem:[%s7191_s30 + $0x550] sm:$0xff] }
 0x18e   : > { %v3416_v1 = vadd.f32 %v3415_v47, %v3396_v33  ;;  %4793 = vmatpush.xpose.msrb.mxu2 %v471_v29  ;;  %4753 = vmatpush.xpose.msrb.mxu0 %v469_v30  ;;  %v8068_v29 = vld.sshfl [vmem:[#allocation1 + $0x10] sm:$0xff pattern:$0x73625140]  ;;  %v8070_v30 = vld.sshfl [vmem:[#allocation1] sm:$0xff pattern:$0x73625140] }
 0x18f   : > { %v3435_v51 = vpop.f32.mrf.mxu2  ;;  %4813 = vmatpush.xpose.msrb.mxu3 %v472_v60  ;;  %4773 = vmatpush.xpose.msrb.mxu1 %v470_v62  ;;  %v481_v33 = vld [vmem:[%s7191_s30 + $0x580] sm:$0xff] }
 0x190   : > { %v3436_v35 = vadd.f32 %v3435_v51, %v3416_v1  ;;  %v3455_v45 = vpop.f32.mrf.mxu3  ;;  %v8075_v60 = vld.sshfl [vmem:[#allocation1 + $0x8] sm:$0xff pattern:$0x73625140]  ;;  %v482_v1 = vld [vmem:[%s7191_s30 + $0x588] sm:$0xff] }
 0x191   : > { %v3475_v52 = vpop.f32.mrf.mxu0  ;;  %v289_v62 = vld [vmem:[%s7185_s5 + $0x180] sm:$0xff]  ;;  %v8093_v16 = vld.sshfl [vmem:[#allocation1 + $0x38] sm:$0xff pattern:$0x73625140] }
 0x192   : > { %4872 = vmatpush.xpose.msra.mxu2 %v731_v40  ;;  %4832 = vmatpush.xpose.msra.mxu0 %v729_v63  ;;  %v3456_v4 = vadd.f32 %v3455_v45, %v3436_v35  ;;  %v3495_v5 = vpop.f32.mrf.mxu1  ;;  %v484_v63 = vld [vmem:[%s7191_s30 + $0x598] sm:$0xff]  ;;  %1122 = vst [vmem:[#allocation1] ss:$4 sm:$0xff] %v289_v62  ;;  %v742_v45 = vld [vmem:[%s7191_s30 + $0xda8] sm:$0x3] }
 0x193   : > { %4892 = vmatpush.xpose.msra.mxu3 %v732_v43  ;;  %4852 = vmatpush.xpose.msra.mxu1 %v730_v48  ;;  %v743_v43 = vld [vmem:[%s7191_s30 + $0xdb0] sm:$0x3]  ;;  %v741_v48 = vld [vmem:[%s7191_s30 + $0xda0] sm:$0x3]  ;;  %v744_v35 = vld [vmem:[%s7191_s30 + $0xdb8] sm:$0x3] }
 0x194   : > { %v3476_v58 = vadd.f32 %v3475_v52, %v3456_v4  ;;  %4794 = vmatmul.f32.vlgmr.msrb.gmra.mxu2 %v7963_v50  ;;  %4754 = vmatmul.f32.vlgmr.msrb.gmra.mxu0 %v7965_v2 }
 0x195   : > { %4814 = vmatmul.f32.vlgmr.msrb.gmra.mxu3 %v7967_v10  ;;  %4774 = vmatmul.f32.vlgmr.msrb.gmra.mxu1 %v7970_v11  ;;  %v479_v11 = vld [vmem:[%s7191_s30 + $0x570] sm:$0xff] }
 0x196   : > { %v3496_v22 = vadd.f32 %v3495_v5, %v3476_v58  ;;  %4873 = vmatpush.xpose.msra.mxu2 %v475_v54  ;;  %4833 = vmatpush.xpose.msra.mxu0 %v473_v55  ;;  %v8089_v54 = vld.sshfl [vmem:[#allocation1 + $0x30] sm:$0xff pattern:$0x73625140]  ;;  %v8091_v55 = vld.sshfl [vmem:[#allocation1 + $0x20] sm:$0xff pattern:$0x73625140] }
 0x197   : > { %v3515_v7 = vpop.f32.mrf.mxu2  ;;  %4893 = vmatpush.xpose.msra.mxu3 %v476_v17  ;;  %4853 = vmatpush.xpose.msra.mxu1 %v474_v19  ;;  %v485_v58 = vld [vmem:[%s7191_s30 + $0x5a0] sm:$0xff]  ;;  %v290_v19 = vld [vmem:[%s7185_s5 + $0x188] sm:$0xff] }
 0x198   : > { %v3516_v50 = vadd.f32 %v3515_v7, %v3496_v22  ;;  %v3535_v2 = vpop.f32.mrf.mxu3  ;;  %v8096_v17 = vld.sshfl [vmem:[#allocation1 + $0x28] sm:$0xff pattern:$0x73625140]  ;;  %v486_v22 = vld [vmem:[%s7191_s30 + $0x5a8] sm:$0xff] }
 0x199   : > { %v3555_v10 = vpop.f32.mrf.mxu0  ;;  %1123 = vst [vmem:[#allocation1 + $0x20] ss:$4 sm:$0xff] %v290_v19  ;;  %v8114_v41 = vld.sshfl [vmem:[#allocation1 + $0x18] sm:$0xff pattern:$0x73625140] }
 0x19a   : > { %4952 = vmatpush.xpose.msrb.mxu2 %v735_v61  ;;  %4912 = vmatpush.xpose.msrb.mxu0 %v733_v20  ;;  %v3536_v25 = vadd.f32 %v3535_v2, %v3516_v50  ;;  %v3575_v26 = vpop.f32.mrf.mxu1  ;;  %v488_v20 = vld [vmem:[%s7191_s30 + $0x5b8] sm:$0xff]  ;;  %v746_v2 = vld [vmem:[%s7191_s30 + $0xdc8] sm:$0x3] }
 0x19b   : > { %4972 = vmatpush.xpose.msrb.mxu3 %v736_v0  ;;  %4932 = vmatpush.xpose.msrb.mxu1 %v734_v3  ;;  %v747_v0 = vld [vmem:[%s7191_s30 + $0xdd0] sm:$0x3]  ;;  %v745_v3 = vld [vmem:[%s7191_s30 + $0xdc0] sm:$0x3]  ;;  %v748_v50 = vld [vmem:[%s7191_s30 + $0xdd8] sm:$0x3] }
 0x19c   : > { %v3556_v15 = vadd.f32 %v3555_v10, %v3536_v25  ;;  %4874 = vmatmul.f32.vlgmr.msra.gmra.mxu2 %v7984_v6  ;;  %4834 = vmatmul.f32.vlgmr.msra.gmra.mxu0 %v7986_v23 }
 0x19d   : > { %4894 = vmatmul.f32.vlgmr.msra.gmra.mxu3 %v7988_v31  ;;  %4854 = vmatmul.f32.vlgmr.msra.gmra.mxu1 %v7991_v32  ;;  %v483_v32 = vld [vmem:[%s7191_s30 + $0x590] sm:$0xff] }
 0x19e   : > { %v3576_v36 = vadd.f32 %v3575_v26, %v3556_v15  ;;  %4953 = vmatpush.xpose.msrb.mxu2 %v479_v11  ;;  %4913 = vmatpush.xpose.msrb.mxu0 %v477_v12  ;;  %v8110_v11 = vld.sshfl [vmem:[#allocation1 + $0x10] sm:$0xff pattern:$0x73625140]  ;;  %v8112_v12 = vld.sshfl [vmem:[#allocation1] sm:$0xff pattern:$0x73625140] }
 0x19f   : > { %v3595_v28 = vpop.f32.mrf.mxu2  ;;  %4973 = vmatpush.xpose.msrb.mxu3 %v480_v42  ;;  %4933 = vmatpush.xpose.msrb.mxu1 %v478_v44  ;;  %v489_v15 = vld [vmem:[%s7191_s30 + $0x5c0] sm:$0xff]  ;;  %v291_v44 = vld [vmem:[%s7185_s5 + $0x190] sm:$0xff] }
 0x1a0   : > { %v3596_v6 = vadd.f32 %v3595_v28, %v3576_v36  ;;  %v3615_v23 = vpop.f32.mrf.mxu3  ;;  %v8117_v42 = vld.sshfl [vmem:[#allocation1 + $0x8] sm:$0xff pattern:$0x73625140]  ;;  %v490_v36 = vld [vmem:[%s7191_s30 + $0x5c8] sm:$0xff] }
 0x1a1   : > { %v3635_v31 = vpop.f32.mrf.mxu0  ;;  %1132 = vst [vmem:[#allocation1] ss:$4 sm:$0xff] %v291_v44  ;;  %v8135_v62 = vld.sshfl [vmem:[#allocation1 + $0x38] sm:$0xff pattern:$0x73625140] }
 0x1a2   : > { %5032 = vmatpush.xpose.msra.mxu2 %v739_v18  ;;  %4992 = vmatpush.xpose.msra.mxu0 %v737_v34  ;;  %v3616_v46 = vadd.f32 %v3615_v23, %v3596_v6  ;;  %v3655_v47 = vpop.f32.mrf.mxu1  ;;  %v492_v34 = vld [vmem:[%s7191_s30 + $0x5d8] sm:$0xff]  ;;  %v750_v23 = vld [vmem:[%s7191_s30 + $0xde8] sm:$0x3] }
 0x1a3   : > { %5052 = vmatpush.xpose.msra.mxu3 %v740_v21  ;;  %5012 = vmatpush.xpose.msra.mxu1 %v738_v24  ;;  %v751_v21 = vld [vmem:[%s7191_s30 + $0xdf0] sm:$0x3]  ;;  %v749_v24 = vld [vmem:[%s7191_s30 + $0xde0] sm:$0x3]  ;;  %v752_v6 = vld [vmem:[%s7191_s30 + $0xdf8] sm:$0x3] }
 0x1a4   : > { %v3636_v40 = vadd.f32 %v3635_v31, %v3616_v46  ;;  %4954 = vmatmul.f32.vlgmr.msrb.gmra.mxu2 %v8005_v27  ;;  %4914 = vmatmul.f32.vlgmr.msrb.gmra.mxu0 %v8007_v38 }
 0x1a5   : > { %4974 = vmatmul.f32.vlgmr.msrb.gmra.mxu3 %v8009_v56  ;;  %4934 = vmatmul.f32.vlgmr.msrb.gmra.mxu1 %v8012_v57  ;;  %v487_v57 = vld [vmem:[%s7191_s30 + $0x5b0] sm:$0xff] }
 0x1a6   : > { %v3656_v51 = vadd.f32 %v3655_v47, %v3636_v40  ;;  %5033 = vmatpush.xpose.msra.mxu2 %v483_v32  ;;  %4993 = vmatpush.xpose.msra.mxu0 %v481_v33  ;;  %v8131_v32 = vld.sshfl [vmem:[#allocation1 + $0x30] sm:$0xff pattern:$0x73625140]  ;;  %v8133_v33 = vld.sshfl [vmem:[#allocation1 + $0x20] sm:$0xff pattern:$0x73625140] }
 0x1a7   : > { %v3675_v52 = vpop.f32.mrf.mxu2  ;;  %5053 = vmatpush.xpose.msra.mxu3 %v484_v63  ;;  %5013 = vmatpush.xpose.msra.mxu1 %v482_v1  ;;  %v493_v40 = vld [vmem:[%s7191_s30 + $0x5e0] sm:$0xff]  ;;  %v292_v1 = vld [vmem:[%s7185_s5 + $0x198] sm:$0xff] }
 0x1a8   : > { %v3676_v27 = vadd.f32 %v3675_v52, %v3656_v51  ;;  %v3695_v38 = vpop.f32.mrf.mxu3  ;;  %v8138_v63 = vld.sshfl [vmem:[#allocation1 + $0x28] sm:$0xff pattern:$0x73625140]  ;;  %v494_v51 = vld [vmem:[%s7191_s30 + $0x5e8] sm:$0xff] }
 0x1a9   : > { %v3715_v56 = vpop.f32.mrf.mxu0  ;;  %1133 = vst [vmem:[#allocation1 + $0x20] ss:$4 sm:$0xff] %v292_v1  ;;  %v8156_v19 = vld.sshfl [vmem:[#allocation1 + $0x18] sm:$0xff pattern:$0x73625140] }
 0x1aa   : > { %5112 = vmatpush.xpose.msrb.mxu2 %v743_v43  ;;  %5072 = vmatpush.xpose.msrb.mxu0 %v741_v48  ;;  %v3696_v4 = vadd.f32 %v3695_v38, %v3676_v27  ;;  %v3735_v5 = vpop.f32.mrf.mxu1  ;;  %v496_v48 = vld [vmem:[%s7191_s30 + $0x5f8] sm:$0xff]  ;;  %v754_v38 = vld [vmem:[%s7191_s30 + $0xe08] sm:$0x3] }
 0x1ab   : > { %5132 = vmatpush.xpose.msrb.mxu3 %v744_v35  ;;  %5092 = vmatpush.xpose.msrb.mxu1 %v742_v45  ;;  %v755_v35 = vld [vmem:[%s7191_s30 + $0xe10] sm:$0x3]  ;;  %v753_v45 = vld [vmem:[%s7191_s30 + $0xe00] sm:$0x3]  ;;  %v756_v27 = vld [vmem:[%s7191_s30 + $0xe18] sm:$0x3] }
 0x1ac   : > { %v3716_v61 = vadd.f32 %v3715_v56, %v3696_v4  ;;  %5034 = vmatmul.f32.vlgmr.msra.gmra.mxu2 %v8026_v49  ;;  %4994 = vmatmul.f32.vlgmr.msra.gmra.mxu0 %v8028_v53 }
 0x1ad   : > { %5054 = vmatmul.f32.vlgmr.msra.gmra.mxu3 %v8030_v13  ;;  %5014 = vmatmul.f32.vlgmr.msra.gmra.mxu1 %v8033_v14  ;;  %v491_v14 = vld [vmem:[%s7191_s30 + $0x5d0] sm:$0xff] }
 0x1ae   : > { %v3736_v7 = vadd.f32 %v3735_v5, %v3716_v61  ;;  %5113 = vmatpush.xpose.msrb.mxu2 %v487_v57  ;;  %5073 = vmatpush.xpose.msrb.mxu0 %v485_v58  ;;  %v8152_v57 = vld.sshfl [vmem:[#allocation1 + $0x10] sm:$0xff pattern:$0x73625140]  ;;  %v8154_v58 = vld.sshfl [vmem:[#allocation1] sm:$0xff pattern:$0x73625140] }
 0x1af   : > { %v3755_v10 = vpop.f32.mrf.mxu2  ;;  %5133 = vmatpush.xpose.msrb.mxu3 %v488_v20  ;;  %5093 = vmatpush.xpose.msrb.mxu1 %v486_v22  ;;  %v497_v61 = vld [vmem:[%s7191_s30 + $0x600] sm:$0xff] }
 0x1b0   : > { %v3756_v49 = vadd.f32 %v3755_v10, %v3736_v7  ;;  %v3775_v53 = vpop.f32.mrf.mxu3  ;;  %v8159_v20 = vld.sshfl [vmem:[#allocation1 + $0x8] sm:$0xff pattern:$0x73625140]  ;;  %v498_v7 = vld [vmem:[%s7191_s30 + $0x608] sm:$0xff] }
 0x1b1   : > { %v3795_v13 = vpop.f32.mrf.mxu0  ;;  %v293_v22 = vld [vmem:[%s7185_s5 + $0x1a0] sm:$0xff]  ;;  %v8177_v44 = vld.sshfl [vmem:[#allocation1 + $0x38] sm:$0xff pattern:$0x73625140] }
 0x1b2   : > { %5192 = vmatpush.xpose.msra.mxu2 %v747_v0  ;;  %5152 = vmatpush.xpose.msra.mxu0 %v745_v3  ;;  %v3776_v25 = vadd.f32 %v3775_v53, %v3756_v49  ;;  %v3815_v26 = vpop.f32.mrf.mxu1  ;;  %v500_v3 = vld [vmem:[%s7191_s30 + $0x618] sm:$0xff]  ;;  %1142 = vst [vmem:[#allocation1] ss:$4 sm:$0xff] %v293_v22  ;;  %v758_v53 = vld [vmem:[%s7191_s30 + $0xe28] sm:$0x3] }
 0x1b3   : > { %5212 = vmatpush.xpose.msra.mxu3 %v748_v50  ;;  %5172 = vmatpush.xpose.msra.mxu1 %v746_v2  ;;  %v759_v50 = vld [vmem:[%s7191_s30 + $0xe30] sm:$0x3]  ;;  %v757_v2 = vld [vmem:[%s7191_s30 + $0xe20] sm:$0x3]  ;;  %v760_v49 = vld [vmem:[%s7191_s30 + $0xe38] sm:$0x3] }
 0x1b4   : > { %v3796_v18 = vadd.f32 %v3795_v13, %v3776_v25  ;;  %5114 = vmatmul.f32.vlgmr.msrb.gmra.mxu2 %v8047_v8  ;;  %5074 = vmatmul.f32.vlgmr.msrb.gmra.mxu0 %v8049_v9 }
 0x1b5   : > { %5134 = vmatmul.f32.vlgmr.msrb.gmra.mxu3 %v8051_v37  ;;  %5094 = vmatmul.f32.vlgmr.msrb.gmra.mxu1 %v8054_v39  ;;  %v495_v39 = vld [vmem:[%s7191_s30 + $0x5f0] sm:$0xff] }
 0x1b6   : > { %v3816_v28 = vadd.f32 %v3815_v26, %v3796_v18  ;;  %5193 = vmatpush.xpose.msra.mxu2 %v491_v14  ;;  %5153 = vmatpush.xpose.msra.mxu0 %v489_v15  ;;  %v8173_v14 = vld.sshfl [vmem:[#allocation1 + $0x30] sm:$0xff pattern:$0x73625140]  ;;  %v8175_v15 = vld.sshfl [vmem:[#allocation1 + $0x20] sm:$0xff pattern:$0x73625140] }
 0x1b7   : > { %v3835_v31 = vpop.f32.mrf.mxu2  ;;  %5213 = vmatpush.xpose.msra.mxu3 %v492_v34  ;;  %5173 = vmatpush.xpose.msra.mxu1 %v490_v36  ;;  %v501_v18 = vld [vmem:[%s7191_s30 + $0x620] sm:$0xff]  ;;  %v294_v36 = vld [vmem:[%s7185_s5 + $0x1a8] sm:$0xff] }
 0x1b8   : > { %v3836_v8 = vadd.f32 %v3835_v31, %v3816_v28  ;;  %v3855_v9 = vpop.f32.mrf.mxu3  ;;  %v8180_v34 = vld.sshfl [vmem:[#allocation1 + $0x28] sm:$0xff pattern:$0x73625140]  ;;  %v502_v28 = vld [vmem:[%s7191_s30 + $0x628] sm:$0xff] }
 0x1b9   : > { %v3875_v37 = vpop.f32.mrf.mxu0  ;;  %1143 = vst [vmem:[#allocation1 + $0x20] ss:$4 sm:$0xff] %v294_v36  ;;  %v8198_v1 = vld.sshfl [vmem:[#allocation1 + $0x18] sm:$0xff pattern:$0x73625140] }
 0x1ba   : > { %5272 = vmatpush.xpose.msrb.mxu2 %v751_v21  ;;  %5232 = vmatpush.xpose.msrb.mxu0 %v749_v24  ;;  %v3856_v46 = vadd.f32 %v3855_v9, %v3836_v8  ;;  %v3895_v47 = vpop.f32.mrf.mxu1  ;;  %v504_v24 = vld [vmem:[%s7191_s30 + $0x638] sm:$0xff]  ;;  %v762_v9 = vld [vmem:[%s7191_s30 + $0xe48] sm:$0x3] }
 0x1bb   : > { %5292 = vmatpush.xpose.msrb.mxu3 %v752_v6  ;;  %5252 = vmatpush.xpose.msrb.mxu1 %v750_v23  ;;  %v763_v6 = vld [vmem:[%s7191_s30 + $0xe50] sm:$0x3]  ;;  %v761_v23 = vld [vmem:[%s7191_s30 + $0xe40] sm:$0x3]  ;;  %v764_v8 = vld [vmem:[%s7191_s30 + $0xe58] sm:$0x3] }
 0x1bc   : > { %v3876_v43 = vadd.f32 %v3875_v37, %v3856_v46  ;;  %5194 = vmatmul.f32.vlgmr.msra.gmra.mxu2 %v8068_v29  ;;  %5154 = vmatmul.f32.vlgmr.msra.gmra.mxu0 %v8070_v30 }
 0x1bd   : > { %5214 = vmatmul.f32.vlgmr.msra.gmra.mxu3 %v8072_v59  ;;  %5174 = vmatmul.f32.vlgmr.msra.gmra.mxu1 %v8075_v60  ;;  %v499_v60 = vld [vmem:[%s7191_s30 + $0x610] sm:$0xff] }
 0x1be   : > { %v3896_v52 = vadd.f32 %v3895_v47, %v3876_v43  ;;  %5273 = vmatpush.xpose.msrb.mxu2 %v495_v39  ;;  %5233 = vmatpush.xpose.msrb.mxu0 %v493_v40  ;;  %v8194_v39 = vld.sshfl [vmem:[#allocation1 + $0x10] sm:$0xff pattern:$0x73625140]  ;;  %v8196_v40 = vld.sshfl [vmem:[#allocation1] sm:$0xff pattern:$0x73625140] }
 0x1bf   : > { %v3915_v56 = vpop.f32.mrf.mxu2  ;;  %5293 = vmatpush.xpose.msrb.mxu3 %v496_v48  ;;  %5253 = vmatpush.xpose.msrb.mxu1 %v494_v51  ;;  %v505_v43 = vld [vmem:[%s7191_s30 + $0x640] sm:$0xff]  ;;  %v295_v51 = vld [vmem:[%s7185_s5 + $0x1b0] sm:$0xff] }
 0x1c0   : > { %v3916_v29 = vadd.f32 %v3915_v56, %v3896_v52  ;;  %v3935_v30 = vpop.f32.mrf.mxu3  ;;  %v8201_v48 = vld.sshfl [vmem:[#allocation1 + $0x8] sm:$0xff pattern:$0x73625140]  ;;  %v506_v52 = vld [vmem:[%s7191_s30 + $0x648] sm:$0xff] }
 0x1c1   : > { %v3955_v59 = vpop.f32.mrf.mxu0  ;;  %1152 = vst [vmem:[#allocation1] ss:$4 sm:$0xff] %v295_v51  ;;  %v8219_v22 = vld.sshfl [vmem:[#allocation1 + $0x38] sm:$0xff pattern:$0x73625140] }
 0x1c2   : > { %5352 = vmatpush.xpose.msra.mxu2 %v755_v35  ;;  %5312 = vmatpush.xpose.msra.mxu0 %v753_v45  ;;  %v3936_v4 = vadd.f32 %v3935_v30, %v3916_v29  ;;  %v3975_v5 = vpop.f32.mrf.mxu1  ;;  %v508_v45 = vld [vmem:[%s7191_s30 + $0x658] sm:$0xff]  ;;  %v766_v30 = vld [vmem:[%s7191_s30 + $0xe68] sm:$0x3] }
 0x1c3   : > { %5372 = vmatpush.xpose.msra.mxu3 %v756_v27  ;;  %5332 = vmatpush.xpose.msra.mxu1 %v754_v38  ;;  %v767_v27 = vld [vmem:[%s7191_s30 + $0xe70] sm:$0x3]  ;;  %v765_v38 = vld [vmem:[%s7191_s30 + $0xe60] sm:$0x3]  ;;  %v768_v29 = vld [vmem:[%s7191_s30 + $0xe78] sm:$0x3] }
 0x1c4   : > { %v3956_v0 = vadd.f32 %v3955_v59, %v3936_v4  ;;  %5274 = vmatmul.f32.vlgmr.msrb.gmra.mxu2 %v8089_v54  ;;  %5234 = vmatmul.f32.vlgmr.msrb.gmra.mxu0 %v8091_v55 }
 0x1c5   : > { %5294 = vmatmul.f32.vlgmr.msrb.gmra.mxu3 %v8093_v16  ;;  %5254 = vmatmul.f32.vlgmr.msrb.gmra.mxu1 %v8096_v17  ;;  %v503_v17 = vld [vmem:[%s7191_s30 + $0x630] sm:$0xff] }
 0x1c6   : > { %v3976_v10 = vadd.f32 %v3975_v5, %v3956_v0  ;;  %5353 = vmatpush.xpose.msra.mxu2 %v499_v60  ;;  %5313 = vmatpush.xpose.msra.mxu0 %v497_v61  ;;  %v8215_v60 = vld.sshfl [vmem:[#allocation1 + $0x30] sm:$0xff pattern:$0x73625140]  ;;  %v8217_v61 = vld.sshfl [vmem:[#allocation1 + $0x20] sm:$0xff pattern:$0x73625140] }
 0x1c7   : > { %v3995_v13 = vpop.f32.mrf.mxu2  ;;  %5373 = vmatpush.xpose.msra.mxu3 %v500_v3  ;;  %5333 = vmatpush.xpose.msra.mxu1 %v498_v7  ;;  %v509_v0 = vld [vmem:[%s7191_s30 + $0x660] sm:$0xff]  ;;  %v296_v7 = vld [vmem:[%s7185_s5 + $0x1b8] sm:$0xff] }
 0x1c8   : > { %v3996_v54 = vadd.f32 %v3995_v13, %v3976_v10  ;;  %v4015_v55 = vpop.f32.mrf.mxu3  ;;  %v8222_v3 = vld.sshfl [vmem:[#allocation1 + $0x28] sm:$0xff pattern:$0x73625140]  ;;  %v510_v10 = vld [vmem:[%s7191_s30 + $0x668] sm:$0xff] }
 0x1c9   : > { %v4035_v16 = vpop.f32.mrf.mxu0  ;;  %1153 = vst [vmem:[#allocation1 + $0x20] ss:$4 sm:$0xff] %v296_v7  ;;  %v8240_v36 = vld.sshfl [vmem:[#allocation1 + $0x18] sm:$0xff pattern:$0x73625140] }
 0x1ca   : > { %5432 = vmatpush.xpose.msrb.mxu2 %v759_v50  ;;  %5392 = vmatpush.xpose.msrb.mxu0 %v757_v2  ;;  %v4016_v25 = vadd.f32 %v4015_v55, %v3996_v54  ;;  %v4055_v26 = vpop.f32.mrf.mxu1  ;;  %v512_v2 = vld [vmem:[%s7191_s30 + $0x678] sm:$0xff]  ;;  %v770_v55 = vld [vmem:[%s7191_s30 + $0xe88] sm:$0x3] }
 0x1cb   : > { %5452 = vmatpush.xpose.msrb.mxu3 %v760_v49  ;;  %5412 = vmatpush.xpose.msrb.mxu1 %v758_v53  ;;  %v771_v49 = vld [vmem:[%s7191_s30 + $0xe90] sm:$0x3]  ;;  %v769_v53 = vld [vmem:[%s7191_s30 + $0xe80] sm:$0x3]  ;;  %v772_v54 = vld [vmem:[%s7191_s30 + $0xe98] sm:$0x3] }
 0x1cc   : > { %v4036_v21 = vadd.f32 %v4035_v16, %v4016_v25  ;;  %5354 = vmatmul.f32.vlgmr.msra.gmra.mxu2 %v8110_v11  ;;  %5314 = vmatmul.f32.vlgmr.msra.gmra.mxu0 %v8112_v12 }
 0x1cd   : > { %5374 = vmatmul.f32.vlgmr.msra.gmra.mxu3 %v8114_v41  ;;  %5334 = vmatmul.f32.vlgmr.msra.gmra.mxu1 %v8117_v42  ;;  %v507_v42 = vld [vmem:[%s7191_s30 + $0x650] sm:$0xff] }
 0x1ce   : > { %v4056_v31 = vadd.f32 %v4055_v26, %v4036_v21  ;;  %5433 = vmatpush.xpose.msrb.mxu2 %v503_v17  ;;  %5393 = vmatpush.xpose.msrb.mxu0 %v501_v18  ;;  %v8236_v17 = vld.sshfl [vmem:[#allocation1 + $0x10] sm:$0xff pattern:$0x73625140]  ;;  %v8238_v18 = vld.sshfl [vmem:[#allocation1] sm:$0xff pattern:$0x73625140] }
 0x1cf   : > { %v4075_v37 = vpop.f32.mrf.mxu2  ;;  %5453 = vmatpush.xpose.msrb.mxu3 %v504_v24  ;;  %5413 = vmatpush.xpose.msrb.mxu1 %v502_v28  ;;  %v513_v21 = vld [vmem:[%s7191_s30 + $0x680] sm:$0xff] }
 0x1d0   : > { %v4076_v11 = vadd.f32 %v4075_v37, %v4056_v31  ;;  %v4095_v12 = vpop.f32.mrf.mxu3  ;;  %v8243_v24 = vld.sshfl [vmem:[#allocation1 + $0x8] sm:$0xff pattern:$0x73625140]  ;;  %v514_v31 = vld [vmem:[%s7191_s30 + $0x688] sm:$0xff] }
 0x1d1   : > { %v4115_v41 = vpop.f32.mrf.mxu0  ;;  %v297_v28 = vld [vmem:[%s7185_s5 + $0x1c0] sm:$0xff]  ;;  %v8261_v51 = vld.sshfl [vmem:[#allocation1 + $0x38] sm:$0xff pattern:$0x73625140] }
 0x1d2   : > { %5512 = vmatpush.xpose.msra.mxu2 %v763_v6  ;;  %5472 = vmatpush.xpose.msra.mxu0 %v761_v23  ;;  %v4096_v46 = vadd.f32 %v4095_v12, %v4076_v11  ;;  %v4135_v47 = vpop.f32.mrf.mxu1  ;;  %v516_v23 = vld [vmem:[%s7191_s30 + $0x698] sm:$0xff]  ;;  %1162 = vst [vmem:[#allocation1] ss:$4 sm:$0xff] %v297_v28  ;;  %v774_v12 = vld [vmem:[%s7191_s30 + $0xea8] sm:$0x3] }
 0x1d3   : > { %5532 = vmatpush.xpose.msra.mxu3 %v764_v8  ;;  %5492 = vmatpush.xpose.msra.mxu1 %v762_v9  ;;  %v775_v8 = vld [vmem:[%s7191_s30 + $0xeb0] sm:$0x3]  ;;  %v773_v9 = vld [vmem:[%s7191_s30 + $0xea0] sm:$0x3]  ;;  %v776_v11 = vld [vmem:[%s7191_s30 + $0xeb8] sm:$0x3] }
 0x1d4   : > { %v4116_v35 = vadd.f32 %v4115_v41, %v4096_v46  ;;  %5434 = vmatmul.f32.vlgmr.msrb.gmra.mxu2 %v8131_v32  ;;  %5394 = vmatmul.f32.vlgmr.msrb.gmra.mxu0 %v8133_v33 }
 0x1d5   : > { %5454 = vmatmul.f32.vlgmr.msrb.gmra.mxu3 %v8135_v62  ;;  %5414 = vmatmul.f32.vlgmr.msrb.gmra.mxu1 %v8138_v63  ;;  %v511_v63 = vld [vmem:[%s7191_s30 + $0x670] sm:$0xff] }
 0x1d6   : > { %v4136_v56 = vadd.f32 %v4135_v47, %v4116_v35  ;;  %5513 = vmatpush.xpose.msra.mxu2 %v507_v42  ;;  %5473 = vmatpush.xpose.msra.mxu0 %v505_v43  ;;  %v8257_v42 = vld.sshfl [vmem:[#allocation1 + $0x30] sm:$0xff pattern:$0x73625140]  ;;  %v8259_v43 = vld.sshfl [vmem:[#allocation1 + $0x20] sm:$0xff pattern:$0x73625140] }
 0x1d7   : > { %v4155_v59 = vpop.f32.mrf.mxu2  ;;  %5533 = vmatpush.xpose.msra.mxu3 %v508_v45  ;;  %5493 = vmatpush.xpose.msra.mxu1 %v506_v52  ;;  %v517_v35 = vld [vmem:[%s7191_s30 + $0x6a0] sm:$0xff]  ;;  %v298_v52 = vld [vmem:[%s7185_s5 + $0x1c8] sm:$0xff] }
 0x1d8   : > { %v4156_v32 = vadd.f32 %v4155_v59, %v4136_v56  ;;  %v4175_v33 = vpop.f32.mrf.mxu3  ;;  %v8264_v45 = vld.sshfl [vmem:[#allocation1 + $0x28] sm:$0xff pattern:$0x73625140]  ;;  %v518_v56 = vld [vmem:[%s7191_s30 + $0x6a8] sm:$0xff] }
 0x1d9   : > { %v4195_v62 = vpop.f32.mrf.mxu0  ;;  %1163 = vst [vmem:[#allocation1 + $0x20] ss:$4 sm:$0xff] %v298_v52  ;;  %v8282_v7 = vld.sshfl [vmem:[#allocation1 + $0x18] sm:$0xff pattern:$0x73625140] }
 0x1da   : > { %5592 = vmatpush.xpose.msrb.mxu2 %v767_v27  ;;  %5552 = vmatpush.xpose.msrb.mxu0 %v765_v38  ;;  %v4176_v4 = vadd.f32 %v4175_v33, %v4156_v32  ;;  %v4215_v5 = vpop.f32.mrf.mxu1  ;;  %v520_v38 = vld [vmem:[%s7191_s30 + $0x6b8] sm:$0xff]  ;;  %v778_v33 = vld [vmem:[%s7191_s30 + $0xec8] sm:$0x3] }
 0x1db   : > { %5612 = vmatpush.xpose.msrb.mxu3 %v768_v29  ;;  %5572 = vmatpush.xpose.msrb.mxu1 %v766_v30  ;;  %v779_v29 = vld [vmem:[%s7191_s30 + $0xed0] sm:$0x3]  ;;  %v777_v30 = vld [vmem:[%s7191_s30 + $0xec0] sm:$0x3]  ;;  %v780_v32 = vld [vmem:[%s7191_s30 + $0xed8] sm:$0x3] }
 0x1dc   : > { %v4196_v50 = vadd.f32 %v4195_v62, %v4176_v4  ;;  %5514 = vmatmul.f32.vlgmr.msra.gmra.mxu2 %v8152_v57  ;;  %5474 = vmatmul.f32.vlgmr.msra.gmra.mxu0 %v8154_v58 }
 0x1dd   : > { %5534 = vmatmul.f32.vlgmr.msra.gmra.mxu3 %v8156_v19  ;;  %5494 = vmatmul.f32.vlgmr.msra.gmra.mxu1 %v8159_v20  ;;  %v515_v20 = vld [vmem:[%s7191_s30 + $0x690] sm:$0xff] }
 0x1de   : > { %v4216_v13 = vadd.f32 %v4215_v5, %v4196_v50  ;;  %5593 = vmatpush.xpose.msrb.mxu2 %v511_v63  ;;  %5553 = vmatpush.xpose.msrb.mxu0 %v509_v0  ;;  %v8278_v63 = vld.sshfl [vmem:[#allocation1 + $0x10] sm:$0xff pattern:$0x73625140]  ;;  %v8280_v0 = vld.sshfl [vmem:[#allocation1] sm:$0xff pattern:$0x73625140] }
 0x1df   : > { %v4235_v16 = vpop.f32.mrf.mxu2  ;;  %5613 = vmatpush.xpose.msrb.mxu3 %v512_v2  ;;  %5573 = vmatpush.xpose.msrb.mxu1 %v510_v10  ;;  %v521_v50 = vld [vmem:[%s7191_s30 + $0x6c0] sm:$0xff]  ;;  %v299_v10 = vld [vmem:[%s7185_s5 + $0x1d0] sm:$0xff] }
 0x1e0   : > { %v4236_v57 = vadd.f32 %v4235_v16, %v4216_v13  ;;  %v4255_v58 = vpop.f32.mrf.mxu3  ;;  %v8285_v2 = vld.sshfl [vmem:[#allocation1 + $0x8] sm:$0xff pattern:$0x73625140]  ;;  %v522_v13 = vld [vmem:[%s7191_s30 + $0x6c8] sm:$0xff] }
 0x1e1   : > { %v4275_v19 = vpop.f32.mrf.mxu0  ;;  %1172 = vst [vmem:[#allocation1] ss:$4 sm:$0xff] %v299_v10  ;;  %v8303_v28 = vld.sshfl [vmem:[#allocation1 + $0x38] sm:$0xff pattern:$0x73625140] }
 0x1e2   : > { %5672 = vmatpush.xpose.msra.mxu2 %v771_v49  ;;  %5632 = vmatpush.xpose.msra.mxu0 %v769_v53  ;;  %v4256_v25 = vadd.f32 %v4255_v58, %v4236_v57  ;;  %v4295_v26 = vpop.f32.mrf.mxu1  ;;  %v524_v53 = vld [vmem:[%s7191_s30 + $0x6d8] sm:$0xff]  ;;  %v782_v58 = vld [vmem:[%s7191_s30 + $0xee8] sm:$0x3] }
 0x1e3   : > { %5692 = vmatpush.xpose.msra.mxu3 %v772_v54  ;;  %5652 = vmatpush.xpose.msra.mxu1 %v770_v55  ;;  %v783_v54 = vld [vmem:[%s7191_s30 + $0xef0] sm:$0x3]  ;;  %v781_v55 = vld [vmem:[%s7191_s30 + $0xee0] sm:$0x3]  ;;  %v784_v57 = vld [vmem:[%s7191_s30 + $0xef8] sm:$0x3] }
 0x1e4   : > { %v4276_v6 = vadd.f32 %v4275_v19, %v4256_v25  ;;  %5594 = vmatmul.f32.vlgmr.msrb.gmra.mxu2 %v8173_v14  ;;  %5554 = vmatmul.f32.vlgmr.msrb.gmra.mxu0 %v8175_v15 }
 0x1e5   : > { %5614 = vmatmul.f32.vlgmr.msrb.gmra.mxu3 %v8177_v44  ;;  %5574 = vmatmul.f32.vlgmr.msrb.gmra.mxu1 %v8180_v34  ;;  %v519_v34 = vld [vmem:[%s7191_s30 + $0x6b0] sm:$0xff] }
 0x1e6   : > { %v4296_v37 = vadd.f32 %v4295_v26, %v4276_v6  ;;  %5673 = vmatpush.xpose.msra.mxu2 %v515_v20  ;;  %5633 = vmatpush.xpose.msra.mxu0 %v513_v21  ;;  %v8299_v20 = vld.sshfl [vmem:[#allocation1 + $0x30] sm:$0xff pattern:$0x73625140]  ;;  %v8301_v21 = vld.sshfl [vmem:[#allocation1 + $0x20] sm:$0xff pattern:$0x73625140] }
 0x1e7   : > { %v4315_v41 = vpop.f32.mrf.mxu2  ;;  %5693 = vmatpush.xpose.msra.mxu3 %v516_v23  ;;  %5653 = vmatpush.xpose.msra.mxu1 %v514_v31  ;;  %v525_v6 = vld [vmem:[%s7191_s30 + $0x6e0] sm:$0xff]  ;;  %v300_v31 = vld [vmem:[%s7185_s5 + $0x1d8] sm:$0xff] }
 0x1e8   : > { %v4316_v14 = vadd.f32 %v4315_v41, %v4296_v37  ;;  %v4335_v15 = vpop.f32.mrf.mxu3  ;;  %v8306_v23 = vld.sshfl [vmem:[#allocation1 + $0x28] sm:$0xff pattern:$0x73625140]  ;;  %v526_v37 = vld [vmem:[%s7191_s30 + $0x6e8] sm:$0xff] }
 0x1e9   : > { %v4355_v44 = vpop.f32.mrf.mxu0  ;;  %1173 = vst [vmem:[#allocation1 + $0x20] ss:$4 sm:$0xff] %v300_v31  ;;  %v8324_v52 = vld.sshfl [vmem:[#allocation1 + $0x18] sm:$0xff pattern:$0x73625140] }
 0x1ea   : > { %5752 = vmatpush.xpose.msrb.mxu2 %v775_v8  ;;  %5712 = vmatpush.xpose.msrb.mxu0 %v773_v9  ;;  %v4336_v46 = vadd.f32 %v4335_v15, %v4316_v14  ;;  %v4375_v47 = vpop.f32.mrf.mxu1  ;;  %v528_v9 = vld [vmem:[%s7191_s30 + $0x6f8] sm:$0xff]  ;;  %v786_v15 = vld [vmem:[%s7191_s30 + $0xf08] sm:$0x3] }
 0x1eb   : > { %5772 = vmatpush.xpose.msrb.mxu3 %v776_v11  ;;  %5732 = vmatpush.xpose.msrb.mxu1 %v774_v12  ;;  %v787_v11 = vld [vmem:[%s7191_s30 + $0xf10] sm:$0x3]  ;;  %v785_v12 = vld [vmem:[%s7191_s30 + $0xf00] sm:$0x3]  ;;  %v788_v14 = vld [vmem:[%s7191_s30 + $0xf18] sm:$0x3] }
 0x1ec   : > { %v4356_v27 = vadd.f32 %v4355_v44, %v4336_v46  ;;  %5674 = vmatmul.f32.vlgmr.msra.gmra.mxu2 %v8194_v39  ;;  %5634 = vmatmul.f32.vlgmr.msra.gmra.mxu0 %v8196_v40 }
 0x1ed   : > { %5694 = vmatmul.f32.vlgmr.msra.gmra.mxu3 %v8198_v1  ;;  %5654 = vmatmul.f32.vlgmr.msra.gmra.mxu1 %v8201_v48  ;;  %v523_v48 = vld [vmem:[%s7191_s30 + $0x6d0] sm:$0xff] }
 0x1ee   : > { %v4376_v59 = vadd.f32 %v4375_v47, %v4356_v27  ;;  %5753 = vmatpush.xpose.msrb.mxu2 %v519_v34  ;;  %5713 = vmatpush.xpose.msrb.mxu0 %v517_v35  ;;  %v8320_v34 = vld.sshfl [vmem:[#allocation1 + $0x10] sm:$0xff pattern:$0x73625140]  ;;  %v8322_v35 = vld.sshfl [vmem:[#allocation1] sm:$0xff pattern:$0x73625140] }
 0x1ef   : > { %v4395_v62 = vpop.f32.mrf.mxu2  ;;  %5773 = vmatpush.xpose.msrb.mxu3 %v520_v38  ;;  %5733 = vmatpush.xpose.msrb.mxu1 %v518_v56  ;;  %v529_v27 = vld [vmem:[%s7191_s30 + $0x700] sm:$0xff] }
 0x1f0   : > { %v4396_v39 = vadd.f32 %v4395_v62, %v4376_v59  ;;  %v4415_v40 = vpop.f32.mrf.mxu3  ;;  %v8327_v38 = vld.sshfl [vmem:[#allocation1 + $0x8] sm:$0xff pattern:$0x73625140]  ;;  %v530_v59 = vld [vmem:[%s7191_s30 + $0x708] sm:$0xff] }
 0x1f1   : > { %v4435_v1 = vpop.f32.mrf.mxu0  ;;  %v301_v56 = vld [vmem:[%s7185_s5 + $0x1e0] sm:$0xff]  ;;  %v8345_v10 = vld.sshfl [vmem:[#allocation1 + $0x38] sm:$0xff pattern:$0x73625140] }
 0x1f2   : > { %5832 = vmatpush.xpose.msra.mxu2 %v779_v29  ;;  %5792 = vmatpush.xpose.msra.mxu0 %v777_v30  ;;  %v4416_v4 = vadd.f32 %v4415_v40, %v4396_v39  ;;  %v4455_v5 = vpop.f32.mrf.mxu1  ;;  %v532_v30 = vld [vmem:[%s7191_s30 + $0x718] sm:$0xff]  ;;  %1182 = vst [vmem:[#allocation1] ss:$4 sm:$0xff] %v301_v56  ;;  %v790_v40 = vld [vmem:[%s7191_s30 + $0xf28] sm:$0x3] }
 0x1f3   : > { %5852 = vmatpush.xpose.msra.mxu3 %v780_v32  ;;  %5812 = vmatpush.xpose.msra.mxu1 %v778_v33  ;;  %v791_v32 = vld [vmem:[%s7191_s30 + $0xf30] sm:$0x3]  ;;  %v789_v33 = vld [vmem:[%s7191_s30 + $0xf20] sm:$0x3]  ;;  %v792_v39 = vld [vmem:[%s7191_s30 + $0xf38] sm:$0x3] }
 0x1f4   : > { %v4436_v49 = vadd.f32 %v4435_v1, %v4416_v4  ;;  %5754 = vmatmul.f32.vlgmr.msrb.gmra.mxu2 %v8215_v60  ;;  %5714 = vmatmul.f32.vlgmr.msrb.gmra.mxu0 %v8217_v61 }
 0x1f5   : > { %5774 = vmatmul.f32.vlgmr.msrb.gmra.mxu3 %v8219_v22  ;;  %5734 = vmatmul.f32.vlgmr.msrb.gmra.mxu1 %v8222_v3  ;;  %v527_v3 = vld [vmem:[%s7191_s30 + $0x6f0] sm:$0xff] }
 0x1f6   : > { %v4456_v16 = vadd.f32 %v4455_v5, %v4436_v49  ;;  %5833 = vmatpush.xpose.msra.mxu2 %v523_v48  ;;  %5793 = vmatpush.xpose.msra.mxu0 %v521_v50  ;;  %v8341_v48 = vld.sshfl [vmem:[#allocation1 + $0x30] sm:$0xff pattern:$0x73625140]  ;;  %v8343_v50 = vld.sshfl [vmem:[#allocation1 + $0x20] sm:$0xff pattern:$0x73625140] }
 0x1f7   : > { %v4475_v19 = vpop.f32.mrf.mxu2  ;;  %5853 = vmatpush.xpose.msra.mxu3 %v524_v53  ;;  %5813 = vmatpush.xpose.msra.mxu1 %v522_v13  ;;  %v533_v49 = vld [vmem:[%s7191_s30 + $0x720] sm:$0xff]  ;;  %v302_v13 = vld [vmem:[%s7185_s5 + $0x1e8] sm:$0xff] }
 0x1f8   : > { %v4476_v60 = vadd.f32 %v4475_v19, %v4456_v16  ;;  %v4495_v61 = vpop.f32.mrf.mxu3  ;;  %v8348_v53 = vld.sshfl [vmem:[#allocation1 + $0x28] sm:$0xff pattern:$0x73625140]  ;;  %v534_v16 = vld [vmem:[%s7191_s30 + $0x728] sm:$0xff] }
 0x1f9   : > { %v4515_v22 = vpop.f32.mrf.mxu0  ;;  %1183 = vst [vmem:[#allocation1 + $0x20] ss:$4 sm:$0xff] %v302_v13  ;;  %v8366_v31 = vld.sshfl [vmem:[#allocation1 + $0x18] sm:$0xff pattern:$0x73625140]  ;;  %v548_v13 = vld [vmem:[%s7191_s30 + $0x798] sm:$0xff] }
 0x1fa   : > { %5912 = vmatpush.xpose.msrb.mxu2 %v783_v54  ;;  %5872 = vmatpush.xpose.msrb.mxu0 %v781_v55  ;;  %v4496_v25 = vadd.f32 %v4495_v61, %v4476_v60  ;;  %v4535_v26 = vpop.f32.mrf.mxu1  ;;  %v536_v55 = vld [vmem:[%s7191_s30 + $0x738] sm:$0xff]  ;;  %v794_v61 = vld [vmem:[%s7191_s30 + $0xf48] sm:$0x3] }
 0x1fb   : > { %5932 = vmatpush.xpose.msrb.mxu3 %v784_v57  ;;  %5892 = vmatpush.xpose.msrb.mxu1 %v782_v58  ;;  %v795_v57 = vld [vmem:[%s7191_s30 + $0xf50] sm:$0x3]  ;;  %v793_v58 = vld [vmem:[%s7191_s30 + $0xf40] sm:$0x3]  ;;  %v796_v60 = vld [vmem:[%s7191_s30 + $0xf58] sm:$0x3] }
 0x1fc   : > { %v4516_v8 = vadd.f32 %v4515_v22, %v4496_v25  ;;  %5834 = vmatmul.f32.vlgmr.msra.gmra.mxu2 %v8236_v17  ;;  %5794 = vmatmul.f32.vlgmr.msra.gmra.mxu0 %v8238_v18 }
 0x1fd   : > { %5854 = vmatmul.f32.vlgmr.msra.gmra.mxu3 %v8240_v36  ;;  %5814 = vmatmul.f32.vlgmr.msra.gmra.mxu1 %v8243_v24  ;;  %v531_v24 = vld [vmem:[%s7191_s30 + $0x710] sm:$0xff] }
 0x1fe   : > { %v4536_v41 = vadd.f32 %v4535_v26, %v4516_v8  ;;  %5913 = vmatpush.xpose.msrb.mxu2 %v527_v3  ;;  %5873 = vmatpush.xpose.msrb.mxu0 %v525_v6  ;;  %v8362_v3 = vld.sshfl [vmem:[#allocation1 + $0x10] sm:$0xff pattern:$0x73625140]  ;;  %v8364_v6 = vld.sshfl [vmem:[#allocation1] sm:$0xff pattern:$0x73625140] }
 0x1ff   : > { %v4555_v44 = vpop.f32.mrf.mxu2  ;;  %5933 = vmatpush.xpose.msrb.mxu3 %v528_v9  ;;  %5893 = vmatpush.xpose.msrb.mxu1 %v526_v37  ;;  %v537_v8 = vld [vmem:[%s7191_s30 + $0x740] sm:$0xff]  ;;  %v303_v37 = vld [vmem:[%s7185_s5 + $0x1f0] sm:$0xff] }
 0x200   : > { %v4556_v17 = vadd.f32 %v4555_v44, %v4536_v41  ;;  %v4575_v18 = vpop.f32.mrf.mxu3  ;;  %v8369_v9 = vld.sshfl [vmem:[#allocation1 + $0x8] sm:$0xff pattern:$0x73625140]  ;;  %v538_v41 = vld [vmem:[%s7191_s30 + $0x748] sm:$0xff] }
 0x201   : > { %v4595_v36 = vpop.f32.mrf.mxu0  ;;  %1192 = vst [vmem:[#allocation1] ss:$4 sm:$0xff] %v303_v37  ;;  %v8387_v56 = vld.sshfl [vmem:[#allocation1 + $0x38] sm:$0xff pattern:$0x73625140] }
 0x202   : > { %5992 = vmatpush.xpose.msra.mxu2 %v787_v11  ;;  %5952 = vmatpush.xpose.msra.mxu0 %v785_v12  ;;  %v4576_v46 = vadd.f32 %v4575_v18, %v4556_v17  ;;  %v4615_v47 = vpop.f32.mrf.mxu1  ;;  %v540_v12 = vld [vmem:[%s7191_s30 + $0x758] sm:$0xff]  ;;  %v798_v18 = vld [vmem:[%s7191_s30 + $0xf68] sm:$0x3] }
 0x203   : > { %6012 = vmatpush.xpose.msra.mxu3 %v788_v14  ;;  %5972 = vmatpush.xpose.msra.mxu1 %v786_v15  ;;  %v799_v14 = vld [vmem:[%s7191_s30 + $0xf70] sm:$0x3]  ;;  %v797_v15 = vld [vmem:[%s7191_s30 + $0xf60] sm:$0x3]  ;;  %v800_v17 = vld [vmem:[%s7191_s30 + $0xf78] sm:$0x3] }
 0x204   : > { %v4596_v29 = vadd.f32 %v4595_v36, %v4576_v46  ;;  %5914 = vmatmul.f32.vlgmr.msrb.gmra.mxu2 %v8257_v42  ;;  %5874 = vmatmul.f32.vlgmr.msrb.gmra.mxu0 %v8259_v43  ;;  %v812_v37 = vld [vmem:[%s7191_s30 + $0xfd8] sm:$0x3] }
 0x205   : > { %5934 = vmatmul.f32.vlgmr.msrb.gmra.mxu3 %v8261_v51  ;;  %5894 = vmatmul.f32.vlgmr.msrb.gmra.mxu1 %v8264_v45  ;;  %v535_v45 = vld [vmem:[%s7191_s30 + $0x730] sm:$0xff] }
 0x206   : > { %v4616_v62 = vadd.f32 %v4615_v47, %v4596_v29  ;;  %5993 = vmatpush.xpose.msra.mxu2 %v531_v24  ;;  %5953 = vmatpush.xpose.msra.mxu0 %v529_v27  ;;  %v8383_v24 = vld.sshfl [vmem:[#allocation1 + $0x30] sm:$0xff pattern:$0x73625140]  ;;  %v8385_v27 = vld.sshfl [vmem:[#allocation1 + $0x20] sm:$0xff pattern:$0x73625140] }
 0x207   : > { %v4635_v1 = vpop.f32.mrf.mxu2  ;;  %6013 = vmatpush.xpose.msra.mxu3 %v532_v30  ;;  %5973 = vmatpush.xpose.msra.mxu1 %v530_v59  ;;  %v541_v29 = vld [vmem:[%s7191_s30 + $0x760] sm:$0xff]  ;;  %v304_v59 = vld [vmem:[%s7185_s5 + $0x1f8] sm:$0xff] }
 0x208   : > { %v4636_v42 = vadd.f32 %v4635_v1, %v4616_v62  ;;  %v4655_v43 = vpop.f32.mrf.mxu3  ;;  %v8390_v30 = vld.sshfl [vmem:[#allocation1 + $0x28] sm:$0xff pattern:$0x73625140]  ;;  %v542_v62 = vld [vmem:[%s7191_s30 + $0x768] sm:$0xff] }
 0x209   : > { %v4675_v51 = vpop.f32.mrf.mxu0  ;;  %1193 = vst [vmem:[#allocation1 + $0x20] ss:$4 sm:$0xff] %v304_v59 }
 0x20a   : > { %6072 = vmatpush.xpose.msrb.mxu2 %v791_v32  ;;  %6032 = vmatpush.xpose.msrb.mxu0 %v789_v33  ;;  %v4656_v4 = vadd.f32 %v4655_v43, %v4636_v42  ;;  %v4695_v5 = vpop.f32.mrf.mxu1  ;;  %v544_v33 = vld [vmem:[%s7191_s30 + $0x778] sm:$0xff]  ;;  %v802_v43 = vld [vmem:[%s7191_s30 + $0xf88] sm:$0x3] }
 0x20b   : > { %6092 = vmatpush.xpose.msrb.mxu3 %v792_v39  ;;  %6052 = vmatpush.xpose.msrb.mxu1 %v790_v40  ;;  %v803_v39 = vld [vmem:[%s7191_s30 + $0xf90] sm:$0x3]  ;;  %v801_v40 = vld [vmem:[%s7191_s30 + $0xf80] sm:$0x3]  ;;  %v804_v42 = vld [vmem:[%s7191_s30 + $0xf98] sm:$0x3] }
 0x20c   : > { %v4676_v54 = vadd.f32 %v4675_v51, %v4656_v4  ;;  %5994 = vmatmul.f32.vlgmr.msra.gmra.mxu2 %v8278_v63  ;;  %5954 = vmatmul.f32.vlgmr.msra.gmra.mxu0 %v8280_v0  ;;  %v547_v4 = vld [vmem:[%s7191_s30 + $0x790] sm:$0xff] }
 0x20d   : > { %6014 = vmatmul.f32.vlgmr.msra.gmra.mxu3 %v8282_v7  ;;  %5974 = vmatmul.f32.vlgmr.msra.gmra.mxu1 %v8285_v2  ;;  %v539_v2 = vld [vmem:[%s7191_s30 + $0x750] sm:$0xff] }
 0x20e   : > { %v4696_v19 = vadd.f32 %v4695_v5, %v4676_v54  ;;  %6073 = vmatpush.xpose.msrb.mxu2 %v535_v45  ;;  %6033 = vmatpush.xpose.msrb.mxu0 %v533_v49  ;;  %v545_v5 = vld [vmem:[%s7191_s30 + $0x780] sm:$0xff]  ;;  %v546_v54 = vld [vmem:[%s7191_s30 + $0x788] sm:$0xff] }
 0x20f   : > { %v4715_v22 = vpop.f32.mrf.mxu2  ;;  %6093 = vmatpush.xpose.msrb.mxu3 %v536_v55  ;;  %6053 = vmatpush.xpose.msrb.mxu1 %v534_v16  ;;  %v807_v55 = vld [vmem:[%s7191_s30 + $0xfb0] sm:$0x3]  ;;  %v805_v16 = vld [vmem:[%s7191_s30 + $0xfa0] sm:$0x3] }
 0x210   : > { %v4716_v63 = vadd.f32 %v4715_v22, %v4696_v19  ;;  %v4735_v0 = vpop.f32.mrf.mxu3  ;;  %v806_v19 = vld [vmem:[%s7191_s30 + $0xfa8] sm:$0x3]  ;;  %v551_v22 = vld [vmem:[%s7191_s30 + $0x7b0] sm:$0xff] }
 0x211   : > { %v4755_v7 = vpop.f32.mrf.mxu0 }
 0x212   : > { %6152 = vmatpush.xpose.msra.mxu2 %v795_v57  ;;  %6112 = vmatpush.xpose.msra.mxu0 %v793_v58  ;;  %v4736_v25 = vadd.f32 %v4735_v0, %v4716_v63  ;;  %v4775_v26 = vpop.f32.mrf.mxu1  ;;  %v808_v58 = vld [vmem:[%s7191_s30 + $0xfb8] sm:$0x3]  ;;  %v549_v63 = vld [vmem:[%s7191_s30 + $0x7a0] sm:$0xff] }
 0x213   : > { %6172 = vmatpush.xpose.msra.mxu3 %v796_v60  ;;  %6132 = vmatpush.xpose.msra.mxu1 %v794_v61 }
 0x214   : > { %v4756_v11 = vadd.f32 %v4755_v7, %v4736_v25  ;;  %6074 = vmatmul.f32.vlgmr.msrb.gmra.mxu2 %v8299_v20  ;;  %6034 = vmatmul.f32.vlgmr.msrb.gmra.mxu0 %v8301_v21  ;;  %v552_v7 = vld [vmem:[%s7191_s30 + $0x7b8] sm:$0xff]  ;;  %v811_v25 = vld [vmem:[%s7191_s30 + $0xfd0] sm:$0x3] }
 0x215   : > { %6094 = vmatmul.f32.vlgmr.msrb.gmra.mxu3 %v8303_v28  ;;  %6054 = vmatmul.f32.vlgmr.msrb.gmra.mxu1 %v8306_v23  ;;  %v543_v23 = vld [vmem:[%s7191_s30 + $0x770] sm:$0xff] }
 0x216   : > { %v4776_v44 = vadd.f32 %v4775_v26, %v4756_v11  ;;  %6153 = vmatpush.xpose.msra.mxu2 %v539_v2  ;;  %6113 = vmatpush.xpose.msra.mxu0 %v537_v8  ;;  %v550_v2 = vld [vmem:[%s7191_s30 + $0x7a8] sm:$0xff]  ;;  %v809_v26 = vld [vmem:[%s7191_s30 + $0xfc0] sm:$0x3] }
 0x217   : > { %v4795_v36 = vpop.f32.mrf.mxu2  ;;  %6173 = vmatpush.xpose.msra.mxu3 %v540_v12  ;;  %6133 = vmatpush.xpose.msra.mxu1 %v538_v41  ;;  %v810_v11 = vld [vmem:[%s7191_s30 + $0xfc8] sm:$0x3] }
 0x218   : > { %v4796_v20 = vadd.f32 %v4795_v36, %v4776_v44  ;;  %v4815_v21 = vpop.f32.mrf.mxu3  ;;  %v815_v36 = vld [vmem:[%s7191_s30 + $0xff0] sm:$0x3] }
 0x219   : > { %v4835_v28 = vpop.f32.mrf.mxu0 }
 0x21a   : > { %6232 = vmatpush.xpose.msrb.mxu2 %v799_v14  ;;  %6192 = vmatpush.xpose.msrb.mxu0 %v797_v15  ;;  %v4816_v46 = vadd.f32 %v4815_v21, %v4796_v20  ;;  %v4855_v47 = vpop.f32.mrf.mxu1  ;;  %v555_v14 = vld [vmem:[%s7191_s30 + $0x7d0] sm:$0xff]  ;;  %v553_v15 = vld [vmem:[%s7191_s30 + $0x7c0] sm:$0xff] }
 0x21b   : > { %6252 = vmatpush.xpose.msrb.mxu3 %v800_v17  ;;  %6212 = vmatpush.xpose.msrb.mxu1 %v798_v18  ;;  %v556_v17 = vld [vmem:[%s7191_s30 + $0x7d8] sm:$0xff]  ;;  %v554_v18 = vld [vmem:[%s7191_s30 + $0x7c8] sm:$0xff]  ;;  %v813_v20 = vld [vmem:[%s7191_s30 + $0xfe0] sm:$0x3] }
 0x21c   : > { %v4836_v32 = vadd.f32 %v4835_v28, %v4816_v46  ;;  %6154 = vmatmul.f32.vlgmr.msra.gmra.mxu2 %v8320_v34  ;;  %6114 = vmatmul.f32.vlgmr.msra.gmra.mxu0 %v8322_v35  ;;  %v816_v28 = vld [vmem:[%s7191_s30 + $0xff8] sm:$0x3] }
 0x21d   : > { %6174 = vmatmul.f32.vlgmr.msra.gmra.mxu3 %v8324_v52  ;;  %6134 = vmatmul.f32.vlgmr.msra.gmra.mxu1 %v8327_v38 }
 0x21e   : > { %v4856_v1 = vadd.f32 %v4855_v47, %v4836_v32  ;;  %6233 = vmatpush.xpose.msrb.mxu2 %v543_v23  ;;  %6193 = vmatpush.xpose.msrb.mxu0 %v541_v29  ;;  %v814_v23 = vld [vmem:[%s7191_s30 + $0xfe8] sm:$0x3]  ;;  %v1194_v29 = vld.sshfl [vmem:[#allocation1] sm:$0xff pattern:$0x73625140] }
 0x21f   : > { %v4875_v51 = vpop.f32.mrf.mxu2  ;;  %6253 = vmatpush.xpose.msrb.mxu3 %v544_v33  ;;  %6213 = vmatpush.xpose.msrb.mxu1 %v542_v62  ;;  %v1197_v32 = vld.sshfl [vmem:[#allocation1 + $0x18] sm:$0xff pattern:$0x73625140]  ;;  %v1195_v33 = vld.sshfl [vmem:[#allocation1 + $0x8] sm:$0xff pattern:$0x73625140] }
 0x220   : > { %v4876_v34 = vadd.f32 %v4875_v51, %v4856_v1  ;;  %v4895_v35 = vpop.f32.mrf.mxu3  ;;  %v559_v62 = vld [vmem:[%s7191_s30 + $0x7f0] sm:$0xff]  ;;  %v560_v1 = vld [vmem:[%s7191_s30 + $0x7f8] sm:$0xff] }
 0x221   : > { %v4915_v52 = vpop.f32.mrf.mxu0 }
 0x222   : > { %6312 = vmatpush.xpose.msra.mxu2 %v803_v39  ;;  %6272 = vmatpush.xpose.msra.mxu0 %v801_v40  ;;  %v4896_v38 = vadd.f32 %v4895_v35, %v4876_v34  ;;  %v4935_v45 = vpop.f32.mrf.mxu1  ;;  %v557_v39 = vld [vmem:[%s7191_s30 + $0x7e0] sm:$0xff] }
 0x223   : > { %6332 = vmatpush.xpose.msra.mxu3 %v804_v42  ;;  %6292 = vmatpush.xpose.msra.mxu1 %v802_v43  ;;  %v558_v42 = vld [vmem:[%s7191_s30 + $0x7e8] sm:$0xff] }
 0x224   : > { %v4916_v49 = vadd.f32 %v4915_v52, %v4896_v38  ;;  %6234 = vmatmul.f32.vlgmr.msrb.gmra.mxu2 %v8341_v48  ;;  %6194 = vmatmul.f32.vlgmr.msrb.gmra.mxu0 %v8343_v50  ;;  %v1200_v38 = vld.sshfl [vmem:[#allocation1 + $0x30] sm:$0xff pattern:$0x73625140] }
 0x225   : > { %6254 = vmatmul.f32.vlgmr.msrb.gmra.mxu3 %v8345_v10  ;;  %6214 = vmatmul.f32.vlgmr.msrb.gmra.mxu1 %v8348_v53 }
 0x226   : > { %v4936_v57 = vadd.f32 %v4935_v45, %v4916_v49  ;;  %6313 = vmatpush.xpose.msra.mxu2 %v547_v4  ;;  %6273 = vmatpush.xpose.msra.mxu0 %v545_v5  ;;  %v1198_v45 = vld.sshfl [vmem:[#allocation1 + $0x20] sm:$0xff pattern:$0x73625140]  ;;  %v1201_v49 = vld.sshfl [vmem:[#allocation1 + $0x38] sm:$0xff pattern:$0x73625140] }
 0x227   : > { %v4955_v60 = vpop.f32.mrf.mxu2  ;;  %6333 = vmatpush.xpose.msra.mxu3 %v548_v13  ;;  %6293 = vmatpush.xpose.msra.mxu1 %v546_v54  ;;  %v1199_v13 = vld.sshfl [vmem:[#allocation1 + $0x28] sm:$0xff pattern:$0x73625140] }
 0x228   : > { %v4956_v48 = vadd.f32 %v4955_v60, %v4936_v57  ;;  %v4975_v50 = vpop.f32.mrf.mxu3 }
 0x229   : > { %v4995_v10 = vpop.f32.mrf.mxu0 }
 0x22a   : > { %6392 = vmatpush.xpose.msrb.mxu2 %v807_v55  ;;  %6352 = vmatpush.xpose.msrb.mxu0 %v805_v16  ;;  %v4976_v53 = vadd.f32 %v4975_v50, %v4956_v48  ;;  %v5015_v61 = vpop.f32.mrf.mxu1 }
 0x22b   : > { %6412 = vmatpush.xpose.msrb.mxu3 %v808_v58  ;;  %6372 = vmatpush.xpose.msrb.mxu1 %v806_v19 }
 0x22c   : > { %v4996_v0 = vadd.f32 %v4995_v10, %v4976_v53  ;;  %6314 = vmatmul.f32.vlgmr.msra.gmra.mxu2 %v8362_v3  ;;  %6274 = vmatmul.f32.vlgmr.msra.gmra.mxu0 %v8364_v6 }
 0x22d   : > { %6334 = vmatmul.f32.vlgmr.msra.gmra.mxu3 %v8366_v31  ;;  %6294 = vmatmul.f32.vlgmr.msra.gmra.mxu1 %v8369_v9 }
 0x22e   : > { %v5016_v8 = vadd.f32 %v5015_v61, %v4996_v0  ;;  %6393 = vmatpush.xpose.msrb.mxu2 %v551_v22  ;;  %6353 = vmatpush.xpose.msrb.mxu0 %v549_v63 }
 0x22f   : > { %v5035_v12 = vpop.f32.mrf.mxu2  ;;  %6413 = vmatpush.xpose.msrb.mxu3 %v552_v7  ;;  %6373 = vmatpush.xpose.msrb.mxu1 %v550_v2 }
 0x230   : > { %v5036_v3 = vadd.f32 %v5035_v12, %v5016_v8  ;;  %v5055_v6 = vpop.f32.mrf.mxu3 }
 0x231   : > { %v5075_v31 = vpop.f32.mrf.mxu0 }
 0x232   : > { %6472 = vmatpush.xpose.msra.mxu2 %v811_v25  ;;  %6432 = vmatpush.xpose.msra.mxu0 %v809_v26  ;;  %v5056_v9 = vadd.f32 %v5055_v6, %v5036_v3  ;;  %v5095_v41 = vpop.f32.mrf.mxu1 }
 0x233   : > { %6492 = vmatpush.xpose.msra.mxu3 %v812_v37  ;;  %6452 = vmatpush.xpose.msra.mxu1 %v810_v11 }
 0x234   : > { %v5076_v44 = vadd.f32 %v5075_v31, %v5056_v9  ;;  %6394 = vmatmul.f32.vlgmr.msrb.gmra.mxu2 %v8383_v24  ;;  %6354 = vmatmul.f32.vlgmr.msrb.gmra.mxu0 %v8385_v27 }
 0x235   : > { %6414 = vmatmul.f32.vlgmr.msrb.gmra.mxu3 %v8387_v56  ;;  %6374 = vmatmul.f32.vlgmr.msrb.gmra.mxu1 %v8390_v30  ;;  %v1196_v56 = vld.sshfl [vmem:[#allocation1 + $0x10] sm:$0xff pattern:$0x73625140] }
 0x236   : > { %v5096_v21 = vadd.f32 %v5095_v41, %v5076_v44  ;;  %6473 = vmatpush.xpose.msra.mxu2 %v555_v14  ;;  %6433 = vmatpush.xpose.msra.mxu0 %v553_v15 }
 0x237   : > { %v5115_v46 = vpop.f32.mrf.mxu2  ;;  %6493 = vmatpush.xpose.msra.mxu3 %v556_v17  ;;  %6453 = vmatpush.xpose.msra.mxu1 %v554_v18 }
 0x238   : > { %v5116_v24 = vadd.f32 %v5115_v46, %v5096_v21  ;;  %v5135_v47 = vpop.f32.mrf.mxu3 }
 0x239   : > { %v5155_v27 = vpop.f32.mrf.mxu0 }
 0x23a   : > { %6552 = vmatpush.xpose.msrb.mxu2 %v815_v36  ;;  %6512 = vmatpush.xpose.msrb.mxu0 %v813_v20  ;;  %v5136_v30 = vadd.f32 %v5135_v47, %v5116_v24  ;;  %v5175_v59 = vpop.f32.mrf.mxu1 }
 0x23b   : > { %6572 = vmatpush.xpose.msrb.mxu3 %v816_v28  ;;  %6532 = vmatpush.xpose.msrb.mxu1 %v814_v23 }
 0x23c   : > { %v5156_v40 = vadd.f32 %v5155_v27, %v5136_v30  ;;  %6474 = vmatmul.f32.vlgmr.msra.gmra.mxu2 %v1196_v56  ;;  %6434 = vmatmul.f32.vlgmr.msra.gmra.mxu0 %v1194_v29 }
 0x23d   : > { %6494 = vmatmul.f32.vlgmr.msra.gmra.mxu3 %v1197_v32  ;;  %6454 = vmatmul.f32.vlgmr.msra.gmra.mxu1 %v1195_v33 }
 0x23e   : > { %v5176_v43 = vadd.f32 %v5175_v59, %v5156_v40  ;;  %6553 = vmatpush.xpose.msrb.mxu2 %v559_v62  ;;  %6513 = vmatpush.xpose.msrb.mxu0 %v557_v39 }
 0x23f   : > { %v5195_v51 = vpop.f32.mrf.mxu2  ;;  %6573 = vmatpush.xpose.msrb.mxu3 %v560_v1  ;;  %6533 = vmatpush.xpose.msrb.mxu1 %v558_v42 }
 0x240   : > { %v5196_v34 = vadd.f32 %v5195_v51, %v5176_v43  ;;  %v5215_v35 = vpop.f32.mrf.mxu3 }
 0x241   : > { %v5235_v52 = vpop.f32.mrf.mxu0 }
 0x242   : > { %v5216_v4 = vadd.f32 %v5215_v35, %v5196_v34  ;;  %v5255_v5 = vpop.f32.mrf.mxu1 }
 0x244   : > { %v5236_v54 = vadd.f32 %v5235_v52, %v5216_v4  ;;  %6554 = vmatmul.f32.vlgmr.msrb.gmra.mxu2 %v1200_v38  ;;  %6514 = vmatmul.f32.vlgmr.msrb.gmra.mxu0 %v1198_v45 }
 0x245   : > { %6574 = vmatmul.f32.vlgmr.msrb.gmra.mxu3 %v1201_v49  ;;  %6534 = vmatmul.f32.vlgmr.msrb.gmra.mxu1 %v1199_v13 }
 0x246   : > { %v5256_v55 = vadd.f32 %v5255_v5, %v5236_v54 }
 0x247   : > { %v5275_v16 = vpop.f32.mrf.mxu2 }
 0x248   : > { %v5276_v57 = vadd.f32 %v5275_v16, %v5256_v55  ;;  %v5295_v58 = vpop.f32.mrf.mxu3 }
 0x249   : > { %v5315_v19 = vpop.f32.mrf.mxu0 }
 0x24a   : > { %v5296_v60 = vadd.f32 %v5295_v58, %v5276_v57  ;;  %v5335_v48 = vpop.f32.mrf.mxu1 }
 0x24c   : > { %v5316_v50 = vadd.f32 %v5315_v19, %v5296_v60 }
 0x24e   : > { %v5336_v10 = vadd.f32 %v5335_v48, %v5316_v50 }
 0x24f   : > { %v5355_v53 = vpop.f32.mrf.mxu2 }
 0x250   : > { %v5356_v61 = vadd.f32 %v5355_v53, %v5336_v10  ;;  %v5375_v22 = vpop.f32.mrf.mxu3 }
 0x251   : > { %v5395_v63 = vpop.f32.mrf.mxu0 }
 0x252   : > { %v5376_v0 = vadd.f32 %v5375_v22, %v5356_v61  ;;  %v5415_v7 = vpop.f32.mrf.mxu1 }
 0x254   : > { %v5396_v2 = vadd.f32 %v5395_v63, %v5376_v0 }
 0x256   : > { %v5416_v25 = vadd.f32 %v5415_v7, %v5396_v2 }
 0x257   : > { %v5435_v26 = vpop.f32.mrf.mxu2 }
 0x258   : > { %v5436_v8 = vadd.f32 %v5435_v26, %v5416_v25  ;;  %v5455_v37 = vpop.f32.mrf.mxu3 }
 0x259   : > { %v5475_v11 = vpop.f32.mrf.mxu0 }
 0x25a   : > { %v5456_v12 = vadd.f32 %v5455_v37, %v5436_v8  ;;  %v5495_v3 = vpop.f32.mrf.mxu1 }
 0x25c   : > { %v5476_v6 = vadd.f32 %v5475_v11, %v5456_v12 }
 0x25e   : > { %v5496_v31 = vadd.f32 %v5495_v3, %v5476_v6 }
 0x25f   : > { %v5515_v9 = vpop.f32.mrf.mxu2 }
 0x260   : > { %v5516_v41 = vadd.f32 %v5515_v9, %v5496_v31  ;;  %v5535_v14 = vpop.f32.mrf.mxu3 }
 0x261   : > { %v5555_v15 = vpop.f32.mrf.mxu0 }
 0x262   : > { %v5536_v44 = vadd.f32 %v5535_v14, %v5516_v41  ;;  %v5575_v17 = vpop.f32.mrf.mxu1 }
 0x264   : > { %v5556_v18 = vadd.f32 %v5555_v15, %v5536_v44 }
 0x266   : > { %v5576_v36 = vadd.f32 %v5575_v17, %v5556_v18 }
 0x267   : > { %v5595_v20 = vpop.f32.mrf.mxu2 }
 0x268   : > { %v5596_v21 = vadd.f32 %v5595_v20, %v5576_v36  ;;  %v5615_v28 = vpop.f32.mrf.mxu3 }
 0x269   : > { %v5635_v23 = vpop.f32.mrf.mxu0 }
 0x26a   : > { %v5616_v46 = vadd.f32 %v5615_v28, %v5596_v21  ;;  %v5655_v24 = vpop.f32.mrf.mxu1 }
 0x26c   : > { %v5636_v47 = vadd.f32 %v5635_v23, %v5616_v46 }
 0x26e   : > { %v5656_v27 = vadd.f32 %v5655_v24, %v5636_v47 }
 0x26f   : > { %v5675_v56 = vpop.f32.mrf.mxu2 }
 0x270   : > { %v5676_v29 = vadd.f32 %v5675_v56, %v5656_v27  ;;  %v5695_v30 = vpop.f32.mrf.mxu3 }
 0x271   : > { %v5715_v59 = vpop.f32.mrf.mxu0 }
 0x272   : > { %v5696_v32 = vadd.f32 %v5695_v30, %v5676_v29  ;;  %v5735_v33 = vpop.f32.mrf.mxu1 }
 0x274   : > { %v5716_v62 = vadd.f32 %v5715_v59, %v5696_v32 }
 0x276   : > { %v5736_v39 = vadd.f32 %v5735_v33, %v5716_v62 }
 0x277   : > { %v5755_v40 = vpop.f32.mrf.mxu2 }
 0x278   : > { %v5756_v1 = vadd.f32 %v5755_v40, %v5736_v39  ;;  %v5775_v42 = vpop.f32.mrf.mxu3 }
 0x279   : > { %v5795_v43 = vpop.f32.mrf.mxu0 }
 0x27a   : > { %v5776_v51 = vadd.f32 %v5775_v42, %v5756_v1  ;;  %v5815_v34 = vpop.f32.mrf.mxu1 }
 0x27c   : > { %v5796_v35 = vadd.f32 %v5795_v43, %v5776_v51 }
 0x27e   : > { %v5816_v52 = vadd.f32 %v5815_v34, %v5796_v35 }
 0x27f   : > { %v5835_v38 = vpop.f32.mrf.mxu2 }
 0x280   : > { %v5836_v45 = vadd.f32 %v5835_v38, %v5816_v52  ;;  %v5855_v4 = vpop.f32.mrf.mxu3 }
 0x281   : > { %v5875_v5 = vpop.f32.mrf.mxu0 }
 0x282   : > { %v5856_v49 = vadd.f32 %v5855_v4, %v5836_v45  ;;  %v5895_v13 = vpop.f32.mrf.mxu1 }
 0x284   : > { %v5876_v54 = vadd.f32 %v5875_v5, %v5856_v49 }
 0x286   : > { %v5896_v55 = vadd.f32 %v5895_v13, %v5876_v54 }
 0x287   : > { %v5915_v16 = vpop.f32.mrf.mxu2 }
 0x288   : > { %v5916_v57 = vadd.f32 %v5915_v16, %v5896_v55  ;;  %v5935_v58 = vpop.f32.mrf.mxu3 }
 0x289   : > { %v5955_v19 = vpop.f32.mrf.mxu0 }
 0x28a   : > { %v5936_v60 = vadd.f32 %v5935_v58, %v5916_v57  ;;  %v5975_v48 = vpop.f32.mrf.mxu1 }
 0x28c   : > { %v5956_v50 = vadd.f32 %v5955_v19, %v5936_v60  ;;  %v240_v19 = vld [vmem:[#allocation2] sm:$0x3] }
 0x28e   : > { %v5976_v10 = vadd.f32 %v5975_v48, %v5956_v50 }
 0x28f   : > { %v5995_v53 = vpop.f32.mrf.mxu2 }
 0x290   : > { %v5996_v61 = vadd.f32 %v5995_v53, %v5976_v10  ;;  %v6015_v22 = vpop.f32.mrf.mxu3 }
 0x291   : > { %v6035_v63 = vpop.f32.mrf.mxu0 }
 0x292   : > { %v6016_v0 = vadd.f32 %v6015_v22, %v5996_v61  ;;  %v6055_v7 = vpop.f32.mrf.mxu1 }
 0x294   : > { %v6036_v2 = vadd.f32 %v6035_v63, %v6016_v0 }
 0x296   : > { %v6056_v25 = vadd.f32 %v6055_v7, %v6036_v2 }
 0x297   : > { %v6075_v26 = vpop.f32.mrf.mxu2 }
 0x298   : > { %v6076_v8 = vadd.f32 %v6075_v26, %v6056_v25  ;;  %v6095_v37 = vpop.f32.mrf.mxu3 }
 0x299   : > { %v6115_v11 = vpop.f32.mrf.mxu0 }
 0x29a   : > { %v6096_v12 = vadd.f32 %v6095_v37, %v6076_v8  ;;  %v6135_v3 = vpop.f32.mrf.mxu1 }
 0x29c   : > { %v6116_v6 = vadd.f32 %v6115_v11, %v6096_v12 }
 0x29e   : > { %v6136_v31 = vadd.f32 %v6135_v3, %v6116_v6 }
 0x29f   : > { %v6155_v9 = vpop.f32.mrf.mxu2 }
 0x2a0   : > { %v6156_v41 = vadd.f32 %v6155_v9, %v6136_v31  ;;  %v6175_v14 = vpop.f32.mrf.mxu3 }
 0x2a1   : > { %v6195_v15 = vpop.f32.mrf.mxu0 }
 0x2a2   : > { %v6176_v44 = vadd.f32 %v6175_v14, %v6156_v41  ;;  %v6215_v17 = vpop.f32.mrf.mxu1 }
 0x2a4   : > { %v6196_v18 = vadd.f32 %v6195_v15, %v6176_v44 }
 0x2a6   : > { %v6216_v36 = vadd.f32 %v6215_v17, %v6196_v18 }
 0x2a7   : > { %v6235_v20 = vpop.f32.mrf.mxu2 }
 0x2a8   : > { %v6236_v21 = vadd.f32 %v6235_v20, %v6216_v36  ;;  %v6255_v28 = vpop.f32.mrf.mxu3 }
 0x2a9   : > { %v6275_v23 = vpop.f32.mrf.mxu0 }
 0x2aa   : > { %v6256_v46 = vadd.f32 %v6255_v28, %v6236_v21  ;;  %v6295_v24 = vpop.f32.mrf.mxu1 }
 0x2ac   : > { %v6276_v47 = vadd.f32 %v6275_v23, %v6256_v46 }
 0x2ae   : > { %v6296_v27 = vadd.f32 %v6295_v24, %v6276_v47 }
 0x2af   : > { %v6315_v56 = vpop.f32.mrf.mxu2 }
 0x2b0   : > { %v6316_v29 = vadd.f32 %v6315_v56, %v6296_v27  ;;  %v6335_v30 = vpop.f32.mrf.mxu3 }
 0x2b1   : > { %v6355_v59 = vpop.f32.mrf.mxu0 }
 0x2b2   : > { %v6336_v32 = vadd.f32 %v6335_v30, %v6316_v29  ;;  %v6375_v33 = vpop.f32.mrf.mxu1 }
 0x2b4   : > { %v6356_v62 = vadd.f32 %v6355_v59, %v6336_v32 }
 0x2b6   : > { %v6376_v39 = vadd.f32 %v6375_v33, %v6356_v62 }
 0x2b7   : > { %v6395_v40 = vpop.f32.mrf.mxu2 }
 0x2b8   : > { %v6396_v1 = vadd.f32 %v6395_v40, %v6376_v39  ;;  %v6415_v42 = vpop.f32.mrf.mxu3 }
 0x2b9   : > { %v6435_v43 = vpop.f32.mrf.mxu0 }
 0x2ba   : > { %v6416_v51 = vadd.f32 %v6415_v42, %v6396_v1  ;;  %v6455_v34 = vpop.f32.mrf.mxu1 }
 0x2bc   : > { %v6436_v35 = vadd.f32 %v6435_v43, %v6416_v51 }
 0x2be   : > { %v6456_v52 = vadd.f32 %v6455_v34, %v6436_v35 }
 0x2bf   : > { %v6475_v38 = vpop.f32.mrf.mxu2 }
 0x2c0   : > { %v6476_v45 = vadd.f32 %v6475_v38, %v6456_v52  ;;  %v6495_v4 = vpop.f32.mrf.mxu3 }
 0x2c1   : > { %v6515_v5 = vpop.f32.mrf.mxu0 }
 0x2c2   : > { %v6496_v49 = vadd.f32 %v6495_v4, %v6476_v45  ;;  %v6535_v13 = vpop.f32.mrf.mxu1 }
 0x2c4   : > { %v6516_v54 = vadd.f32 %v6515_v5, %v6496_v49 }
 0x2c6   : > { %v6536_v55 = vadd.f32 %v6535_v13, %v6516_v54 }
 0x2c7   : > { %v6555_v16 = vpop.f32.mrf.mxu2 }
 0x2c8   : > { %v6556_v57 = vadd.f32 %v6555_v16, %v6536_v55  ;;  %v6575_v58 = vpop.f32.mrf.mxu3 }
 0x2ca   : > { %v6576_v60 = vadd.f32 %v6575_v58, %v6556_v57  ;;  %6584 = sbr.rel (%p6726_p7) target bundleno = 727 (0x2d7), region = 44 }
 0x2cc   : > { %v6578_v48 = vadd.f32 %v6576_v60, %v240_v19 }
 0x2ce   : > { %6580 = vst.msk [vmem:[#allocation2] sm:$0x3] %vm6579_vm1, %v6578_v48 }
 0x2d5   : > { %v6585_v50 = vld [vmem:[#allocation2] sm:$0x3] }
 0x2d6   : > { %6586 = vst.msk [vmem:[%s227_s8] sm:$0x3] %vm6579_vm1, %v6585_v50 }
 0x2d7 PF: > { %s6728_s28 = sshll.u32 %s7018_s16, 1  ;;  %s6600_s27 = sshll.u32 %s227_s8, 4  ;;  %s6601_s27 = int_to_ptr.vmem [resolvable:$true] %s6600_s27 }
 0x2d8   : > { %s6598_s3 = scalar_lea.hbm %s8503_s2, %s6728_s28  ;;  %s6588_s15 = scalar_lea.sflag [#allocation5], %s225_s0 }
 0x2d9   : > { %s6602_s25 = sshll.u32 %s6598_s3, 4  ;;  %s6924_s4 = scalar_lea.hbm %s8503_s2, 4  ;;  %s6603_s25 = int_to_ptr.hbm [resolvable:$true] %s6602_s25 }
 0x2da   : > { %s6918_s21 = sshra.s32 %s6603_s25, 4  ;;  %s6919_s21 = int_to_ptr.hbm [resolvable:$true] %s6918_s21 }
 0x2db   : > { %s6920_s26 = scalar_lea.hbm %s6919_s21, 2  ;;  %p6925_p12 = scmp.lt.s32.totalorder %s6919_s21, %s8503_s2 }
 0x2dc   : > { %p6921_p9 = scmp.ne.s32.totalorder %s6919_s21, %s6920_s26  ;;  %p6926_p0 = scmp.lt.s32.totalorder %s6924_s4, %s6920_s26 }
 0x2de   : > { %p6922_p10 = pnand %p6921_p9, %p7140_p13  ;;  %p6927_p1 = por %p6926_p0, %p6925_p12 }
 0x2e0   : > { %p6923_p11 = pneg %p6922_p10 }
 0x2e2   : > { %p6928_p3 = pnand %p6927_p1, %p6923_p11 }
 0x2e4   : > { %6931 = shalt.err (!%p6928_p3)
}
 0x2e5   : > { %6737 = dma.vmem_to_hbm [thread:$0]  (%p7140_p13), %s6601_s27, 32, %s6603_s25, %s6588_s15  }
 0x2e6 PF: > { %p6751_p4 = scmp.ge.s32.totalorder %s7030_s19, 2  ;;  %s6614_s22 = sand.u32 1, %s6990_s9  }
 0x2e7   : > { %s6615_s12 = scalar_lea.sflag [#allocation5], %s6614_s22 }
 0x2e8   : > { %p6747_p6 = pnand %p6751_p4, %p7156_p2 }
 0x2ea   : > { %p6748_p5 = pneg %p6747_p6 }
 0x2ec   : > { %6985 = dma.done.wait (%p6748_p5), %s6615_s12, 32  }
 0x2ed   : > { %6987 = vsyncadd (%p6748_p5), %s6615_s12, 4294967264  ;;  %s21_s19 = sadd.s32 1, %s7030_s19   ;;  %s8520_s6 = sld [smem:[#allocation16_spill]] }
 0x2ee   : > { %p18_p8 = scmp.ge.s32.totalorder %s21_s19, 8   ;;  %s8521_s15 = sld [smem:[#allocation12_spill]] }
 0x2ef   : > { %s8522_s16 = sld [smem:[#allocation13_spill]]  ;;  %s8525_s9 = smov %s6994_s10 }
 0x2f0   : > { %s8523_s17 = sld [smem:[#allocation14_spill]]  ;;  %s8526_s10 = smov %s6998_s11 }
 0x2f1   : > { %s8524_s18 = sld [smem:[#allocation15_spill]]  ;;  %s8527_s11 = smov %s7145_s7 }
 0x2f2   : > { %s8528_s12 = smov %s7006_s13  ;;  %s8529_s13 = smov %s7010_s14 }
 0x2f3   : > { %s8530_s14 = smov %s8520_s6  ;;  %20 = sbr.rel (!%p18_p8) target bundleno = 13 (0xd), region = 95 }
 0x2f8   :  { %6621 = vsyncpa [#allocation4], 1 }
 0x2f9   :  { %6623 = vsyncpa [#allocation4 + $0x1], 1 }
 0x2fa   :  { %6624 = vsyncpa [#allocation7], 1 }
 0x2fb   :  { %6626 = vsyncpa [#allocation7 + $0x1], 1 }
 0x2fc   :  { %6627 = vsyncpa [#allocation5], 1 }
 0x2fd   :  { %6629 = vsyncpa [#allocation5 + $0x1], 1 }

</bundles_post_ra>
